<compile_context>
chip_gen: v7x
topology: tpu7x:2x2x1
jax: 0.10.0
libtpu: 0.0.40
codegen_flags: <defaults>
</compile_context>

<pallas_src>
import jax
import jax.numpy as jnp
from jax import lax
from jax.experimental import pallas as pl
from jax.experimental.pallas import tpu as pltpu

# ----------------------- small synthetic KimiVL config -----------------------
VISION_HIDDEN = 32              # config.vision_config.hidden_size
TEXT_HIDDEN = 256               # config.text_config.hidden_size (2 x 128 lanes)
PATCH = 8                       # config.vision_config.patch_size
CHANNELS = 3
MERGE_KH, MERGE_KW = 2, 2       # config.vision_config.merge_kernel_size
MERGE = MERGE_KH * MERGE_KW
PATCH_DIM = CHANNELS * PATCH * PATCH              # 192
PROJ_HIDDEN = VISION_HIDDEN * MERGE               # 128
VOCAB = 256                     # config.text_config.vocab_size
MEDIA_PLACEHOLDER_ID = 7        # config.media_placeholder_token_id
NUM_HEADS = 2
HEAD_DIM = TEXT_HIDDEN // NUM_HEADS               # 128 -> 128-lane aligned heads
MLP_INTER = 512
LN_EPS = 1e-5
RMS_EPS = 1e-6
ROPE_THETA = 10000.0

SEQ_TILE = 64                   # decoder query-token tile (grid axis, "parallel")
VIS_TILE = 8                    # vision image-token tile (grid axis, "parallel")
VMEM_LIMIT_BYTES = 32 * 1024 * 1024


def _rmsnorm(x, gamma):
    var = jnp.mean(x * x, axis=-1, keepdims=True)
    return x * lax.rsqrt(var + RMS_EPS) * gamma


# ----------------------------- Pallas kernels ---------------------------------
def _vision_projector_kernel(px_ref, wpe_ref, bpe_ref, m_ref, g_ref, b_ref,
                             w1_ref, b1_ref, w2_ref, b2_ref, o_ref):
    # vision_tower stand-in (patch-embed linear) fused with
    # KimiVLMultiModalProjector (pre_norm LayerNorm, view(-1, 128), linear_1,
    # exact GELU, linear_2), tiled over image tokens.
    # TODO(synk): full MoonViT transformer blocks (packed 2D attention) are not
    # implemented; only the patch-embedding projection is done here.
    x = px_ref[...]                                            # (VIS_TILE, 768) bf16
    # Block-diagonal patch-embed weight keeps this matmul 128-lane dense at the
    # toy VISION_HIDDEN=32 (at real >=128 vision hidden, use the plain
    # (n_patches, PATCH_DIM) @ (PATCH_DIM, hidden) layout instead — see review).
    y = jnp.dot(x, wpe_ref[...],
                preferred_element_type=jnp.float32) + bpe_ref[...]   # (T, 128) f32

    # pre_norm: LayerNorm over each 32-wide per-patch block of the 128-wide row.
    # Single precomputed block-mean matrix M = pool @ unpool (128,128), so each
    # statistic is one lane-dense matmul (no 4-lane intermediates).
    mean_f = jnp.dot(y, m_ref[...], preferred_element_type=jnp.float32)
    meansq_f = jnp.dot(y * y, m_ref[...], preferred_element_type=jnp.float32)
    var_f = jnp.maximum(meansq_f - mean_f * mean_f, 0.0)       # clamp (cancellation)
    xn = (y - mean_f) * lax.rsqrt(var_f + LN_EPS) * g_ref[...] + b_ref[...]

    h = jnp.dot(xn.astype(jnp.bfloat16), w1_ref[...],
                preferred_element_type=jnp.float32) + b1_ref[...]
    # exact GELU (erf form, matching transformers.GELUActivation) in f32
    h = 0.5 * h * (1.0 + lax.erf(h * 0.7071067811865476))
    o_ref[...] = (
        jnp.dot(h.astype(jnp.bfloat16), w2_ref[...],
                preferred_element_type=jnp.float32) + b2_ref[...]
    )


def _rope(x, cos, sin_signed):
    # x * cos + rotate_half(x) * sin ; the rotate-half sign is pre-folded into
    # sin_signed in the wrapper, so this is one XLU roll + two VPU muls + add.
    return x * cos + pltpu.roll(x, shift=HEAD_DIM // 2, axis=1) * sin_signed


def _decoder_layer_kernel(hq_ref, hf_ref, cq_ref, sq_ref, cf_ref, sf_ref,
                          ag_ref, wq_ref, wkv_ref, wo_ref, mg_ref, wgu_ref,
                          wd_ref, fg_ref, o_ref):
    # Fused DeepseekV2-style decoder layer (simplified to standard causal MHA
    # with rotary embeddings) + SwiGLU MLP + final model RMSNorm, for one
    # query-token tile. The residual for the tile stays in VMEM/vregs.
    # TODO(synk): MLA attention (latent KV projection, partial rope), MoE expert
    # routing, paged KV cache of the real DeepseekV2Model are not implemented.
    tq = hq_ref.shape[0]
    seq = hf_ref.shape[0]
    q_start = pl.program_id(0) * tq

    h = hq_ref[...]                                            # (TQ, 256) f32

    # --- attention sub-layer ---
    xq = _rmsnorm(h, ag_ref[...]).astype(jnp.bfloat16)         # q-tile rows
    xf = _rmsnorm(hf_ref[...], ag_ref[...]).astype(jnp.bfloat16)  # full sequence
    # TODO(synk): at real S, K/V for the full sequence should come from a
    # separate QKV kernel (or a flash KV grid axis), not be recomputed per tile.

    # 1/sqrt(head_dim) is pre-folded into wq (wrapper) -> zero runtime cost.
    q_all = jnp.dot(xq, wq_ref[...],
                    preferred_element_type=jnp.float32)        # (TQ, 256)  K=256
    kv_all = jnp.dot(xf, wkv_ref[...],
                     preferred_element_type=jnp.float32)       # (S, 512)   K=256

    row = q_start + lax.broadcasted_iota(jnp.int32, (tq, seq), 0)
    col = lax.broadcasted_iota(jnp.int32, (tq, seq), 1)
    causal = col <= row

    # Per-head slices are 128-lane-aligned and 128 wide -> full vreg tiles, no
    # narrow lane extracts. Per-head contexts are concatenated once and W_o is
    # a single K=256 lane-dense matmul (no K-narrow epilogue matmuls).
    ctx_heads = []
    for hd in range(NUM_HEADS):
        lo = hd * HEAD_DIM
        q_h = _rope(q_all[:, lo:lo + HEAD_DIM], cq_ref[...],
                    sq_ref[...]).astype(jnp.bfloat16)
        k_h = _rope(kv_all[:, lo:lo + HEAD_DIM], cf_ref[...],
                    sf_ref[...]).astype(jnp.bfloat16)
        v_h = kv_all[:, NUM_HEADS * HEAD_DIM + lo:
                     NUM_HEADS * HEAD_DIM + lo + HEAD_DIM].astype(jnp.bfloat16)
        s = jnp.einsum('qd,kd->qk', q_h, k_h,
                       preferred_element_type=jnp.float32)     # (TQ, S) f32
        s = jnp.where(causal, s, -1e30)                        # f32 mask fill
        p = jnp.exp(s - jnp.max(s, axis=-1, keepdims=True))
        p = p * pl.reciprocal(jnp.sum(p, axis=-1, keepdims=True), approx=True)
        ctx_heads.append(jnp.dot(p.astype(jnp.bfloat16), v_h,
                                 preferred_element_type=jnp.float32))  # (TQ, 128)
    ctx = jnp.concatenate(ctx_heads, axis=-1)                  # (TQ, 256) lane-dense
    h = h + jnp.dot(ctx.astype(jnp.bfloat16), wo_ref[...],
                    preferred_element_type=jnp.float32)        # single K=256 matmul

    # --- SwiGLU MLP sub-layer (fused gate-up matmul, K=256 / K=512) ---
    x2 = _rmsnorm(h, mg_ref[...]).astype(jnp.bfloat16)
    gu = jnp.dot(x2, wgu_ref[...],
                 preferred_element_type=jnp.float32)           # (TQ, 1024)
    gate = gu[:, :MLP_INTER]
    up = gu[:, MLP_INTER:]
    act = gate * jax.nn.sigmoid(gate) * up                     # f32 elementwise
    h = h + jnp.dot(act.astype(jnp.bfloat16), wd_ref[...],
                    preferred_element_type=jnp.float32)

    # final RMSNorm of the language model (single layer -> equivalent placement)
    o_ref[...] = _rmsnorm(h, fg_ref[...])


# ----------------------------- python wrappers --------------------------------
def _full_spec(arr):
    return pl.BlockSpec(arr.shape, lambda i: (0, 0))


def vision_and_projector(pixel_values, kp):
    n_patches = pixel_values.shape[0]
    n_tok = n_patches // MERGE
    # Wrapper-side layout plumbing (free): cast to bf16 (halves the input DMA),
    # NCHW patches row-major flattened, then merge-group 4 patches per token.
    px = pixel_values.astype(jnp.bfloat16).reshape(
        n_patches, PATCH_DIM).reshape(n_tok, MERGE * PATCH_DIM)

    in_specs = [
        pl.BlockSpec((VIS_TILE, MERGE * PATCH_DIM), lambda i: (i, 0)),
        _full_spec(kp["wpe"]), _full_spec(kp["bpe"]), _full_spec(kp["block_mean"]),
        _full_spec(kp["ln_g"]), _full_spec(kp["ln_b"]),
        _full_spec(kp["w1"]), _full_spec(kp["b1"]),
        _full_spec(kp["w2"]), _full_spec(kp["b2"]),
    ]
    return pl.pallas_call(
        _vision_projector_kernel,
        out_shape=jax.ShapeDtypeStruct((n_tok, TEXT_HIDDEN), jnp.float32),
        grid=(n_tok // VIS_TILE,),
        in_specs=in_specs,
        out_specs=pl.BlockSpec((VIS_TILE, TEXT_HIDDEN), lambda i: (i, 0)),
        compiler_params=pltpu.CompilerParams(
            dimension_semantics=("parallel",),
            vmem_limit_bytes=VMEM_LIMIT_BYTES),
    )(px, kp["wpe"], kp["bpe"], kp["block_mean"], kp["ln_g"], kp["ln_b"],
      kp["w1"], kp["b1"], kp["w2"], kp["b2"])


def _rope_tables(positions):
    # HF-style rotary tables; rotate-half sign folded into sin (wrapper-side).
    inv_freq = 1.0 / (ROPE_THETA ** (
        jnp.arange(0, HEAD_DIM, 2, dtype=jnp.float32) / HEAD_DIM))
    freqs = positions.astype(jnp.float32)[:, None] * inv_freq[None, :]
    emb = jnp.concatenate([freqs, freqs], axis=-1)             # (S, HEAD_DIM)
    sign = jnp.concatenate([-jnp.ones((HEAD_DIM // 2,), jnp.float32),
                            jnp.ones((HEAD_DIM // 2,), jnp.float32)])
    return jnp.cos(emb), jnp.sin(emb) * sign[None, :]


def decoder_layer(hidden, positions, kp):
    seq = hidden.shape[0]
    cos, sin_signed = _rope_tables(positions)

    in_specs = [
        pl.BlockSpec((SEQ_TILE, TEXT_HIDDEN), lambda i: (i, 0)),   # hidden (q tile)
        _full_spec(hidden),                                        # hidden (full K/V)
        pl.BlockSpec((SEQ_TILE, HEAD_DIM), lambda i: (i, 0)),      # cos (q rows)
        pl.BlockSpec((SEQ_TILE, HEAD_DIM), lambda i: (i, 0)),      # sin (q rows)
        _full_spec(cos), _full_spec(sin_signed),                   # cos/sin (full)
        _full_spec(kp["attn_norm_g"]), _full_spec(kp["wq"]),
        _full_spec(kp["wkv"]), _full_spec(kp["wo"]),
        _full_spec(kp["mlp_norm_g"]), _full_spec(kp["wgu"]),
        _full_spec(kp["wd"]), _full_spec(kp["final_norm_g"]),
    ]
    return pl.pallas_call(
        _decoder_layer_kernel,
        out_shape=jax.ShapeDtypeStruct((seq, TEXT_HIDDEN), jnp.float32),
        grid=(seq // SEQ_TILE,),
        in_specs=in_specs,
        out_specs=pl.BlockSpec((SEQ_TILE, TEXT_HIDDEN), lambda i: (i, 0)),
        compiler_params=pltpu.CompilerParams(
            dimension_semantics=("parallel",),
            vmem_limit_bytes=VMEM_LIMIT_BYTES),
    )(hidden, hidden, cos, sin_signed, cos, sin_signed,
      kp["attn_norm_g"], kp["wq"], kp["wkv"], kp["wo"],
      kp["mlp_norm_g"], kp["wgu"], kp["wd"], kp["final_norm_g"])


def kimi_vl_forward(input_ids, positions, pixel_values, image_grid_hws, kparams):
    # ---- vision tower (stand-in) + multi-modal projector (one gridded kernel) ----
    image_embeds = vision_and_projector(pixel_values, kparams["vision"])

    # ---- get_input_embeddings + merge_multimodal_embeddings (plain-JAX glue) ----
    text_embeds = jnp.take(kparams["embed_tokens"], input_ids, axis=0)
    is_img = input_ids == MEDIA_PLACEHOLDER_ID
    img_pos = jnp.cumsum(is_img.astype(jnp.int32)) - 1
    gathered = jnp.take(
        image_embeds, jnp.clip(img_pos, 0, image_embeds.shape[0] - 1), axis=0)
    inputs_embeds = jnp.where(is_img[:, None], gathered, text_embeds)

    # ---- language model (single simplified DeepseekV2-style layer, one kernel) ----
    return decoder_layer(inputs_embeds, positions, kparams["layer"])


# ------------------------------ parameter init --------------------------------
def init_params(key):
    ks = jax.random.split(key, 12)
    n = lambda k, shape, s=0.02: (s * jax.random.normal(k, shape)).astype(jnp.float32)
    return {
        "patch_w": n(ks[0], (PATCH_DIM, VISION_HIDDEN)),
        "patch_b": jnp.zeros((VISION_HIDDEN,), jnp.float32),
        "proj_ln_g": jnp.ones((VISION_HIDDEN,), jnp.float32),
        "proj_ln_b": jnp.zeros((VISION_HIDDEN,), jnp.float32),
        "proj_w1": n(ks[1], (PROJ_HIDDEN, PROJ_HIDDEN)),
        "proj_b1": jnp.zeros((PROJ_HIDDEN,), jnp.float32),
        "proj_w2": n(ks[2], (PROJ_HIDDEN, TEXT_HIDDEN)),
        "proj_b2": jnp.zeros((TEXT_HIDDEN,), jnp.float32),
        "embed_tokens": n(ks[3], (VOCAB, TEXT_HIDDEN)),
        "attn_norm_g": jnp.ones((TEXT_HIDDEN,), jnp.float32),
        "wq": n(ks[4], (TEXT_HIDDEN, TEXT_HIDDEN)),
        "wk": n(ks[5], (TEXT_HIDDEN, TEXT_HIDDEN)),
        "wv": n(ks[6], (TEXT_HIDDEN, TEXT_HIDDEN)),
        "wo": n(ks[7], (TEXT_HIDDEN, TEXT_HIDDEN)),
        "mlp_norm_g": jnp.ones((TEXT_HIDDEN,), jnp.float32),
        "wg": n(ks[8], (TEXT_HIDDEN, MLP_INTER)),
        "wu": n(ks[9], (TEXT_HIDDEN, MLP_INTER)),
        "wd": n(ks[10], (MLP_INTER, TEXT_HIDDEN)),
        "final_norm_g": jnp.ones((TEXT_HIDDEN,), jnp.float32),
    }


def pack_params(p):
    """One-time wrapper-side packing into the kernel-facing fused/bf16 layout."""
    bf16 = jnp.bfloat16

    # Block-diagonal patch-embed weight: 4 merged patches share the same (192,32)
    # projection -> kernel matmul is (tile, 768) @ (768, 128), lane-dense.
    # TODO(synk): at real vision hidden sizes (>=128) drop the block-diag form.
    wpe = jnp.zeros((MERGE * PATCH_DIM, PROJ_HIDDEN), jnp.float32)
    for j in range(MERGE):
        wpe = wpe.at[j * PATCH_DIM:(j + 1) * PATCH_DIM,
                     j * VISION_HIDDEN:(j + 1) * VISION_HIDDEN].set(p["patch_w"])

    # Single (128,128) block-mean matrix (= pool @ unpool folded, 0/1 broadcast).
    lane = jnp.arange(PROJ_HIDDEN)
    block_mean = ((lane[:, None] // VISION_HIDDEN) ==
                  (lane[None, :] // VISION_HIDDEN)).astype(jnp.float32) / VISION_HIDDEN

    scale = 1.0 / (HEAD_DIM ** 0.5)
    wq = p["wq"] * scale                                       # scale folded in
    wkv = jnp.concatenate([p["wk"], p["wv"]], axis=1)          # (256, 512)
    wgu = jnp.concatenate([p["wg"], p["wu"]], axis=1)          # (256, 1024)

    vision = {
        "wpe": wpe.astype(bf16),
        "bpe": jnp.tile(p["patch_b"], MERGE)[None, :],
        "block_mean": block_mean,
        "ln_g": jnp.tile(p["proj_ln_g"], MERGE)[None, :],
        "ln_b": jnp.tile(p["proj_ln_b"], MERGE)[None, :],
        "w1": p["proj_w1"].astype(bf16),
        "b1": p["proj_b1"][None, :],
        "w2": p["proj_w2"].astype(bf16),
        "b2": p["proj_b2"][None, :],
    }
    layer = {
        "attn_norm_g": p["attn_norm_g"][None, :],
        "wq": wq.astype(bf16),
        "wkv": wkv.astype(bf16),
        "wo": p["wo"].astype(bf16),
        "mlp_norm_g": p["mlp_norm_g"][None, :],
        "wgu": wgu.astype(bf16),
        "wd": p["wd"].astype(bf16),
        "final_norm_g": p["final_norm_g"][None, :],
    }
    return {"vision": vision, "layer": layer, "embed_tokens": p["embed_tokens"]}


# ------------------------------------ main -------------------------------------
if __name__ == "__main__":
    key = jax.random.PRNGKey(0)
    k_pix, k_par = jax.random.split(key)

    # one image: 8x8 grid of patches -> 64 patches -> (2x2 merge) -> 16 image tokens
    image_grid_hws = jnp.array([[8, 8]], dtype=jnp.int32)
    num_patches = 64
    pixel_values = jax.random.normal(
        k_pix, (num_patches, CHANNELS, PATCH, PATCH), dtype=jnp.float32)

    # sequence of 128 tokens containing exactly 16 media-placeholder tokens (id=7)
    seq_len = 128
    n_image_tokens = num_patches // MERGE                       # 16
    input_ids = 20 + (jnp.arange(seq_len, dtype=jnp.int32) % 100)  # never == 7
    input_ids = input_ids.at[8:8 + n_image_tokens].set(MEDIA_PLACEHOLDER_ID)
    positions = jnp.arange(seq_len, dtype=jnp.int32)

    kparams = pack_params(init_params(k_par))

    fwd = jax.jit(kimi_vl_forward)
    hidden_states = fwd(input_ids, positions, pixel_values, image_grid_hws,
                        kparams)
    hidden_states = jax.block_until_ready(hidden_states)
    assert hidden_states.shape == (seq_len, TEXT_HIDDEN)
    assert bool(jnp.all(jnp.isfinite(hidden_states)))
    print("KERNEL_OK")
</pallas_src>

<mosaic_0001>
module attributes {stable_mosaic.version = 11 : i64} {
  func.func @_vision_projector_kernel(%arg0: i32, %arg1: memref<8x768xbf16, #tpu.memory_space<vmem>>, %arg2: memref<768x128xbf16, #tpu.memory_space<vmem>>, %arg3: memref<1x128xf32, #tpu.memory_space<vmem>>, %arg4: memref<128x128xf32, #tpu.memory_space<vmem>>, %arg5: memref<1x128xf32, #tpu.memory_space<vmem>>, %arg6: memref<1x128xf32, #tpu.memory_space<vmem>>, %arg7: memref<128x128xbf16, #tpu.memory_space<vmem>>, %arg8: memref<1x128xf32, #tpu.memory_space<vmem>>, %arg9: memref<128x256xbf16, #tpu.memory_space<vmem>>, %arg10: memref<1x256xf32, #tpu.memory_space<vmem>>, %arg11: memref<8x256xf32, #tpu.memory_space<vmem>>) attributes {dimension_semantics = [#tpu.dimension_semantics<parallel>], iteration_bounds = array<i64: 2>, scalar_prefetch = 0 : i64, scratch_operands = 0 : i64, tpu.core_type = #tpu.core_type<tc>, window_params = [{transform_indices = @transform_0, window_bounds = array<i64: 8, 768>}, {pipeline_mode = #tpu.pipeline_mode<synchronous>, transform_indices = @transform_1, window_bounds = array<i64: 768, 128>}, {pipeline_mode = #tpu.pipeline_mode<synchronous>, transform_indices = @transform_2, window_bounds = array<i64: 1, 128>}, {pipeline_mode = #tpu.pipeline_mode<synchronous>, transform_indices = @transform_3, window_bounds = array<i64: 128, 128>}, {pipeline_mode = #tpu.pipeline_mode<synchronous>, transform_indices = @transform_4, window_bounds = array<i64: 1, 128>}, {pipeline_mode = #tpu.pipeline_mode<synchronous>, transform_indices = @transform_5, window_bounds = array<i64: 1, 128>}, {pipeline_mode = #tpu.pipeline_mode<synchronous>, transform_indices = @transform_6, window_bounds = array<i64: 128, 128>}, {pipeline_mode = #tpu.pipeline_mode<synchronous>, transform_indices = @transform_7, window_bounds = array<i64: 1, 128>}, {pipeline_mode = #tpu.pipeline_mode<synchronous>, transform_indices = @transform_8, window_bounds = array<i64: 128, 256>}, {pipeline_mode = #tpu.pipeline_mode<synchronous>, transform_indices = @transform_9, window_bounds = array<i64: 1, 256>}, {transform_indices = @transform_10, window_bounds = array<i64: 8, 256>}]} {
    %c0 = arith.constant 0 : index
    %c0_0 = arith.constant 0 : index
    %0 = vector.load %arg1[%c0, %c0_0] : memref<8x768xbf16, #tpu.memory_space<vmem>>, vector<8x768xbf16>
    %c0_1 = arith.constant 0 : index
    %c0_2 = arith.constant 0 : index
    %1 = vector.load %arg2[%c0_1, %c0_2] : memref<768x128xbf16, #tpu.memory_space<vmem>>, vector<768x128xbf16>
    %cst = arith.constant dense<0.000000e+00> : vector<8x128xf32>
    %2 = tpu.matmul %0, %1, %cst {dimension_numbers = #tpu.dot_dimension_numbers<[1], [0], [0], [1], [0, 0, 1, 1], [], []>} : vector<8x768xbf16>, vector<768x128xbf16>, vector<8x128xf32> -> vector<8x128xf32>
    %c0_3 = arith.constant 0 : index
    %c0_4 = arith.constant 0 : index
    %3 = vector.load %arg3[%c0_3, %c0_4] : memref<1x128xf32, #tpu.memory_space<vmem>>, vector<1x128xf32>
    %4 = vector.broadcast %3 : vector<1x128xf32> to vector<8x128xf32>
    %5 = arith.addf %2, %4 : vector<8x128xf32>
    %c0_5 = arith.constant 0 : index
    %c0_6 = arith.constant 0 : index
    %6 = vector.load %arg4[%c0_5, %c0_6] : memref<128x128xf32, #tpu.memory_space<vmem>>, vector<128x128xf32>
    %cst_7 = arith.constant dense<0.000000e+00> : vector<8x128xf32>
    %7 = tpu.matmul %5, %6, %cst_7 {dimension_numbers = #tpu.dot_dimension_numbers<[1], [0], [0], [1], [0, 0, 1, 1], [], []>} : vector<8x128xf32>, vector<128x128xf32>, vector<8x128xf32> -> vector<8x128xf32>
    %8 = arith.mulf %5, %5 : vector<8x128xf32>
    %c0_8 = arith.constant 0 : index
    %c0_9 = arith.constant 0 : index
    %9 = vector.load %arg4[%c0_8, %c0_9] : memref<128x128xf32, #tpu.memory_space<vmem>>, vector<128x128xf32>
    %cst_10 = arith.constant dense<0.000000e+00> : vector<8x128xf32>
    %10 = tpu.matmul %8, %9, %cst_10 {dimension_numbers = #tpu.dot_dimension_numbers<[1], [0], [0], [1], [0, 0, 1, 1], [], []>} : vector<8x128xf32>, vector<128x128xf32>, vector<8x128xf32> -> vector<8x128xf32>
    %11 = arith.mulf %7, %7 : vector<8x128xf32>
    %12 = arith.subf %10, %11 : vector<8x128xf32>
    %cst_11 = arith.constant 0.000000e+00 : f32
    %13 = vector.broadcast %cst_11 : f32 to vector<8x128xf32>
    %14 = arith.maximumf %12, %13 : vector<8x128xf32>
    %15 = arith.subf %5, %7 : vector<8x128xf32>
    %cst_12 = arith.constant 9.99999974E-6 : f32
    %16 = vector.broadcast %cst_12 : f32 to vector<8x128xf32>
    %17 = arith.addf %14, %16 : vector<8x128xf32>
    %18 = math.rsqrt %17 : vector<8x128xf32>
    %19 = arith.mulf %15, %18 : vector<8x128xf32>
    %c0_13 = arith.constant 0 : index
    %c0_14 = arith.constant 0 : index
    %20 = vector.load %arg5[%c0_13, %c0_14] : memref<1x128xf32, #tpu.memory_space<vmem>>, vector<1x128xf32>
    %21 = vector.broadcast %20 : vector<1x128xf32> to vector<8x128xf32>
    %22 = arith.mulf %19, %21 : vector<8x128xf32>
    %c0_15 = arith.constant 0 : index
    %c0_16 = arith.constant 0 : index
    %23 = vector.load %arg6[%c0_15, %c0_16] : memref<1x128xf32, #tpu.memory_space<vmem>>, vector<1x128xf32>
    %24 = vector.broadcast %23 : vector<1x128xf32> to vector<8x128xf32>
    %25 = arith.addf %22, %24 : vector<8x128xf32>
    %26 = arith.truncf %25 : vector<8x128xf32> to vector<8x128xbf16>
    %c0_17 = arith.constant 0 : index
    %c0_18 = arith.constant 0 : index
    %27 = vector.load %arg7[%c0_17, %c0_18] : memref<128x128xbf16, #tpu.memory_space<vmem>>, vector<128x128xbf16>
    %cst_19 = arith.constant dense<0.000000e+00> : vector<8x128xf32>
    %28 = tpu.matmul %26, %27, %cst_19 {dimension_numbers = #tpu.dot_dimension_numbers<[1], [0], [0], [1], [0, 0, 1, 1], [], []>} : vector<8x128xbf16>, vector<128x128xbf16>, vector<8x128xf32> -> vector<8x128xf32>
    %c0_20 = arith.constant 0 : index
    %c0_21 = arith.constant 0 : index
    %29 = vector.load %arg8[%c0_20, %c0_21] : memref<1x128xf32, #tpu.memory_space<vmem>>, vector<1x128xf32>
    %30 = vector.broadcast %29 : vector<1x128xf32> to vector<8x128xf32>
    %31 = arith.addf %28, %30 : vector<8x128xf32>
    %cst_22 = arith.constant 5.000000e-01 : f32
    %32 = vector.broadcast %cst_22 : f32 to vector<8x128xf32>
    %33 = arith.mulf %32, %31 : vector<8x128xf32>
    %cst_23 = arith.constant 0.707106769 : f32
    %34 = vector.broadcast %cst_23 : f32 to vector<8x128xf32>
    %35 = arith.mulf %31, %34 : vector<8x128xf32>
    %36 = math.erf %35 : vector<8x128xf32>
    %cst_24 = arith.constant 1.000000e+00 : f32
    %37 = vector.broadcast %cst_24 : f32 to vector<8x128xf32>
    %38 = arith.addf %37, %36 : vector<8x128xf32>
    %39 = arith.mulf %33, %38 : vector<8x128xf32>
    %40 = arith.truncf %39 : vector<8x128xf32> to vector<8x128xbf16>
    %c0_25 = arith.constant 0 : index
    %c0_26 = arith.constant 0 : index
    %41 = vector.load %arg9[%c0_25, %c0_26] : memref<128x256xbf16, #tpu.memory_space<vmem>>, vector<128x256xbf16>
    %cst_27 = arith.constant dense<0.000000e+00> : vector<8x256xf32>
    %42 = tpu.matmul %40, %41, %cst_27 {dimension_numbers = #tpu.dot_dimension_numbers<[1], [0], [0], [1], [0, 0, 1, 1], [], []>} : vector<8x128xbf16>, vector<128x256xbf16>, vector<8x256xf32> -> vector<8x256xf32>
    %c0_28 = arith.constant 0 : index
    %c0_29 = arith.constant 0 : index
    %43 = vector.load %arg10[%c0_28, %c0_29] : memref<1x256xf32, #tpu.memory_space<vmem>>, vector<1x256xf32>
    %44 = vector.broadcast %43 : vector<1x256xf32> to vector<8x256xf32>
    %45 = arith.addf %42, %44 : vector<8x256xf32>
    %c0_30 = arith.constant 0 : index
    %c0_31 = arith.constant 0 : index
    %46 = vector.load %arg11[%c0_30, %c0_31] : memref<8x256xf32, #tpu.memory_space<vmem>>, vector<8x256xf32>
    tpu.vector_store %arg11[%c0_30, %c0_31], %45 {strides = array<i32>} : memref<8x256xf32, #tpu.memory_space<vmem>>, vector<8x256xf32>,
    return
  }
  func.func @transform_0(%arg0: i32) -> (i32, i32) {
    %c0_i32 = arith.constant 0 : i32
    %c0_i32_0 = arith.constant 0 : i32
    return %arg0, %c0_i32 : i32, i32
  }
  func.func @transform_1(%arg0: i32) -> (i32, i32) {
    %c0_i32 = arith.constant 0 : i32
    %c0_i32_0 = arith.constant 0 : i32
    %c0_i32_1 = arith.constant 0 : i32
    return %c0_i32, %c0_i32_0 : i32, i32
  }
  func.func @transform_2(%arg0: i32) -> (i32, i32) {
    %c0_i32 = arith.constant 0 : i32
    %c0_i32_0 = arith.constant 0 : i32
    %c0_i32_1 = arith.constant 0 : i32
    return %c0_i32, %c0_i32_0 : i32, i32
  }
  func.func @transform_3(%arg0: i32) -> (i32, i32) {
    %c0_i32 = arith.constant 0 : i32
    %c0_i32_0 = arith.constant 0 : i32
    %c0_i32_1 = arith.constant 0 : i32
    return %c0_i32, %c0_i32_0 : i32, i32
  }
  func.func @transform_4(%arg0: i32) -> (i32, i32) {
    %c0_i32 = arith.constant 0 : i32
    %c0_i32_0 = arith.constant 0 : i32
    %c0_i32_1 = arith.constant 0 : i32
    return %c0_i32, %c0_i32_0 : i32, i32
  }
  func.func @transform_5(%arg0: i32) -> (i32, i32) {
    %c0_i32 = arith.constant 0 : i32
    %c0_i32_0 = arith.constant 0 : i32
    %c0_i32_1 = arith.constant 0 : i32
    return %c0_i32, %c0_i32_0 : i32, i32
  }
  func.func @transform_6(%arg0: i32) -> (i32, i32) {
    %c0_i32 = arith.constant 0 : i32
    %c0_i32_0 = arith.constant 0 : i32
    %c0_i32_1 = arith.constant 0 : i32
    return %c0_i32, %c0_i32_0 : i32, i32
  }
  func.func @transform_7(%arg0: i32) -> (i32, i32) {
    %c0_i32 = arith.constant 0 : i32
    %c0_i32_0 = arith.constant 0 : i32
    %c0_i32_1 = arith.constant 0 : i32
    return %c0_i32, %c0_i32_0 : i32, i32
  }
  func.func @transform_8(%arg0: i32) -> (i32, i32) {
    %c0_i32 = arith.constant 0 : i32
    %c0_i32_0 = arith.constant 0 : i32
    %c0_i32_1 = arith.constant 0 : i32
    return %c0_i32, %c0_i32_0 : i32, i32
  }
  func.func @transform_9(%arg0: i32) -> (i32, i32) {
    %c0_i32 = arith.constant 0 : i32
    %c0_i32_0 = arith.constant 0 : i32
    %c0_i32_1 = arith.constant 0 : i32
    return %c0_i32, %c0_i32_0 : i32, i32
  }
  func.func @transform_10(%arg0: i32) -> (i32, i32) {
    %c0_i32 = arith.constant 0 : i32
    %c0_i32_0 = arith.constant 0 : i32
    return %arg0, %c0_i32 : i32, i32
  }
}

module attributes {stable_mosaic.version = 11 : i64} {
  func.func @_decoder_layer_kernel(%arg0: i32, %arg1: memref<64x256xf32, #tpu.memory_space<vmem>>, %arg2: memref<128x256xf32, #tpu.memory_space<vmem>>, %arg3: memref<64x128xf32, #tpu.memory_space<vmem>>, %arg4: memref<64x128xf32, #tpu.memory_space<vmem>>, %arg5: memref<128x128xf32, #tpu.memory_space<vmem>>, %arg6: memref<128x128xf32, #tpu.memory_space<vmem>>, %arg7: memref<1x256xf32, #tpu.memory_space<vmem>>, %arg8: memref<256x256xbf16, #tpu.memory_space<vmem>>, %arg9: memref<256x512xbf16, #tpu.memory_space<vmem>>, %arg10: memref<256x256xbf16, #tpu.memory_space<vmem>>, %arg11: memref<1x256xf32, #tpu.memory_space<vmem>>, %arg12: memref<256x1024xbf16, #tpu.memory_space<vmem>>, %arg13: memref<512x256xbf16, #tpu.memory_space<vmem>>, %arg14: memref<1x256xf32, #tpu.memory_space<vmem>>, %arg15: memref<64x256xf32, #tpu.memory_space<vmem>>) attributes {dimension_semantics = [#tpu.dimension_semantics<parallel>], iteration_bounds = array<i64: 2>, scalar_prefetch = 0 : i64, scratch_operands = 0 : i64, tpu.core_type = #tpu.core_type<tc>, window_params = [{transform_indices = @transform_0, window_bounds = array<i64: 64, 256>}, {pipeline_mode = #tpu.pipeline_mode<synchronous>, transform_indices = @transform_1, window_bounds = array<i64: 128, 256>}, {transform_indices = @transform_2, window_bounds = array<i64: 64, 128>}, {transform_indices = @transform_3, window_bounds = array<i64: 64, 128>}, {pipeline_mode = #tpu.pipeline_mode<synchronous>, transform_indices = @transform_4, window_bounds = array<i64: 128, 128>}, {pipeline_mode = #tpu.pipeline_mode<synchronous>, transform_indices = @transform_5, window_bounds = array<i64: 128, 128>}, {pipeline_mode = #tpu.pipeline_mode<synchronous>, transform_indices = @transform_6, window_bounds = array<i64: 1, 256>}, {pipeline_mode = #tpu.pipeline_mode<synchronous>, transform_indices = @transform_7, window_bounds = array<i64: 256, 256>}, {pipeline_mode = #tpu.pipeline_mode<synchronous>, transform_indices = @transform_8, window_bounds = array<i64: 256, 512>}, {pipeline_mode = #tpu.pipeline_mode<synchronous>, transform_indices = @transform_9, window_bounds = array<i64: 256, 256>}, {pipeline_mode = #tpu.pipeline_mode<synchronous>, transform_indices = @transform_10, window_bounds = array<i64: 1, 256>}, {pipeline_mode = #tpu.pipeline_mode<synchronous>, transform_indices = @transform_11, window_bounds = array<i64: 256, 1024>}, {pipeline_mode = #tpu.pipeline_mode<synchronous>, transform_indices = @transform_12, window_bounds = array<i64: 512, 256>}, {pipeline_mode = #tpu.pipeline_mode<synchronous>, transform_indices = @transform_13, window_bounds = array<i64: 1, 256>}, {transform_indices = @transform_14, window_bounds = array<i64: 64, 256>}]} {
    %c64_i32 = arith.constant 64 : i32
    %0 = arith.muli %arg0, %c64_i32 : i32
    %c0 = arith.constant 0 : index
    %c0_0 = arith.constant 0 : index
    %1 = vector.load %arg1[%c0, %c0_0] : memref<64x256xf32, #tpu.memory_space<vmem>>, vector<64x256xf32>
    %c0_1 = arith.constant 0 : index
    %c0_2 = arith.constant 0 : index
    %2 = vector.load %arg7[%c0_1, %c0_2] : memref<1x256xf32, #tpu.memory_space<vmem>>, vector<1x256xf32>
    %3 = arith.mulf %1, %1 : vector<64x256xf32>
    %cst = arith.constant dense<0.000000e+00> : vector<64xf32>
    %4 = vector.multi_reduction <add>, %3, %cst [1] : vector<64x256xf32> to vector<64xf32>
    %5 = vector.shape_cast %4 : vector<64xf32> to vector<64x1xf32>
    %cst_3 = arith.constant 2.560000e+02 : f32
    %6 = vector.broadcast %cst_3 : f32 to vector<64x1xf32>
    %7 = arith.divf %5, %6 : vector<64x1xf32>
    %cst_4 = arith.constant 9.99999997E-7 : f32
    %8 = vector.broadcast %cst_4 : f32 to vector<64x1xf32>
    %9 = arith.addf %7, %8 : vector<64x1xf32>
    %10 = math.rsqrt %9 : vector<64x1xf32>
    %11 = vector.broadcast %10 : vector<64x1xf32> to vector<64x256xf32>
    %12 = arith.mulf %1, %11 : vector<64x256xf32>
    %13 = vector.broadcast %2 : vector<1x256xf32> to vector<64x256xf32>
    %14 = arith.mulf %12, %13 : vector<64x256xf32>
    %15 = arith.truncf %14 : vector<64x256xf32> to vector<64x256xbf16>
    %c0_5 = arith.constant 0 : index
    %c0_6 = arith.constant 0 : index
    %16 = vector.load %arg2[%c0_5, %c0_6] : memref<128x256xf32, #tpu.memory_space<vmem>>, vector<128x256xf32>
    %c0_7 = arith.constant 0 : index
    %c0_8 = arith.constant 0 : index
    %17 = vector.load %arg7[%c0_7, %c0_8] : memref<1x256xf32, #tpu.memory_space<vmem>>, vector<1x256xf32>
    %18 = arith.mulf %16, %16 : vector<128x256xf32>
    %cst_9 = arith.constant dense<0.000000e+00> : vector<128xf32>
    %19 = vector.multi_reduction <add>, %18, %cst_9 [1] : vector<128x256xf32> to vector<128xf32>
    %20 = vector.shape_cast %19 : vector<128xf32> to vector<128x1xf32>
    %cst_10 = arith.constant 2.560000e+02 : f32
    %21 = vector.broadcast %cst_10 : f32 to vector<128x1xf32>
    %22 = arith.divf %20, %21 : vector<128x1xf32>
    %cst_11 = arith.constant 9.99999997E-7 : f32
    %23 = vector.broadcast %cst_11 : f32 to vector<128x1xf32>
    %24 = arith.addf %22, %23 : vector<128x1xf32>
    %25 = math.rsqrt %24 : vector<128x1xf32>
    %26 = vector.broadcast %25 : vector<128x1xf32> to vector<128x256xf32>
    %27 = arith.mulf %16, %26 : vector<128x256xf32>
    %28 = vector.broadcast %17 : vector<1x256xf32> to vector<128x256xf32>
    %29 = arith.mulf %27, %28 : vector<128x256xf32>
    %30 = arith.truncf %29 : vector<128x256xf32> to vector<128x256xbf16>
    %c0_12 = arith.constant 0 : index
    %c0_13 = arith.constant 0 : index
    %31 = vector.load %arg8[%c0_12, %c0_13] : memref<256x256xbf16, #tpu.memory_space<vmem>>, vector<256x256xbf16>
    %cst_14 = arith.constant dense<0.000000e+00> : vector<64x256xf32>
    %32 = tpu.matmul %15, %31, %cst_14 {dimension_numbers = #tpu.dot_dimension_numbers<[1], [0], [0], [1], [0, 0, 1, 1], [], []>} : vector<64x256xbf16>, vector<256x256xbf16>, vector<64x256xf32> -> vector<64x256xf32>
    %c0_15 = arith.constant 0 : index
    %c0_16 = arith.constant 0 : index
    %33 = vector.load %arg9[%c0_15, %c0_16] : memref<256x512xbf16, #tpu.memory_space<vmem>>, vector<256x512xbf16>
    %cst_17 = arith.constant dense<0.000000e+00> : vector<128x512xf32>
    %34 = tpu.matmul %30, %33, %cst_17 {dimension_numbers = #tpu.dot_dimension_numbers<[1], [0], [0], [1], [0, 0, 1, 1], [], []>} : vector<128x256xbf16>, vector<256x512xbf16>, vector<128x512xf32> -> vector<128x512xf32>
    %35 = tpu.iota {dimensions = array<i32: 0>} : vector<64x128xi32>
    %36 = vector.broadcast %0 : i32 to vector<64x128xi32>
    %37 = arith.addi %36, %35 : vector<64x128xi32>
    %38 = tpu.iota {dimensions = array<i32: 1>} : vector<64x128xi32>
    %39 = arith.cmpi sle, %38, %37 : vector<64x128xi32>
    %40 = vector.extract_strided_slice %32 {offsets = [0, 0], sizes = [64, 128], strides = [1, 1]} : vector<64x256xf32> to vector<64x128xf32>
    %c0_18 = arith.constant 0 : index
    %c0_19 = arith.constant 0 : index
    %41 = vector.load %arg3[%c0_18, %c0_19] : memref<64x128xf32, #tpu.memory_space<vmem>>, vector<64x128xf32>
    %c0_20 = arith.constant 0 : index
    %c0_21 = arith.constant 0 : index
    %42 = vector.load %arg4[%c0_20, %c0_21] : memref<64x128xf32, #tpu.memory_space<vmem>>, vector<64x128xf32>
    %43 = arith.mulf %40, %41 : vector<64x128xf32>
    %c64_i32_22 = arith.constant 64 : i32
    %44 = tpu.dynamic_rotate %40 by %c64_i32_22 dim 1 : vector<64x128xf32>, i32 -> vector<64x128xf32>
    %45 = arith.mulf %44, %42 : vector<64x128xf32>
    %46 = arith.addf %43, %45 : vector<64x128xf32>
    %47 = arith.truncf %46 : vector<64x128xf32> to vector<64x128xbf16>
    %48 = vector.extract_strided_slice %34 {offsets = [0, 0], sizes = [128, 128], strides = [1, 1]} : vector<128x512xf32> to vector<128x128xf32>
    %c0_23 = arith.constant 0 : index
    %c0_24 = arith.constant 0 : index
    %49 = vector.load %arg5[%c0_23, %c0_24] : memref<128x128xf32, #tpu.memory_space<vmem>>, vector<128x128xf32>
    %c0_25 = arith.constant 0 : index
    %c0_26 = arith.constant 0 : index
    %50 = vector.load %arg6[%c0_25, %c0_26] : memref<128x128xf32, #tpu.memory_space<vmem>>, vector<128x128xf32>
    %51 = arith.mulf %48, %49 : vector<128x128xf32>
    %c64_i32_27 = arith.constant 64 : i32
    %52 = tpu.dynamic_rotate %48 by %c64_i32_27 dim 1 : vector<128x128xf32>, i32 -> vector<128x128xf32>
    %53 = arith.mulf %52, %50 : vector<128x128xf32>
    %54 = arith.addf %51, %53 : vector<128x128xf32>
    %55 = arith.truncf %54 : vector<128x128xf32> to vector<128x128xbf16>
    %56 = vector.extract_strided_slice %34 {offsets = [0, 256], sizes = [128, 128], strides = [1, 1]} : vector<128x512xf32> to vector<128x128xf32>
    %57 = arith.truncf %56 : vector<128x128xf32> to vector<128x128xbf16>
    "tpu.trace_start"() <{level = 10 : i32, message = "qd,kd->qk"}> : () -> ()
    %cst_28 = arith.constant dense<0.000000e+00> : vector<64x128xf32>
    %58 = tpu.matmul %47, %55, %cst_28 {dimension_numbers = #tpu.dot_dimension_numbers<[1], [1], [0], [0], [0, 0, 1, 0], [], []>} : vector<64x128xbf16>, vector<128x128xbf16>, vector<64x128xf32> -> vector<64x128xf32>
    %cst_29 = arith.constant -1.000000e+30 : f32
    "tpu.trace_stop"() : () -> ()
    %59 = vector.broadcast %cst_29 : f32 to vector<64x128xf32>
    %60 = arith.select %39, %58, %59 : vector<64x128xi1>, vector<64x128xf32>
    %cst_30 = arith.constant dense<0xFF800000> : vector<64xf32>
    %61 = vector.multi_reduction <maximumf>, %60, %cst_30 [1] : vector<64x128xf32> to vector<64xf32>
    %62 = vector.shape_cast %61 : vector<64xf32> to vector<64x1xf32>
    %63 = vector.broadcast %62 : vector<64x1xf32> to vector<64x128xf32>
    %64 = arith.subf %60, %63 : vector<64x128xf32>
    %65 = math.exp %64 : vector<64x128xf32>
    %cst_31 = arith.constant dense<0.000000e+00> : vector<64xf32>
    %66 = vector.multi_reduction <add>, %65, %cst_31 [1] : vector<64x128xf32> to vector<64xf32>
    %67 = vector.shape_cast %66 : vector<64xf32> to vector<64x1xf32>
    %68 = tpu.reciprocal %67 {approx = true} : vector<64x1xf32> -> vector<64x1xf32>
    %69 = vector.broadcast %68 : vector<64x1xf32> to vector<64x128xf32>
    %70 = arith.mulf %65, %69 : vector<64x128xf32>
    %71 = arith.truncf %70 : vector<64x128xf32> to vector<64x128xbf16>
    %cst_32 = arith.constant dense<0.000000e+00> : vector<64x128xf32>
    %72 = tpu.matmul %71, %57, %cst_32 {dimension_numbers = #tpu.dot_dimension_numbers<[1], [0], [0], [1], [0, 0, 1, 1], [], []>} : vector<64x128xbf16>, vector<128x128xbf16>, vector<64x128xf32> -> vector<64x128xf32>
    %73 = vector.extract_strided_slice %32 {offsets = [0, 128], sizes = [64, 128], strides = [1, 1]} : vector<64x256xf32> to vector<64x128xf32>
    %c0_33 = arith.constant 0 : index
    %c0_34 = arith.constant 0 : index
    %74 = vector.load %arg3[%c0_33, %c0_34] : memref<64x128xf32, #tpu.memory_space<vmem>>, vector<64x128xf32>
    %c0_35 = arith.constant 0 : index
    %c0_36 = arith.constant 0 : index
    %75 = vector.load %arg4[%c0_35, %c0_36] : memref<64x128xf32, #tpu.memory_space<vmem>>, vector<64x128xf32>
    %76 = arith.mulf %73, %74 : vector<64x128xf32>
    %c64_i32_37 = arith.constant 64 : i32
    %77 = tpu.dynamic_rotate %73 by %c64_i32_37 dim 1 : vector<64x128xf32>, i32 -> vector<64x128xf32>
    %78 = arith.mulf %77, %75 : vector<64x128xf32>
    %79 = arith.addf %76, %78 : vector<64x128xf32>
    %80 = arith.truncf %79 : vector<64x128xf32> to vector<64x128xbf16>
    %81 = vector.extract_strided_slice %34 {offsets = [0, 128], sizes = [128, 128], strides = [1, 1]} : vector<128x512xf32> to vector<128x128xf32>
    %c0_38 = arith.constant 0 : index
    %c0_39 = arith.constant 0 : index
    %82 = vector.load %arg5[%c0_38, %c0_39] : memref<128x128xf32, #tpu.memory_space<vmem>>, vector<128x128xf32>
    %c0_40 = arith.constant 0 : index
    %c0_41 = arith.constant 0 : index
    %83 = vector.load %arg6[%c0_40, %c0_41] : memref<128x128xf32, #tpu.memory_space<vmem>>, vector<128x128xf32>
    %84 = arith.mulf %81, %82 : vector<128x128xf32>
    %c64_i32_42 = arith.constant 64 : i32
    %85 = tpu.dynamic_rotate %81 by %c64_i32_42 dim 1 : vector<128x128xf32>, i32 -> vector<128x128xf32>
    %86 = arith.mulf %85, %83 : vector<128x128xf32>
    %87 = arith.addf %84, %86 : vector<128x128xf32>
    %88 = arith.truncf %87 : vector<128x128xf32> to vector<128x128xbf16>
    %89 = vector.extract_strided_slice %34 {offsets = [0, 384], sizes = [128, 128], strides = [1, 1]} : vector<128x512xf32> to vector<128x128xf32>
    %90 = arith.truncf %89 : vector<128x128xf32> to vector<128x128xbf16>
    "tpu.trace_start"() <{level = 10 : i32, message = "qd,kd->qk"}> : () -> ()
    %cst_43 = arith.constant dense<0.000000e+00> : vector<64x128xf32>
    %91 = tpu.matmul %80, %88, %cst_43 {dimension_numbers = #tpu.dot_dimension_numbers<[1], [1], [0], [0], [0, 0, 1, 0], [], []>} : vector<64x128xbf16>, vector<128x128xbf16>, vector<64x128xf32> -> vector<64x128xf32>
    %cst_44 = arith.constant -1.000000e+30 : f32
    "tpu.trace_stop"() : () -> ()
    %92 = vector.broadcast %cst_44 : f32 to vector<64x128xf32>
    %93 = arith.select %39, %91, %92 : vector<64x128xi1>, vector<64x128xf32>
    %cst_45 = arith.constant dense<0xFF800000> : vector<64xf32>
    %94 = vector.multi_reduction <maximumf>, %93, %cst_45 [1] : vector<64x128xf32> to vector<64xf32>
    %95 = vector.shape_cast %94 : vector<64xf32> to vector<64x1xf32>
    %96 = vector.broadcast %95 : vector<64x1xf32> to vector<64x128xf32>
    %97 = arith.subf %93, %96 : vector<64x128xf32>
    %98 = math.exp %97 : vector<64x128xf32>
    %cst_46 = arith.constant dense<0.000000e+00> : vector<64xf32>
    %99 = vector.multi_reduction <add>, %98, %cst_46 [1] : vector<64x128xf32> to vector<64xf32>
    %100 = vector.shape_cast %99 : vector<64xf32> to vector<64x1xf32>
    %101 = tpu.reciprocal %100 {approx = true} : vector<64x1xf32> -> vector<64x1xf32>
    %102 = vector.broadcast %101 : vector<64x1xf32> to vector<64x128xf32>
    %103 = arith.mulf %98, %102 : vector<64x128xf32>
    %104 = arith.truncf %103 : vector<64x128xf32> to vector<64x128xbf16>
    %cst_47 = arith.constant dense<0.000000e+00> : vector<64x128xf32>
    %105 = tpu.matmul %104, %90, %cst_47 {dimension_numbers = #tpu.dot_dimension_numbers<[1], [0], [0], [1], [0, 0, 1, 1], [], []>} : vector<64x128xbf16>, vector<128x128xbf16>, vector<64x128xf32> -> vector<64x128xf32>
    %106 = tpu.concatenate %72, %105 in 1 : vector<64x128xf32>, vector<64x128xf32> -> vector<64x256xf32>
    %107 = arith.truncf %106 : vector<64x256xf32> to vector<64x256xbf16>
    %c0_48 = arith.constant 0 : index
    %c0_49 = arith.constant 0 : index
    %108 = vector.load %arg10[%c0_48, %c0_49] : memref<256x256xbf16, #tpu.memory_space<vmem>>, vector<256x256xbf16>
    %cst_50 = arith.constant dense<0.000000e+00> : vector<64x256xf32>
    %109 = tpu.matmul %107, %108, %cst_50 {dimension_numbers = #tpu.dot_dimension_numbers<[1], [0], [0], [1], [0, 0, 1, 1], [], []>} : vector<64x256xbf16>, vector<256x256xbf16>, vector<64x256xf32> -> vector<64x256xf32>
    %110 = arith.addf %1, %109 : vector<64x256xf32>
    %c0_51 = arith.constant 0 : index
    %c0_52 = arith.constant 0 : index
    %111 = vector.load %arg11[%c0_51, %c0_52] : memref<1x256xf32, #tpu.memory_space<vmem>>, vector<1x256xf32>
    %112 = arith.mulf %110, %110 : vector<64x256xf32>
    %cst_53 = arith.constant dense<0.000000e+00> : vector<64xf32>
    %113 = vector.multi_reduction <add>, %112, %cst_53 [1] : vector<64x256xf32> to vector<64xf32>
    %114 = vector.shape_cast %113 : vector<64xf32> to vector<64x1xf32>
    %cst_54 = arith.constant 2.560000e+02 : f32
    %115 = vector.broadcast %cst_54 : f32 to vector<64x1xf32>
    %116 = arith.divf %114, %115 : vector<64x1xf32>
    %cst_55 = arith.constant 9.99999997E-7 : f32
    %117 = vector.broadcast %cst_55 : f32 to vector<64x1xf32>
    %118 = arith.addf %116, %117 : vector<64x1xf32>
    %119 = math.rsqrt %118 : vector<64x1xf32>
    %120 = vector.broadcast %119 : vector<64x1xf32> to vector<64x256xf32>
    %121 = arith.mulf %110, %120 : vector<64x256xf32>
    %122 = vector.broadcast %111 : vector<1x256xf32> to vector<64x256xf32>
    %123 = arith.mulf %121, %122 : vector<64x256xf32>
    %124 = arith.truncf %123 : vector<64x256xf32> to vector<64x256xbf16>
    %c0_56 = arith.constant 0 : index
    %c0_57 = arith.constant 0 : index
    %125 = vector.load %arg12[%c0_56, %c0_57] : memref<256x1024xbf16, #tpu.memory_space<vmem>>, vector<256x1024xbf16>
    %cst_58 = arith.constant dense<0.000000e+00> : vector<64x1024xf32>
    %126 = tpu.matmul %124, %125, %cst_58 {dimension_numbers = #tpu.dot_dimension_numbers<[1], [0], [0], [1], [0, 0, 1, 1], [], []>} : vector<64x256xbf16>, vector<256x1024xbf16>, vector<64x1024xf32> -> vector<64x1024xf32>
    %127 = vector.extract_strided_slice %126 {offsets = [0, 0], sizes = [64, 512], strides = [1, 1]} : vector<64x1024xf32> to vector<64x512xf32>
    %128 = vector.extract_strided_slice %126 {offsets = [0, 512], sizes = [64, 512], strides = [1, 1]} : vector<64x1024xf32> to vector<64x512xf32>
    %129 = arith.negf %127 : vector<64x512xf32>
    %130 = math.exp %129 : vector<64x512xf32>
    %cst_59 = arith.constant 1.000000e+00 : f32
    %131 = vector.broadcast %cst_59 : f32 to vector<64x512xf32>
    %132 = arith.addf %131, %130 : vector<64x512xf32>
    %133 = arith.divf %131, %132 : vector<64x512xf32>
    %134 = arith.mulf %127, %133 : vector<64x512xf32>
    %135 = arith.mulf %134, %128 : vector<64x512xf32>
    %136 = arith.truncf %135 : vector<64x512xf32> to vector<64x512xbf16>
    %c0_60 = arith.constant 0 : index
    %c0_61 = arith.constant 0 : index
    %137 = vector.load %arg13[%c0_60, %c0_61] : memref<512x256xbf16, #tpu.memory_space<vmem>>, vector<512x256xbf16>
    %cst_62 = arith.constant dense<0.000000e+00> : vector<64x256xf32>
    %138 = tpu.matmul %136, %137, %cst_62 {dimension_numbers = #tpu.dot_dimension_numbers<[1], [0], [0], [1], [0, 0, 1, 1], [], []>} : vector<64x512xbf16>, vector<512x256xbf16>, vector<64x256xf32> -> vector<64x256xf32>
    %139 = arith.addf %110, %138 : vector<64x256xf32>
    %c0_63 = arith.constant 0 : index
    %c0_64 = arith.constant 0 : index
    %140 = vector.load %arg14[%c0_63, %c0_64] : memref<1x256xf32, #tpu.memory_space<vmem>>, vector<1x256xf32>
    %141 = arith.mulf %139, %139 : vector<64x256xf32>
    %cst_65 = arith.constant dense<0.000000e+00> : vector<64xf32>
    %142 = vector.multi_reduction <add>, %141, %cst_65 [1] : vector<64x256xf32> to vector<64xf32>
    %143 = vector.shape_cast %142 : vector<64xf32> to vector<64x1xf32>
    %cst_66 = arith.constant 2.560000e+02 : f32
    %144 = vector.broadcast %cst_66 : f32 to vector<64x1xf32>
    %145 = arith.divf %143, %144 : vector<64x1xf32>
    %cst_67 = arith.constant 9.99999997E-7 : f32
    %146 = vector.broadcast %cst_67 : f32 to vector<64x1xf32>
    %147 = arith.addf %145, %146 : vector<64x1xf32>
    %148 = math.rsqrt %147 : vector<64x1xf32>
    %149 = vector.broadcast %148 : vector<64x1xf32> to vector<64x256xf32>
    %150 = arith.mulf %139, %149 : vector<64x256xf32>
    %151 = vector.broadcast %140 : vector<1x256xf32> to vector<64x256xf32>
    %152 = arith.mulf %150, %151 : vector<64x256xf32>
    %c0_68 = arith.constant 0 : index
    %c0_69 = arith.constant 0 : index
    %153 = vector.load %arg15[%c0_68, %c0_69] : memref<64x256xf32, #tpu.memory_space<vmem>>, vector<64x256xf32>
    tpu.vector_store %arg15[%c0_68, %c0_69], %152 {strides = array<i32>} : memref<64x256xf32, #tpu.memory_space<vmem>>, vector<64x256xf32>,
    return
  }
  func.func @transform_0(%arg0: i32) -> (i32, i32) {
    %c0_i32 = arith.constant 0 : i32
    %c0_i32_0 = arith.constant 0 : i32
    return %arg0, %c0_i32 : i32, i32
  }
  func.func @transform_1(%arg0: i32) -> (i32, i32) {
    %c0_i32 = arith.constant 0 : i32
    %c0_i32_0 = arith.constant 0 : i32
    %c0_i32_1 = arith.constant 0 : i32
    return %c0_i32, %c0_i32_0 : i32, i32
  }
  func.func @transform_2(%arg0: i32) -> (i32, i32) {
    %c0_i32 = arith.constant 0 : i32
    %c0_i32_0 = arith.constant 0 : i32
    return %arg0, %c0_i32 : i32, i32
  }
  func.func @transform_3(%arg0: i32) -> (i32, i32) {
    %c0_i32 = arith.constant 0 : i32
    %c0_i32_0 = arith.constant 0 : i32
    return %arg0, %c0_i32 : i32, i32
  }
  func.func @transform_4(%arg0: i32) -> (i32, i32) {
    %c0_i32 = arith.constant 0 : i32
    %c0_i32_0 = arith.constant 0 : i32
    %c0_i32_1 = arith.constant 0 : i32
    return %c0_i32, %c0_i32_0 : i32, i32
  }
  func.func @transform_5(%arg0: i32) -> (i32, i32) {
    %c0_i32 = arith.constant 0 : i32
    %c0_i32_0 = arith.constant 0 : i32
    %c0_i32_1 = arith.constant 0 : i32
    return %c0_i32, %c0_i32_0 : i32, i32
  }
  func.func @transform_6(%arg0: i32) -> (i32, i32) {
    %c0_i32 = arith.constant 0 : i32
    %c0_i32_0 = arith.constant 0 : i32
    %c0_i32_1 = arith.constant 0 : i32
    return %c0_i32, %c0_i32_0 : i32, i32
  }
  func.func @transform_7(%arg0: i32) -> (i32, i32) {
    %c0_i32 = arith.constant 0 : i32
    %c0_i32_0 = arith.constant 0 : i32
    %c0_i32_1 = arith.constant 0 : i32
    return %c0_i32, %c0_i32_0 : i32, i32
  }
  func.func @transform_8(%arg0: i32) -> (i32, i32) {
    %c0_i32 = arith.constant 0 : i32
    %c0_i32_0 = arith.constant 0 : i32
    %c0_i32_1 = arith.constant 0 : i32
    return %c0_i32, %c0_i32_0 : i32, i32
  }
  func.func @transform_9(%arg0: i32) -> (i32, i32) {
    %c0_i32 = arith.constant 0 : i32
    %c0_i32_0 = arith.constant 0 : i32
    %c0_i32_1 = arith.constant 0 : i32
    return %c0_i32, %c0_i32_0 : i32, i32
  }
  func.func @transform_10(%arg0: i32) -> (i32, i32) {
    %c0_i32 = arith.constant 0 : i32
    %c0_i32_0 = arith.constant 0 : i32
    %c0_i32_1 = arith.constant 0 : i32
    return %c0_i32, %c0_i32_0 : i32, i32
  }
  func.func @transform_11(%arg0: i32) -> (i32, i32) {
    %c0_i32 = arith.constant 0 : i32
    %c0_i32_0 = arith.constant 0 : i32
    %c0_i32_1 = arith.constant 0 : i32
    return %c0_i32, %c0_i32_0 : i32, i32
  }
  func.func @transform_12(%arg0: i32) -> (i32, i32) {
    %c0_i32 = arith.constant 0 : i32
    %c0_i32_0 = arith.constant 0 : i32
    %c0_i32_1 = arith.constant 0 : i32
    return %c0_i32, %c0_i32_0 : i32, i32
  }
  func.func @transform_13(%arg0: i32) -> (i32, i32) {
    %c0_i32 = arith.constant 0 : i32
    %c0_i32_0 = arith.constant 0 : i32
    %c0_i32_1 = arith.constant 0 : i32
    return %c0_i32, %c0_i32_0 : i32, i32
  }
  func.func @transform_14(%arg0: i32) -> (i32, i32) {
    %c0_i32 = arith.constant 0 : i32
    %c0_i32_0 = arith.constant 0 : i32
    return %arg0, %c0_i32 : i32, i32
  }
}

</mosaic_0001>

<bundles_post_ra>
// kernel: kimi_vl_forward.2
= control target key start
LH: loop header
LB: loop body
LE: loop exit
PB: predicated region body
PF: predicated region fallthrough
CT: control target
= control target key end

     0   :  { %s1910_s13 = smov 0   ;;  %s2222_s0 = inlined_call_operand.vmem [shape: bf16[16,768], index: 0, kind: input, shape index: {}]   ;;  %s2223_s1 = inlined_call_operand.vmem [shape: bf16[768,128], index: 1, kind: input, shape index: {}]   ;;  %s2224_s2 = inlined_call_operand.vmem [shape: f32[1,128], index: 2, kind: input, shape index: {}]   ;;  %s2225_s3 = inlined_call_operand.vmem [shape: f32[128,128], index: 3, kind: input, shape index: {}]   ;;  %s2226_s4 = inlined_call_operand.vmem [shape: f32[1,128], index: 4, kind: input, shape index: {}]   ;;  %s2227_s5 = inlined_call_operand.vmem [shape: f32[1,128], index: 5, kind: input, shape index: {}]   ;;  %s2228_s6 = inlined_call_operand.vmem [shape: bf16[128,128], index: 6, kind: input, shape index: {}]   ;;  %s2229_s7 = inlined_call_operand.vmem [shape: f32[1,128], index: 7, kind: input, shape index: {}]   ;;  %s2230_s8 = inlined_call_operand.vmem [shape: bf16[128,256], index: 8, kind: input, shape index: {}]   ;;  %s2231_s9 = inlined_call_operand.vmem [shape: f32[1,256], index: 9, kind: input, shape index: {}]   ;;  %s2232_s10 = inlined_call_operand.vmem [shape: f32[16,256], index: 10, kind: output, shape index: {}]  }
   0x1 LB: > { %s1400_s14 = sadd.s32 4294967295, %s1849_s13   ;;  %p1404_p0 = scmp.ge.s32.totalorder %s1849_s13, 1  ;;  %s1849_s13 = sphi %s1910_s13, %s20_s13  }
   0x2   : > { %p312_p1 = scmp.lt.s32.totalorder %s1849_s13, 3 }
   0x4   : > { %p313_p2 = pnand %p1404_p0, %p312_p1 }
   0x5   : > { %v1753_v0 = vld [vmem:[%s2223_s1 + $0x40] sm:$0xff] (!%p313_p2)   ;;  %v1757_v4 = vld [vmem:[%s2223_s1 + $0x48] sm:$0xff] (!%p313_p2)   ;;  %v1761_v8 = vld [vmem:[%s2223_s1 + $0x50] sm:$0xff] (!%p313_p2)   ;;  %p350_p3 = scmp.lt.s32.totalorder (!%p313_p2), %s1400_s14, 1  ;;  %v1851_v60 = vmov (!%p313_p2), 0.0|0.0   ;;  %vm1852_vm0 = vmmov (!%p313_p2), 0  }
   0x6   : > { %316 = sbr.rel (%p313_p2) target bundleno = 975 (0x3cf), region = 60  ;;  %v1754_v1 = vld [vmem:[%s2223_s1] sm:$0xff] (!%p313_p2)   ;;  %1493 = vmatprep.subr.bf16.mxu0 (!%p313_p2), %v1753_v0  ;;  %v1758_v5 = vld [vmem:[%s2223_s1 + $0x8] sm:$0xff] (!%p313_p2)   ;;  %v1762_v9 = vld [vmem:[%s2223_s1 + $0x10] sm:$0xff] (!%p313_p2)  }
   0x7   : > { %v1755_v2 = vld [vmem:[%s2223_s1 + $0xc0] sm:$0xff] (!%p313_p2)   ;;  %1494 = vmatpush3.bf16.msra.mxu0 (!%p313_p2), %v1754_v1  ;;  %v1759_v6 = vld [vmem:[%s2223_s1 + $0xc8] sm:$0xff] (!%p313_p2)   ;;  %v1763_v10 = vld [vmem:[%s2223_s1 + $0xd0] sm:$0xff] (!%p313_p2)  }
   0x8   : > { %v1756_v3 = vld [vmem:[%s2223_s1 + $0x80] sm:$0xff] (!%p313_p2)   ;;  %1515 = vmatprep.subr.bf16.mxu1 (!%p313_p2), %v1755_v2  ;;  %1495 = vmatprep.subr.bf16.mxu0 (!%p313_p2), %v1757_v4  ;;  %v1760_v7 = vld [vmem:[%s2223_s1 + $0x88] sm:$0xff] (!%p313_p2)   ;;  %v1764_v11 = vld [vmem:[%s2223_s1 + $0x90] sm:$0xff] (!%p313_p2)  }
   0x9   : > { %1516 = vmatpush3.bf16.msra.mxu1 (!%p313_p2), %v1756_v3  ;;  %v1765_v12 = vld [vmem:[%s2223_s1 + $0x58] sm:$0xff] (!%p313_p2)   ;;  %v1769_v16 = vld [vmem:[%s2223_s1 + $0x60] sm:$0xff] (!%p313_p2)   ;;  %v1773_v20 = vld [vmem:[%s2223_s1 + $0x68] sm:$0xff] (!%p313_p2)  }
   0xa   : > { %1517 = vmatprep.subr.bf16.mxu1 (!%p313_p2), %v1759_v6  ;;  %v1766_v13 = vld [vmem:[%s2223_s1 + $0x18] sm:$0xff] (!%p313_p2)   ;;  %v1770_v17 = vld [vmem:[%s2223_s1 + $0x20] sm:$0xff] (!%p313_p2)   ;;  %v1774_v21 = vld [vmem:[%s2223_s1 + $0x28] sm:$0xff] (!%p313_p2)  }
   0xb   : > { %1496 = vmatpush3.bf16.msra.mxu0 (!%p313_p2), %v1758_v5  ;;  %v1767_v14 = vld [vmem:[%s2223_s1 + $0xd8] sm:$0xff] (!%p313_p2)   ;;  %v1771_v18 = vld [vmem:[%s2223_s1 + $0xe0] sm:$0xff] (!%p313_p2)   ;;  %v1775_v22 = vld [vmem:[%s2223_s1 + $0xe8] sm:$0xff] (!%p313_p2)  }
   0xc   : > { %1497 = vmatprep.subr.bf16.mxu0 (!%p313_p2), %v1761_v8  ;;  %v1768_v15 = vld [vmem:[%s2223_s1 + $0x98] sm:$0xff] (!%p313_p2)   ;;  %v1772_v19 = vld [vmem:[%s2223_s1 + $0xa0] sm:$0xff] (!%p313_p2)   ;;  %v1776_v23 = vld [vmem:[%s2223_s1 + $0xa8] sm:$0xff] (!%p313_p2)  }
   0xd   : > { %1518 = vmatpush3.bf16.msra.mxu1 %v1760_v7  ;;  %s2234_s14 = smov (!%p350_p3, %s1400_s14), 1  ;;  %v1777_v24 = vld [vmem:[%s2223_s1 + $0x70] sm:$0xff]   ;;  %v1781_v28 = vld [vmem:[%s2223_s1 + $0x78] sm:$0xff]   ;;  %v1787_v35 = vld [vmem:[%s2223_s1 + $0x140] sm:$0xff]  }
   0xe   : > { %1519 = vmatprep.subr.bf16.mxu1 %v1763_v10  ;;  %s1740_s29 = smul.u32 24, %s2234_s14  ;;  %v1778_v25 = vld [vmem:[%s2223_s1 + $0x30] sm:$0xff]   ;;  %v1782_v29 = vld [vmem:[%s2223_s1 + $0x38] sm:$0xff]   ;;  %v1790_v39 = vld [vmem:[%s2223_s1 + $0x100] sm:$0xff]   ;;  %s1492_s26 = sshll.u32 %s2234_s14, 4 }
   0xf   : > { %1498 = vmatpush3.bf16.msra.mxu0 %v1762_v9  ;;  %v1779_v26 = vld [vmem:[%s2223_s1 + $0xf0] sm:$0xff]   ;;  %v1783_v30 = vld [vmem:[%s2223_s1 + $0xf8] sm:$0xff]   ;;  %v1791_v40 = vld [vmem:[%s2223_s1 + $0x148] sm:$0xff]  }
  0x10   : > { %1499 = vmatprep.subr.bf16.mxu0 %v1765_v12  ;;  %v1780_v27 = vld [vmem:[%s2223_s1 + $0xb0] sm:$0xff]   ;;  %s2015_s22 = scalar_lea.vmem %s2222_s0, %s1740_s29  ;;  %v1786_v34 = vld [vmem:[%s2223_s1 + $0xb8] sm:$0xff]   ;;  %v1792_v41 = vld [vmem:[%s2223_s1 + $0x108] sm:$0xff]   ;;  %s359_s29 = scalar_lea.vmem %s2232_s10, %s1492_s26 }
  0x11   : > { %1520 = vmatpush3.bf16.msra.mxu1 %v1764_v11  ;;  %v361_v31 = vld [vmem:[%s2015_s22] sm:$0xff]  ;;  %v362_v36 = vld [vmem:[%s2015_s22 + $0x8] sm:$0xff]  ;;  %v1793_v42 = vld [vmem:[%s2223_s1 + $0x150] sm:$0xff]  }
  0x12   : > { %1521 = vmatprep.subr.bf16.mxu1 %v1767_v14  ;;  %v1409_v32 = vcombine.low %v361_v31, %v361_v31  ;;  %v1410_v33 = vcombine.high %v361_v31, %v361_v31  ;;  %v1411_v37 = vcombine.low %v362_v36, %v362_v36  ;;  %v1412_v38 = vcombine.high %v362_v36, %v362_v36  ;;  %v1794_v43 = vld [vmem:[%s2223_s1 + $0x110] sm:$0xff]   ;;  %v1795_v44 = vld [vmem:[%s2223_s1 + $0x158] sm:$0xff]   ;;  %v1797_v46 = vld [vmem:[%s2223_s1 + $0x160] sm:$0xff]  }
  0x13   : > { %1500 = vmatpush3.bf16.msra.mxu0 %v1766_v13  ;;  %v1796_v45 = vld [vmem:[%s2223_s1 + $0x118] sm:$0xff]   ;;  %v1798_v47 = vld [vmem:[%s2223_s1 + $0x120] sm:$0xff]   ;;  %v1799_v48 = vld [vmem:[%s2223_s1 + $0x168] sm:$0xff]  }
  0x14   : > { %1501 = vmatprep.subr.bf16.mxu0 %v1769_v16  ;;  %808 = vmatprep.mubr.bf16.mxu0 %v1410_v33  ;;  %v363_v49 = vld [vmem:[%s2015_s22 + $0x10] sm:$0xff]  ;;  %v1800_v51 = vld [vmem:[%s2223_s1 + $0x128] sm:$0xff]   ;;  %v1803_v54 = vld [vmem:[%s2223_s1 + $0x178] sm:$0xff]  }
  0x15   : > { %1522 = vmatpush3.bf16.msra.mxu1 %v1768_v15  ;;  %848 = vmatprep.mubr.bf16.mxu1 %v1412_v38  ;;  %v1414_v50 = vcombine.high %v363_v49, %v363_v49  ;;  %v1801_v52 = vld [vmem:[%s2223_s1 + $0x170] sm:$0xff]   ;;  %v1804_v55 = vld [vmem:[%s2223_s1 + $0x138] sm:$0xff]   ;;  %v1413_v56 = vcombine.low %v363_v49, %v363_v49  ;;  %v896_v57 = vld [vmem:[%s2225_s3] sm:$0xff] }
  0x16   : > { %1523 = vmatprep.subr.bf16.mxu1 %v1771_v18  ;;  %v1802_v53 = vld [vmem:[%s2223_s1 + $0x130] sm:$0xff]   ;;  %v897_v58 = vld [vmem:[%s2225_s3 + $0x8] sm:$0xff]  ;;  %v899_v62 = vld [vmem:[%s2225_s3 + $0x18] sm:$0xff]  ;;  %v1853_v18 = vmov 0.0  }
  0x17   : > { %1502 = vmatpush3.bf16.msra.mxu0 %v1770_v17  ;;  %v1693_v59 = vpack.c.bf16 %v897_v58, %v896_v57  ;;  %v898_v61 = vld [vmem:[%s2225_s3 + $0x10] sm:$0xff]  ;;  %v900_v0 = vld [vmem:[%s2225_s3 + $0x20] sm:$0xff]  ;;  %v901_v1 = vld [vmem:[%s2225_s3 + $0x28] sm:$0xff] }
  0x18   : > { %1503 = vmatprep.subr.bf16.mxu0 %v1773_v20  ;;  %v1696_v63 = vpack.c.bf16 %v899_v62, %v898_v61  ;;  %v1699_v2 = vpack.c.bf16 %v901_v1, %v900_v0  ;;  %v902_v3 = vld [vmem:[%s2225_s3 + $0x30] sm:$0xff]  ;;  %v903_v4 = vld [vmem:[%s2225_s3 + $0x38] sm:$0xff]  ;;  %v904_v6 = vld [vmem:[%s2225_s3 + $0x40] sm:$0xff] }
  0x19   : > { %1524 = vmatpush3.bf16.msra.mxu1 %v1772_v19  ;;  %v1702_v5 = vpack.c.bf16 %v903_v4, %v902_v3  ;;  %v905_v7 = vld [vmem:[%s2225_s3 + $0x48] sm:$0xff]  ;;  %v906_v9 = vld [vmem:[%s2225_s3 + $0x50] sm:$0xff]  ;;  %v907_v10 = vld [vmem:[%s2225_s3 + $0x58] sm:$0xff] }
  0x1a   : > { %1525 = vmatprep.subr.bf16.mxu1 %v1775_v22  ;;  %v1705_v8 = vpack.c.bf16 %v905_v7, %v904_v6  ;;  %v1708_v11 = vpack.c.bf16 %v907_v10, %v906_v9  ;;  %v908_v12 = vld [vmem:[%s2225_s3 + $0x60] sm:$0xff]  ;;  %v909_v13 = vld [vmem:[%s2225_s3 + $0x68] sm:$0xff]  ;;  %v910_v15 = vld [vmem:[%s2225_s3 + $0x70] sm:$0xff] }
  0x1b   : > { %1504 = vmatpush3.bf16.msra.mxu0 %v1774_v21  ;;  %v1711_v14 = vpack.c.bf16 %v909_v13, %v908_v12  ;;  %v911_v16 = vld [vmem:[%s2225_s3 + $0x78] sm:$0xff]  ;;  %v1408_v20 = vld [vmem:[%s2224_s2] ss:$0 sm:$0xff]  ;;  %v1829_v7 = vld [vmem:[%s2230_s8 + $0x44] ss:$8 sps:$4 sm:$0xff]  }
  0x1c   : > { %1505 = vmatprep.subr.bf16.mxu0 %v1777_v24  ;;  %v1714_v17 = vpack.c.bf16 %v911_v16, %v910_v15  ;;  %v1820_v49 = vld [vmem:[%s2230_s8 + $0x14] ss:$8 sps:$4 sm:$0xff]   ;;  %v1464_v1 = vld [vmem:[%s2227_s5] ss:$0 sm:$0xff]  ;;  %v1824_v6 = vld [vmem:[%s2230_s8 + $0x30] ss:$8 sps:$4 sm:$0xff]  }
  0x1d   : > { %1526 = vmatpush3.bf16.msra.mxu1 %v1776_v23  ;;  %v1832_v9 = vld [vmem:[%s2230_s8 + $0x54] ss:$8 sps:$4 sm:$0xff]   ;;  %v1830_v10 = vld [vmem:[%s2230_s8 + $0x50] ss:$8 sps:$4 sm:$0xff]   ;;  %v1833_v12 = vld [vmem:[%s2230_s8 + $0x60] ss:$8 sps:$4 sm:$0xff]  }
  0x1e   : > { %1527 = vmatprep.subr.bf16.mxu1 %v1779_v26  ;;  %v1838_v13 = vld [vmem:[%s2230_s8 + $0x74] ss:$8 sps:$4 sm:$0xff]   ;;  %v1854_v15 = vmov 0   ;;  %v1465_v16 = vld [vmem:[%s2229_s7] ss:$0 sm:$0xff] }
  0x1f   : > { %1506 = vmatpush3.bf16.msra.mxu0 %v1778_v25 }
  0x20   : > { %1507 = vmatprep.subr.bf16.mxu0 %v1781_v28 }
  0x21   : > { %1528 = vmatpush3.bf16.msra.mxu1 %v1780_v27 }
  0x22   : > { %1529 = vmatprep.subr.bf16.mxu1 %v1783_v30 }
  0x23   : > { %1508 = vmatpush3.bf16.msra.mxu0 %v1782_v29 }
  0x24   : > { %1537 = vmatprep.subr.bf16.mxu0 %v1787_v35 }
  0x25   : > { %1530 = vmatpush3.bf16.msra.mxu1 %v1786_v34 }
  0x26   : > { %809 = vmatmul.mubr.bf16.vlgmr.msra.gmra.mrb[0].mxu0 %v1409_v32  ;;  %1692 = vmatprep.subr.bf16.mxu1 %v1851_v60 }
  0x27   : > { %1538 = vmatpush3.bf16.msra.mxu0 %v1790_v39  ;;  %888 = vmatprep.mubr.bf16.mxu0 %v1414_v50  ;;  %v1818_v50 = vld [vmem:[%s2230_s8 + $0x10] ss:$8 sps:$4 sm:$0xff]  }
  0x28   : > { %849 = vmatmul.mubr.bf16.vlgmr.msra.gmra.mrb[0].mxu1 %v1411_v37  ;;  %1539 = vmatprep.subr.bf16.mxu0 %v1791_v40  ;;  %v1807_v37 = vld [vmem:[%s2228_s6] sm:$0xff]   ;;  %v1808_v40 = vld [vmem:[%s2228_s6 + $0x8] sm:$0xff]  }
  0x29   : > { %1694 = vmatpush3.bf16.msra.mxu1 %v1693_v59  ;;  %1634 = vmatprep.mubr.msk.f32.mxu1 %vm1852_vm0, %v1853_v18 }
  0x2a   : > { %1695 = vmatprep.subr.bf16.mxu1 %v1851_v60 }
  0x2b   : > { %1540 = vmatpush3.bf16.msra.mxu0 %v1792_v41  ;;  %v1809_v41 = vld [vmem:[%s2228_s6 + $0x10] sm:$0xff]  }
  0x2c   : > { %1541 = vmatprep.subr.bf16.mxu0 %v1793_v42  ;;  %v1810_v42 = vld [vmem:[%s2228_s6 + $0x18] sm:$0xff]  }
  0x2d   : > { %1697 = vmatpush3.bf16.msra.mxu1 %v1696_v63 }
  0x2e   : > { %1698 = vmatprep.subr.bf16.mxu1 %v1851_v60 }
  0x2f   : > { %1542 = vmatpush3.bf16.msra.mxu0 %v1794_v43  ;;  %v1811_v43 = vld [vmem:[%s2228_s6 + $0x20] sm:$0xff]  }
  0x30   : > { %1543 = vmatprep.subr.bf16.mxu0 %v1795_v44  ;;  %v1812_v44 = vld [vmem:[%s2228_s6 + $0x28] sm:$0xff]  }
  0x31   : > { %1700 = vmatpush3.bf16.msra.mxu1 %v1699_v2 }
  0x32   : > { %1701 = vmatprep.subr.bf16.mxu1 %v1851_v60 }
  0x33   : > { %1544 = vmatpush3.bf16.msra.mxu0 %v1796_v45  ;;  %v1813_v45 = vld [vmem:[%s2228_s6 + $0x30] sm:$0xff]  }
  0x34   : > { %1545 = vmatprep.subr.bf16.mxu0 %v1797_v46  ;;  %v1814_v46 = vld [vmem:[%s2228_s6 + $0x38] sm:$0xff]  }
  0x35   : > { %1703 = vmatpush3.bf16.msra.mxu1 %v1702_v5 }
  0x36   : > { %1704 = vmatprep.subr.bf16.mxu1 %v1851_v60 }
  0x37   : > { %1546 = vmatpush3.bf16.msra.mxu0 %v1798_v47  ;;  %v1815_v47 = vld [vmem:[%s2230_s8] ss:$8 sps:$4 sm:$0xff]  }
  0x38   : > { %1547 = vmatprep.subr.bf16.mxu0 %v1799_v48  ;;  %v1817_v48 = vld [vmem:[%s2230_s8 + $0x4] ss:$8 sps:$4 sm:$0xff]  }
  0x39   : > { %1706 = vmatpush3.bf16.msra.mxu1 %v1705_v8 }
  0x3a   : > { %1707 = vmatprep.subr.bf16.mxu1 %v1851_v60 }
  0x3b   : > { %1548 = vmatpush3.bf16.msra.mxu0 %v1800_v51  ;;  %v1823_v51 = vld [vmem:[%s2230_s8 + $0x24] ss:$8 sps:$4 sm:$0xff]  }
  0x3c   : > { %1549 = vmatprep.subr.bf16.mxu0 %v1801_v52  ;;  %v1821_v52 = vld [vmem:[%s2230_s8 + $0x20] ss:$8 sps:$4 sm:$0xff]  }
  0x3d   : > { %1709 = vmatpush3.bf16.msra.mxu1 %v1708_v11 }
  0x3e   : > { %1710 = vmatprep.subr.bf16.mxu1 %v1851_v60 }
  0x3f   : > { %1550 = vmatpush3.bf16.msra.mxu0 %v1802_v53 }
  0x40   : > { %1551 = vmatprep.subr.bf16.mxu0 %v1803_v54 }
  0x41   : > { %1712 = vmatpush3.bf16.msra.mxu1 %v1711_v14 }
  0x42   : > { %1713 = vmatprep.subr.bf16.mxu1 %v1851_v60 }
  0x43   : > { %1552 = vmatpush3.bf16.msra.mxu0 %v1804_v55 }
  0x44   : > { %1716 = vmatprep.subr.bf16.mxu0 %v1851_v60 }
  0x45   : > { %1715 = vmatpush3.bf16.msra.mxu1 %v1714_v17 }
  0x46   : > { %889 = vmatmul.mubr.bf16.vlgmr.msra.gmra.mrb[4].mxu0 %v1413_v56  ;;  %1672 = vmatprep.subr.bf16.mxu1 %v1853_v18 }
  0x47   : > { %1718 = vmatpush3.bf16.msra.mxu0 %v1693_v59  ;;  %1669 = vmatprep.mubr.msk.f32.mxu0 %vm1852_vm0, %v1853_v18 }
  0x48   : > { %1719 = vmatprep.subr.bf16.mxu0 %v1851_v60 }
  0x4b   : > { %1721 = vmatpush3.bf16.msra.mxu0 %v1696_v63  ;;  %v1463_v63 = vld [vmem:[%s2226_s4] ss:$0 sm:$0xff] }
  0x4c   : > { %1722 = vmatprep.subr.bf16.mxu0 %v1851_v60 }
  0x4f   : > { %1724 = vmatpush3.bf16.msra.mxu0 %v1699_v2 }
  0x50   : > { %1725 = vmatprep.subr.bf16.mxu0 %v1851_v60 }
  0x53   : > { %1727 = vmatpush3.bf16.msra.mxu0 %v1702_v5  ;;  %v1826_v5 = vld [vmem:[%s2230_s8 + $0x34] ss:$8 sps:$4 sm:$0xff]  }
  0x54   : > { %1728 = vmatprep.subr.bf16.mxu0 %v1851_v60 }
  0x57   : > { %1730 = vmatpush3.bf16.msra.mxu0 %v1705_v8  ;;  %v1827_v8 = vld [vmem:[%s2230_s8 + $0x40] ss:$8 sps:$4 sm:$0xff]  }
  0x58   : > { %1731 = vmatprep.subr.bf16.mxu0 %v1851_v60 }
  0x5b   : > { %1733 = vmatpush3.bf16.msra.mxu0 %v1708_v11  ;;  %v1835_v11 = vld [vmem:[%s2230_s8 + $0x64] ss:$8 sps:$4 sm:$0xff]  }
  0x5c   : > { %1734 = vmatprep.subr.bf16.mxu0 %v1851_v60 }
  0x5f   : > { %1736 = vmatpush3.bf16.msra.mxu0 %v1711_v14  ;;  %v1836_v14 = vld [vmem:[%s2230_s8 + $0x70] ss:$8 sps:$4 sm:$0xff]  }
  0x60   : > { %1737 = vmatprep.subr.bf16.mxu0 %v1851_v60 }
  0x63   : > { %1739 = vmatpush3.bf16.msra.mxu0 %v1714_v17 }
  0x64   : > { %1302 = vmatprep.subr.bf16.mxu0 %v1817_v48 }
  0xf9   : > { %v1509_v19 = vpop.f32.mrb[0].mxu0 }
  0xfa   : > { %v1510_v21 = vpop.f32.mrb[1].mxu0 }
  0xfb   : > { %v1511_v22 = vadd.f32 %v1510_v21, %v1509_v19  ;;  %v1512_v23 = vpop.f32.mrb[2].mxu0  ;;  %v1531_v24 = vpop.f32.mrb[0].mxu1 }
  0xfc   : > { %v1513_v25 = vpop.f32.mrb[3].mxu0  ;;  %v1532_v26 = vpop.f32.mrb[1].mxu1 }
  0xfd   : > { %v811_v27 = vadd.f32 %v1511_v22, %v1408_v20  ;;  %v1533_v28 = vadd.f32 %v1532_v26, %v1531_v24  ;;  %v1534_v29 = vpop.f32.mrb[2].mxu1 }
  0xfe   : > { %v1535_v30 = vpop.f32.mrb[3].mxu1 }
  0xff   : > { %v851_v31 = vadd.f32 %v1533_v28, %v811_v27  ;;  %v1212_v28 = vlaneseq }
 0x101   : > { %v1213_v29 = vshrl.u32 %v1212_v28, 7 }
 0x103   : > { %v1214_v30 = vsub.s32 0, %v1213_v29 }
 0x119   : > { %v1553_v32 = vpop.f32.mrb[4].mxu0 }
 0x11a   : > { %v1554_v33 = vpop.f32.mrb[5].mxu0 }
 0x11b   : > { %v1555_v34 = vadd.f32 %v1554_v33, %v1553_v32  ;;  %v1556_v35 = vpop.f32.mrb[6].mxu0  ;;  %v1218_v32 = vsub.s32 1, %v1213_v29 }
 0x11c   : > { %v1557_v36 = vpop.f32.mrb[7].mxu0 }
 0x11d   : > { %v891_v38 = vadd.f32 %v1555_v34, %v851_v31  ;;  %v1210_v31 = vld [vmem:[%s2231_s9] sm:$0x3] }
 0x11e   : > { %v1215_v33 = vrot.slane %v1210_v31, %v1214_v30  ;;  %v1219_v34 = vrot.slane %v1210_v31, %v1218_v32 }
 0x11f   : > { %v982_v39 = vmul.f32 %v891_v38, %v891_v38  ;;  %1635 = vmatmul.mubr.f32.vlgmr.msra.gmra.mrb[4].mxu1 %v891_v38 }
 0x120   : > { %1673 = vmatpush3.bf16.msra.mxu1 %v1807_v37  ;;  %1688 = vmatprep.mubr.msk.bf16.mxu1 %vm1852_vm0, %v1853_v18 }
 0x121   : > { %1670 = vmatmul.mubr.f32.vlgmr.msra.gmra.mrb[8].mxu0 %v982_v39  ;;  %1674 = vmatprep.subr.bf16.mxu1 %v1853_v18 }
 0x122   : > { %1303 = vmatpush1.bf16.msra.mxu0 %v1815_v47  ;;  %1334 = vmatprep.mubr.bf16.mxu0 %v1854_v15 }
 0x123   : > { %1304 = vmatprep.subr.bf16.mxu0 %v1820_v49 }
 0x124   : > { %1675 = vmatpush3.bf16.msra.mxu1 %v1808_v40 }
 0x125   : > { %1676 = vmatprep.subr.bf16.mxu1 %v1853_v18 }
 0x126   : > { %1305 = vmatpush1.bf16.msra.mxu0 %v1818_v50 }
 0x127   : > { %1306 = vmatprep.subr.bf16.mxu0 %v1823_v51 }
 0x128   : > { %1677 = vmatpush3.bf16.msra.mxu1 %v1809_v41 }
 0x129   : > { %1678 = vmatprep.subr.bf16.mxu1 %v1853_v18 }
 0x12a   : > { %1307 = vmatpush1.bf16.msra.mxu0 %v1821_v52 }
 0x12b   : > { %1308 = vmatprep.subr.bf16.mxu0 %v1826_v5 }
 0x12c   : > { %1679 = vmatpush3.bf16.msra.mxu1 %v1810_v42 }
 0x12d   : > { %1680 = vmatprep.subr.bf16.mxu1 %v1853_v18 }
 0x12e   : > { %1309 = vmatpush1.bf16.msra.mxu0 %v1824_v6 }
 0x12f   : > { %1310 = vmatprep.subr.bf16.mxu0 %v1829_v7 }
 0x130   : > { %1681 = vmatpush3.bf16.msra.mxu1 %v1811_v43 }
 0x131   : > { %1682 = vmatprep.subr.bf16.mxu1 %v1853_v18 }
 0x132   : > { %1311 = vmatpush1.bf16.msra.mxu0 %v1827_v8 }
 0x133   : > { %1312 = vmatprep.subr.bf16.mxu0 %v1832_v9 }
 0x134   : > { %1683 = vmatpush3.bf16.msra.mxu1 %v1812_v44 }
 0x135   : > { %1684 = vmatprep.subr.bf16.mxu1 %v1853_v18 }
 0x136   : > { %1313 = vmatpush1.bf16.msra.mxu0 %v1830_v10 }
 0x137   : > { %1314 = vmatprep.subr.bf16.mxu0 %v1835_v11 }
 0x138   : > { %1685 = vmatpush3.bf16.msra.mxu1 %v1813_v45 }
 0x139   : > { %1686 = vmatprep.subr.bf16.mxu1 %v1853_v18 }
 0x13a   : > { %1315 = vmatpush1.bf16.msra.mxu0 %v1833_v12 }
 0x13b   : > { %1316 = vmatprep.subr.bf16.mxu0 %v1838_v13 }
 0x13c   : > { %1687 = vmatpush3.bf16.msra.mxu1 %v1814_v46 }
 0x13e   : > { %1317 = vmatpush1.bf16.msra.mxu0 %v1836_v14 }
 0x1f2   : > { %v978_v53 = vpop.f32.mrb[4].mxu1 }
 0x1f3   : > { %v1053_v54 = vmul.f32 %v978_v53, %v978_v53  ;;  %v1636_v55 = vpop.f32.mrb[5].mxu1  ;;  %v1056_v61 = vsub.f32 %v891_v38, %v978_v53 }
 0x1f4   : > { %v1049_v56 = vpop.f32.mrb[8].mxu0 }
 0x1f5   : > { %v1054_v57 = vsub.f32 %v1049_v56, %v1053_v54  ;;  %v1671_v58 = vpop.f32.mrb[9].mxu0 }
 0x1f7   : > { %v1055_v59 = vmax.f32 %v1054_v57, 0.0 }
 0x1f9   : > { %v1057_v60 = vadd.f32 1e-05, %v1055_v59 }
 0x1fb   : > { %1839 = vrsqrt.f32 %v1057_v60 }
 0x205   : > { %v1840_v62 = vpop.eup %1839 }
 0x206   : > { %v1059_v0 = vmul.f32 %v1840_v62, %v1056_v61 }
 0x208   : > { %v1067_v2 = vmul.f32 %v1463_v63, %v1059_v0 }
 0x20a   : > { %v1075_v3 = vadd.f32 %v1464_v1, %v1067_v2 }
 0x20c   : > { %v1076_v4 = vpack.c.bf16 %v1075_v3, %v1075_v3 }
 0x20e   : > { %1689 = vmatmul.mubr.bf16.vlgmr.msra.gmra.mrb[8].mxu1 %v1076_v4 }
 0x2e1   : > { %v1182_v17 = vpop.f32.mrb[8].mxu1 }
 0x2e2   : > { %v1183_v18 = vadd.f32 %v1465_v16, %v1182_v17  ;;  %v1690_v19 = vpop.f32.mrb[9].mxu1 }
 0x2e3   : > { %v1185_v20 = vpop.f32.mrb[10].mxu1 }
 0x2e4   : > { %v1189_v21 = vmul.f32 0.70710677, %v1183_v18  ;;  %v1691_v22 = vpop.f32.mrb[11].mxu1  ;;  %v1188_v24 = vmul.f32 0.5, %v1183_v18 }
 0x2e6   : > { %1841 = verf.f32 %v1189_v21 }
 0x2f0   : > { %v1842_v23 = vpop.eup %1841 }
 0x2f1   : > { %v1191_v25 = vadd.f32 1.0, %v1842_v23 }
 0x2f3   : > { %v1192_v26 = vmul.f32 %v1191_v25, %v1188_v24 }
 0x2f5   : > { %v1193_v27 = vpack.c.bf16 %v1192_v26, %v1192_v26 }
 0x2f7   : > { %1335 = vmatmul.mubr.bf16.vlgmr.msra.gmra.mrb[12].mxu0 %v1193_v27 }
 0x3ca   : > { %v1336_v35 = vpop.f32.mrb[12].mxu0 }
 0x3cb   : > { %v1337_v36 = vadd.f32 %v1336_v35, %v1215_v33  ;;  %v1338_v37 = vpop.f32.mrb[13].mxu0 }
 0x3cc   : > { %v1339_v38 = vadd.f32 %v1338_v37, %v1219_v34  ;;  %v1340_v39 = vpop.f32.mrb[14].mxu0 }
 0x3cd   : > { %1343 = vst [vmem:[%s359_s29] sm:$0xff] %v1337_v36  ;;  %v1341_v40 = vpop.f32.mrb[15].mxu0 }
 0x3ce   : > { %1344 = vst [vmem:[%s359_s29 + $0x8] sm:$0xff] %v1339_v38 }
 0x3cf PF: > { %s20_s13 = sadd.s32 1, %s1849_s13  }
 0x3d0   : > { %p17_p4 = scmp.ge.s32.totalorder %s20_s13, 4  }
 0x3d2   :  { %19 = sbr.rel (!%p17_p4) target bundleno = 1 (0x1), region = 90 }

// kernel: kimi_vl_forward.3
= control target key start
LH: loop header
LB: loop body
LE: loop exit
PB: predicated region body
PF: predicated region fallthrough
CT: control target
= control target key end

     0   :  { %19 = vsyncpa [#allocation3], 0  ;;  %s9021_s0 = inlined_call_operand.vmem [shape: f32[128,256], index: 0, kind: input, shape index: {}, may-alias: {0,1}]   ;;  %s9022_s1 = inlined_call_operand.vmem [shape: f32[128,256], index: 1, kind: input, shape index: {}, may-alias: {0,1}]   ;;  %s9023_s2 = inlined_call_operand.vmem [shape: f32[128,128], index: 2, kind: input, shape index: {}, may-alias: {2,4}]   ;;  %s9024_s3 = inlined_call_operand.vmem [shape: f32[128,128], index: 3, kind: input, shape index: {}, may-alias: {3,5}]   ;;  %s9025_s4 = inlined_call_operand.vmem [shape: f32[128,128], index: 4, kind: input, shape index: {}, may-alias: {2,4}]   ;;  %s9026_s5 = inlined_call_operand.vmem [shape: f32[128,128], index: 5, kind: input, shape index: {}, may-alias: {3,5}]   ;;  %s9027_s6 = inlined_call_operand.vmem [shape: f32[1,256], index: 6, kind: input, shape index: {}]   ;;  %s9028_s7 = inlined_call_operand.vmem [shape: bf16[256,256], index: 7, kind: input, shape index: {}]   ;;  %s9029_s8 = inlined_call_operand.vmem [shape: bf16[256,512], index: 8, kind: input, shape index: {}]   ;;  %s9030_s9 = inlined_call_operand.vmem [shape: bf16[256,256], index: 9, kind: input, shape index: {}]   ;;  %s9031_s10 = inlined_call_operand.vmem [shape: f32[1,256], index: 10, kind: input, shape index: {}]   ;;  %s9032_s11 = inlined_call_operand.vmem [shape: bf16[256,1024], index: 11, kind: input, shape index: {}]   ;;  %s9033_s12 = inlined_call_operand.vmem [shape: bf16[512,256], index: 12, kind: input, shape index: {}]   ;;  %s9034_s13 = inlined_call_operand.vmem [shape: f32[1,256], index: 13, kind: input, shape index: {}]   ;;  %s9035_s14 = inlined_call_operand.hbm [shape: f32[128,256], index: 14, kind: output, shape index: {}]  }
   0x1   :  { %21 = vsyncpa [#allocation3 + $0x1], 0  ;;  %s6443_s29 = smov 0   ;;  %s6445_s30 = smov 0  }
   0x2   :  { %s6447_s15 = smov 0   ;;  %s6449_s16 = smov 0  }
   0x3 LB: > { %9075 = sst [smem:[#allocation5_spill]] %s6350_s29  ;;  %s6464_s17 = sadd.s32 4294967295, %s6362_s16   ;;  %s6362_s16 = sphi %s6449_s16, %s9163_s16   ;;  %s6358_s15 = sphi %s6447_s15, %s9165_s15   ;;  %s6354_s30 = sphi %s6445_s30, %s9167_s30   ;;  %s6350_s29 = sphi %s6443_s29, %s9166_s29  }
   0x4   : > { %9076 = sst [smem:[#allocation6_spill]] %s6358_s15  ;;  %s5106_s18 = sadd.s32 4294967294, %s6362_s16  }
   0x5   : > { %9077 = sst [smem:[#allocation7_spill]] %s6362_s16  ;;  %s6468_s19 = sadd.s32 1, %s6362_s16  }
   0x6   : > { %9078 = sst [smem:[#allocation8_spill]] %s6468_s19  ;;  %s343_s20 = sadd.s32 1, %s6358_s15 }
   0x7   : > { %s340_s21 = ssub.s32 %s6362_s16, %s6468_s19  ;;  %p353_p0 = scmp.ne.s32.totalorder %s6358_s15, %s6354_s30 }
   0x8   : > { %p341_p1 = scmp.eq.s32.totalorder %s340_s21, 0  ;;  %p354_p2 = scmp.eq.s32.totalorder %s6464_s17, 1 }
   0x9   : > { %p359_p3 = scmp.ne.s32.totalorder %s6354_s30, %s6350_s29  ;;  %p360_p4 = scmp.eq.s32.totalorder %s5106_s18, 1 }
   0xa   : > { %s6479_s22 = scalar_select %p341_p1, %s6358_s15, %s343_s20  }
   0xb   : > { %p6481_p5 = por %p354_p2, %p353_p0  ;;  %p6485_p6 = por %p360_p4, %p359_p3 }
   0xc   : > { %9079 = sst [smem:[#allocation9_spill]] %s6479_s22  ;;  %p5109_p7 = scmp.ge.s32.totalorder %s6362_s16, 1 }
   0xd   : > { %s9081_s24 = scalar_select %p6485_p6, 1, 0 }
   0xe   : > { %p439_p8 = scmp.lt.s32.totalorder %s6362_s16, 3 }
   0xf   : > { %9082 = sst [smem:[#allocation10_spill]] %s9081_s24 }
  0x10   : > { %p440_p9 = pnand %p5109_p7, %p439_p8 }
  0x12   : > { %443 = sbr.rel (%p440_p9) target bundleno = 2546 (0x9f2), region = 76 }
  0x19   : > { %v655_v0 = vld [vmem:[%s9022_s1 + $0x20] sm:$0xff]  ;;  %v656_v1 = vld [vmem:[%s9022_s1 + $0x28] sm:$0xff]  ;;  %v657_v7 = vld [vmem:[%s9022_s1 + $0x30] sm:$0xff]  ;;  %s5111_s15 = sshll.u32 %s6464_s17, 3  ;;  %s6364_s21 = smov 64  }
  0x1a   : > { %v651_v2 = vld [vmem:[%s9022_s1] sm:$0xff]  ;;  %v687_v3 = vmul.f32 %v655_v0, %v655_v0  ;;  %v688_v4 = vmul.f32 %v656_v1, %v656_v1  ;;  %v6503_v5 = vld [vmem:[%s9022_s1 + $0x8] sm:$0xff]  ;;  %v6511_v8 = vld [vmem:[%s9022_s1 + $0x38] sm:$0xff]  ;;  %v689_v10 = vmul.f32 %v657_v7, %v657_v7  ;;  %p497_p10 = scmp.lt.s32.totalorder %s5111_s15, 15  ;;  %s6365_s16 = smov [#allocation2]  }
  0x1b   : > { %v683_v6 = vmul.f32 %v651_v2, %v651_v2  ;;  %v684_v9 = vmul.f32 %v6503_v5, %v6503_v5  ;;  %v690_v11 = vmul.f32 %v6511_v8, %v6511_v8  ;;  %v6520_v12 = vld [vmem:[%s9022_s1 + $0x10] sm:$0xff]  ;;  %v6525_v13 = vld [vmem:[%s9022_s1 + $0x18] sm:$0xff]  ;;  %v659_v19 = vld [vmem:[%s9022_s1 + $0x40] sm:$0xff]  ;;  %s6304_s24 = sshll.u32 %s6365_s16, 4  ;;  %s6305_s24 = int_to_ptr.vmem [resolvable:$false] %s6304_s24 }
  0x1c   : > { %v661_v14 = vld [vmem:[%s9022_s1 + $0x50] sm:$0xff]  ;;  %v721_v15 = vadd.f32 %v688_v4, %v687_v3  ;;  %v685_v16 = vmul.f32 %v6520_v12, %v6520_v12  ;;  %v686_v17 = vmul.f32 %v6525_v13, %v6525_v13  ;;  %v662_v18 = vld [vmem:[%s9022_s1 + $0x58] sm:$0xff]  ;;  %v660_v20 = vld [vmem:[%s9022_s1 + $0x48] sm:$0xff]  ;;  %v691_v26 = vmul.f32 %v659_v19, %v659_v19  ;;  %s9169_s15 = smov (!%p497_p10, %s5111_s15), 15  ;;  %s6306_s18 = scalar_lea.vmem %s6305_s24, 4096 }
  0x1d   : > { %v715_v21 = vadd.f32 %v684_v9, %v683_v6  ;;  %v724_v22 = vadd.f32 %v690_v11, %v689_v10  ;;  %v693_v23 = vmul.f32 %v661_v14, %v661_v14  ;;  %v694_v24 = vmul.f32 %v662_v18, %v662_v18  ;;  %v665_v28 = vld [vmem:[%s9022_s1 + $0x70] sm:$0xff]  ;;  %v666_v29 = vld [vmem:[%s9022_s1 + $0x78] sm:$0xff]  ;;  %v663_v30 = vld [vmem:[%s9022_s1 + $0x60] sm:$0xff]  ;;  %s5477_s27 = sshll.u32 %s9169_s15, 4  ;;  %s5115_s25 = sshll.u32 %s9169_s15, 3 }
  0x1e   : > { %722 = vadd.xlane.f32.xlu1 %v721_v15  ;;  %v718_v25 = vadd.f32 %v686_v17, %v685_v16  ;;  %v692_v27 = vmul.f32 %v660_v20, %v660_v20  ;;  %v664_v31 = vld [vmem:[%s9022_s1 + $0x68] sm:$0xff]  ;;  %v697_v33 = vmul.f32 %v665_v28, %v665_v28  ;;  %v698_v34 = vmul.f32 %v666_v29, %v666_v29  ;;  %v669_v38 = vld [vmem:[%s9022_s1 + $0x90] sm:$0xff]  ;;  %v670_v39 = vld [vmem:[%s9022_s1 + $0x98] sm:$0xff]  ;;  %s6595_s19 = scalar_lea.vmem %s9021_s0, %s5477_s27  ;;  %s7244_s28 = scalar_lea.vmem %s9023_s2, %s5115_s25 }
  0x1f   : > { %716 = vadd.xlane.f32.xlu0 %v715_v21  ;;  %v730_v32 = vadd.f32 %v694_v24, %v693_v23  ;;  %v695_v36 = vmul.f32 %v663_v30, %v663_v30  ;;  %v696_v37 = vmul.f32 %v664_v31, %v664_v31  ;;  %v667_v40 = vld [vmem:[%s9022_s1 + $0x80] sm:$0xff]  ;;  %v668_v41 = vld [vmem:[%s9022_s1 + $0x88] sm:$0xff]  ;;  %v701_v43 = vmul.f32 %v669_v38, %v669_v38  ;;  %v673_v48 = vld [vmem:[%s9022_s1 + $0xb0] sm:$0xff]  ;;  %s7421_s29 = scalar_lea.vmem %s9024_s3, %s5115_s25  ;;  %s493_s27 = sand.u32 1, %s6354_s30  }
  0x20   : > { %v727_v35 = vadd.f32 %v692_v27, %v691_v26  ;;  %v736_v42 = vadd.f32 %v698_v34, %v697_v33  ;;  %v702_v44 = vmul.f32 %v670_v39, %v670_v39  ;;  %v699_v46 = vmul.f32 %v667_v40, %v667_v40  ;;  %v674_v49 = vld [vmem:[%s9022_s1 + $0xb8] sm:$0xff]  ;;  %v671_v50 = vld [vmem:[%s9022_s1 + $0xa0] sm:$0xff]  ;;  %v672_v51 = vld [vmem:[%s9022_s1 + $0xa8] sm:$0xff] }
  0x21   : > { %v733_v45 = vadd.f32 %v696_v37, %v695_v36  ;;  %v700_v47 = vmul.f32 %v668_v41, %v668_v41  ;;  %v677_v52 = vld [vmem:[%s9022_s1 + $0xd0] sm:$0xff]  ;;  %v678_v53 = vld [vmem:[%s9022_s1 + $0xd8] sm:$0xff]  ;;  %v705_v56 = vmul.f32 %v673_v48, %v673_v48  ;;  %v706_v57 = vmul.f32 %v674_v49, %v674_v49  ;;  %v675_v62 = vld [vmem:[%s9022_s1 + $0xc0] sm:$0xff] }
  0x22   : > { %725 = vadd.xlane.f32.xlu1 %v724_v22  ;;  %v5682_v54 = vld [vmem:[%s9029_s8 + $0x4] ss:$16 sps:$4 sm:$0xff]   ;;  %v742_v55 = vadd.f32 %v702_v44, %v701_v43  ;;  %v5684_v58 = vld [vmem:[%s9029_s8] ss:$16 sps:$4 sm:$0xff]   ;;  %v703_v60 = vmul.f32 %v671_v50, %v671_v50  ;;  %v704_v61 = vmul.f32 %v672_v51, %v672_v51  ;;  %v676_v0 = vld [vmem:[%s9022_s1 + $0xc8] sm:$0xff]  ;;  %v709_v6 = vmul.f32 %v677_v52, %v677_v52 }
  0x23   : > { %719 = vadd.xlane.f32.xlu0 %v718_v25  ;;  %v739_v59 = vadd.f32 %v700_v47, %v699_v46  ;;  %1540 = vmatprep.subr.bf16.mxu1 %v5682_v54  ;;  %v5685_v63 = vld [vmem:[%s9029_s8 + $0x24] ss:$16 sps:$4 sm:$0xff]   ;;  %v5687_v1 = vld [vmem:[%s9029_s8 + $0x20] ss:$16 sps:$4 sm:$0xff]   ;;  %v748_v4 = vadd.f32 %v706_v57, %v705_v56  ;;  %v710_v7 = vmul.f32 %v678_v53, %v678_v53  ;;  %v521_v9 = vld [vmem:[%s6595_s19 + $0x18] sm:$0xff] }
  0x24   : > { %1541 = vmatpush1.bf16.msra.mxu1 %v5684_v58  ;;  %v520_v2 = vld [vmem:[%s6595_s19 + $0x10] sm:$0xff]  ;;  %v745_v10 = vadd.f32 %v704_v61, %v703_v60  ;;  %v707_v11 = vmul.f32 %v675_v62, %v675_v62  ;;  %v708_v14 = vmul.f32 %v676_v0, %v676_v0  ;;  %v518_v15 = vld [vmem:[%s6595_s19] sm:$0xff]  ;;  %v519_v16 = vld [vmem:[%s6595_s19 + $0x8] sm:$0xff]  ;;  %v538_v24 = vmul.f32 %v521_v9, %v521_v9 }
  0x25   : > { %1542 = vmatprep.subr.bf16.mxu1 %v5685_v63  ;;  %v5688_v3 = vld [vmem:[%s9029_s8 + $0x44] ss:$16 sps:$4 sm:$0xff]   ;;  %v5690_v17 = vld [vmem:[%s9029_s8 + $0x40] ss:$16 sps:$4 sm:$0xff]   ;;  %v682_v20 = vld [vmem:[%s9022_s1 + $0xf8] sm:$0xff]  ;;  %v754_v22 = vadd.f32 %v710_v7, %v709_v6  ;;  %v537_v23 = vmul.f32 %v520_v2, %v520_v2  ;;  %v535_v28 = vmul.f32 %v518_v15, %v518_v15  ;;  %v536_v29 = vmul.f32 %v519_v16, %v519_v16 }
  0x26   : > { %731 = vadd.xlane.f32.xlu1 %v730_v32  ;;  %v5691_v18 = vld [vmem:[%s9029_s8 + $0x64] ss:$16 sps:$4 sm:$0xff]   ;;  %v5702_v26 = vld [vmem:[%s9028_s7] ss:$8 sps:$4 sm:$0xff]   ;;  %v751_v27 = vadd.f32 %v708_v14, %v707_v11  ;;  %v5708_v33 = vld [vmem:[%s9028_s7 + $0x10] ss:$8 sps:$4 sm:$0xff]   ;;  %v714_v39 = vmul.f32 %v682_v20, %v682_v20 }
  0x27   : > { %728 = vadd.xlane.f32.xlu0 %v727_v35  ;;  %v681_v19 = vld [vmem:[%s9022_s1 + $0xf0] sm:$0xff]  ;;  %v5700_v21 = vld [vmem:[%s9028_s7 + $0x4] ss:$8 sps:$4 sm:$0xff]   ;;  %v525_v35 = vld [vmem:[%s6595_s19 + $0x38] sm:$0xff]  ;;  %v554_v37 = vadd.f32 %v538_v24, %v537_v23 }
  0x28   : > { %1543 = vmatpush1.bf16.msra.mxu1 %v5687_v1  ;;  %v679_v25 = vld [vmem:[%s9022_s1 + $0xe0] sm:$0xff]  ;;  %v680_v30 = vld [vmem:[%s9022_s1 + $0xe8] sm:$0xff]  ;;  %1083 = vmatprep.subr.bf16.mxu0 %v5700_v21  ;;  %v5706_v32 = vld [vmem:[%s9028_s7 + $0x14] ss:$8 sps:$4 sm:$0xff]   ;;  %v713_v38 = vmul.f32 %v681_v19, %v681_v19  ;;  %v542_v54 = vmul.f32 %v525_v35, %v525_v35 }
  0x29   : > { %1544 = vmatprep.subr.bf16.mxu1 %v5688_v3  ;;  %v5693_v31 = vld [vmem:[%s9029_s8 + $0x60] ss:$16 sps:$4 sm:$0xff]   ;;  %1084 = vmatpush1.bf16.msra.mxu0 %v5702_v26  ;;  %v5694_v36 = vld [vmem:[%s9029_s8 + $0x84] ss:$16 sps:$4 sm:$0xff]   ;;  %v523_v41 = vld [vmem:[%s6595_s19 + $0x28] sm:$0xff]  ;;  %v711_v43 = vmul.f32 %v679_v25, %v679_v25  ;;  %v712_v44 = vmul.f32 %v680_v30, %v680_v30 }
  0x2a   : > { %737 = vadd.xlane.f32.xlu1 %v736_v42  ;;  %v524_v34 = vld [vmem:[%s6595_s19 + $0x30] sm:$0xff]  ;;  %v522_v40 = vld [vmem:[%s6595_s19 + $0x20] sm:$0xff]  ;;  %1085 = vmatprep.subr.bf16.mxu0 %v5706_v32  ;;  %v551_v42 = vadd.f32 %v536_v29, %v535_v28  ;;  %v529_v50 = vld [vmem:[%s6595_s19 + $0x58] sm:$0xff]  ;;  %v760_v52 = vadd.f32 %v714_v39, %v713_v38  ;;  %v540_v58 = vmul.f32 %v523_v41, %v523_v41 }
  0x2b   : > { %734 = vadd.xlane.f32.xlu0 %v733_v45  ;;  %v5696_v45 = vld [vmem:[%s9029_s8 + $0x80] ss:$16 sps:$4 sm:$0xff]   ;;  %v5712_v46 = vld [vmem:[%s9028_s7 + $0x24] ss:$8 sps:$4 sm:$0xff]   ;;  %v5718_v51 = vld [vmem:[%s9028_s7 + $0x34] ss:$8 sps:$4 sm:$0xff]   ;;  %v541_v53 = vmul.f32 %v524_v34, %v524_v34  ;;  %v757_v56 = vadd.f32 %v712_v44, %v711_v43  ;;  %v539_v57 = vmul.f32 %v522_v40, %v522_v40 }
  0x2c   : > { %1545 = vmatpush1.bf16.msra.mxu1 %v5690_v17  ;;  %v5697_v47 = vld [vmem:[%s9029_s8 + $0xa4] ss:$16 sps:$4 sm:$0xff]   ;;  %v5714_v48 = vld [vmem:[%s9028_s7 + $0x20] ss:$8 sps:$4 sm:$0xff]   ;;  %v5720_v62 = vld [vmem:[%s9028_s7 + $0x30] ss:$8 sps:$4 sm:$0xff]  }
  0x2d   : > { %1546 = vmatprep.subr.bf16.mxu1 %v5691_v18  ;;  %1086 = vmatpush1.bf16.msra.mxu0 %v5708_v33  ;;  %v528_v49 = vld [vmem:[%s6595_s19 + $0x50] sm:$0xff]  ;;  %v533_v0 = vld [vmem:[%s6595_s19 + $0x78] sm:$0xff]  ;;  %v5724_v1 = vld [vmem:[%s9028_s7 + $0x44] ss:$8 sps:$4 sm:$0xff]   ;;  %v560_v2 = vadd.f32 %v542_v54, %v541_v53  ;;  %v557_v7 = vadd.f32 %v540_v58, %v539_v57 }
  0x2e   : > { %743 = vadd.xlane.f32.xlu1 %v742_v55  ;;  %1087 = vmatprep.subr.bf16.mxu0 %v5712_v46  ;;  %v526_v55 = vld [vmem:[%s6595_s19 + $0x40] sm:$0xff]  ;;  %v532_v63 = vld [vmem:[%s6595_s19 + $0x70] sm:$0xff]  ;;  %v545_v3 = vmul.f32 %v528_v49, %v528_v49  ;;  %v6698_v11 = vld [vmem:[%s6595_s19 + $0x68] sm:$0xff]  ;;  %v550_v20 = vmul.f32 %v533_v0, %v533_v0 }
  0x2f   : > { %740 = vadd.xlane.f32.xlu0 %v739_v59  ;;  %v6678_v59 = vld [vmem:[%s6595_s19 + $0x48] sm:$0xff]  ;;  %v5699_v60 = vld [vmem:[%s9029_s8 + $0xa0] ss:$16 sps:$4 sm:$0xff]   ;;  %v5703_v61 = vld [vmem:[%s9029_s8 + $0xc4] ss:$16 sps:$4 sm:$0xff]   ;;  %v543_v9 = vmul.f32 %v526_v55, %v526_v55  ;;  %v549_v19 = vmul.f32 %v532_v63, %v532_v63  ;;  %v548_v23 = vmul.f32 %v6698_v11, %v6698_v11 }
  0x30   : > { %1547 = vmatpush1.bf16.msra.mxu1 %v5693_v31  ;;  %v530_v6 = vld [vmem:[%s6595_s19 + $0x60] sm:$0xff]  ;;  %v5730_v17 = vld [vmem:[%s9028_s7 + $0x54] ss:$8 sps:$4 sm:$0xff]   ;;  %v5732_v26 = vld [vmem:[%s9028_s7 + $0x50] ss:$8 sps:$4 sm:$0xff]  }
  0x31   : > { %1548 = vmatprep.subr.bf16.mxu1 %v5694_v36  ;;  %1088 = vmatpush1.bf16.msra.mxu0 %v5714_v48  ;;  %v5705_v14 = vld [vmem:[%s9029_s8 + $0xc0] ss:$16 sps:$4 sm:$0xff]   ;;  %v5709_v15 = vld [vmem:[%s9029_s8 + $0xe4] ss:$16 sps:$4 sm:$0xff]   ;;  %v572_v28 = vadd.f32 %v550_v20, %v549_v19 }
  0x32   : > { %749 = vadd.xlane.f32.xlu1 %v748_v4  ;;  %1089 = vmatprep.subr.bf16.mxu0 %v5718_v51  ;;  %v546_v4 = vmul.f32 %v529_v50, %v529_v50  ;;  %v5726_v16 = vld [vmem:[%s9028_s7 + $0x40] ss:$8 sps:$4 sm:$0xff]   ;;  %v5715_v25 = vld [vmem:[%s9029_s8 + $0x104] ss:$16 sps:$4 sm:$0xff]   ;;  %v5744_v36 = vld [vmem:[%s9028_s7 + $0x70] ss:$8 sps:$4 sm:$0xff]  }
  0x33   : > { %746 = vadd.xlane.f32.xlu0 %v745_v10  ;;  %v544_v10 = vmul.f32 %v6678_v59, %v6678_v59  ;;  %v5711_v24 = vld [vmem:[%s9029_s8 + $0xe0] ss:$16 sps:$4 sm:$0xff]   ;;  %v5721_v31 = vld [vmem:[%s9029_s8 + $0x124] ss:$16 sps:$4 sm:$0xff]  }
  0x34   : > { %1549 = vmatpush1.bf16.msra.mxu1 %v5696_v45  ;;  %v566_v18 = vadd.f32 %v546_v4, %v545_v3  ;;  %v5717_v30 = vld [vmem:[%s9029_s8 + $0x100] ss:$16 sps:$4 sm:$0xff]   ;;  %v5742_v33 = vld [vmem:[%s9028_s7 + $0x74] ss:$8 sps:$4 sm:$0xff]   ;;  %v5760_v45 = vld [vmem:[%s9028_s7 + $0xa4] ss:$8 sps:$4 sm:$0xff]  }
  0x35   : > { %1550 = vmatprep.subr.bf16.mxu1 %v5697_v47  ;;  %1090 = vmatpush1.bf16.msra.mxu0 %v5720_v62  ;;  %v563_v21 = vadd.f32 %v544_v10, %v543_v9  ;;  %v5738_v32 = vld [vmem:[%s9028_s7 + $0x60] ss:$8 sps:$4 sm:$0xff]   ;;  %v5727_v35 = vld [vmem:[%s9029_s8 + $0x144] ss:$16 sps:$4 sm:$0xff]   ;;  %v5756_v43 = vld [vmem:[%s9028_s7 + $0x90] ss:$8 sps:$4 sm:$0xff]  }
  0x36   : > { %755 = vadd.xlane.f32.xlu1 %v754_v22  ;;  %1091 = vmatprep.subr.bf16.mxu0 %v5724_v1  ;;  %v547_v22 = vmul.f32 %v530_v6, %v530_v6  ;;  %v5723_v34 = vld [vmem:[%s9029_s8 + $0x120] ss:$16 sps:$4 sm:$0xff]   ;;  %v5733_v39 = vld [vmem:[%s9029_s8 + $0x164] ss:$16 sps:$4 sm:$0xff]   ;;  %v5780_v1 = vld [vmem:[%s9029_s8 + $0xc] ss:$16 sps:$4 sm:$0xff]  }
  0x37   : > { %752 = vadd.xlane.f32.xlu0 %v751_v27  ;;  %v5736_v27 = vld [vmem:[%s9028_s7 + $0x64] ss:$8 sps:$4 sm:$0xff]   ;;  %v5729_v38 = vld [vmem:[%s9029_s8 + $0x140] ss:$16 sps:$4 sm:$0xff]   ;;  %v5754_v41 = vld [vmem:[%s9028_s7 + $0x94] ss:$8 sps:$4 sm:$0xff]  }
  0x38   : > { %1551 = vmatpush1.bf16.msra.mxu1 %v5699_v60  ;;  %v569_v29 = vadd.f32 %v548_v23, %v547_v22  ;;  %v5750_v40 = vld [vmem:[%s9028_s7 + $0x80] ss:$8 sps:$4 sm:$0xff]   ;;  %v5739_v44 = vld [vmem:[%s9029_s8 + $0x184] ss:$16 sps:$4 sm:$0xff]   ;;  %v5765_v51 = vld [vmem:[%s9028_s7 + $0xb0] ss:$8 sps:$4 sm:$0xff]  }
  0x39   : > { %1552 = vmatprep.subr.bf16.mxu1 %v5703_v61  ;;  %1092 = vmatpush1.bf16.msra.mxu0 %v5726_v16  ;;  %v5741_v46 = vld [vmem:[%s9029_s8 + $0x180] ss:$16 sps:$4 sm:$0xff]   ;;  %v5745_v48 = vld [vmem:[%s9029_s8 + $0x1a4] ss:$16 sps:$4 sm:$0xff]  }
  0x3a   : > { %555 = vadd.xlane.f32.xlu1 %v554_v37  ;;  %1093 = vmatprep.subr.bf16.mxu0 %v5730_v17  ;;  %v5748_v37 = vld [vmem:[%s9028_s7 + $0x84] ss:$8 sps:$4 sm:$0xff]   ;;  %v5762_v47 = vld [vmem:[%s9028_s7 + $0xa0] ss:$8 sps:$4 sm:$0xff]   ;;  %v5763_v49 = vld [vmem:[%s9028_s7 + $0xb4] ss:$8 sps:$4 sm:$0xff]   ;;  %v9042_v17 = vlaneseq }
  0x3b   : > { %552 = vadd.xlane.f32.xlu0 %v551_v42  ;;  %v5735_v42 = vld [vmem:[%s9029_s8 + $0x160] ss:$16 sps:$4 sm:$0xff]   ;;  %v5766_v53 = vld [vmem:[%s9028_s7 + $0xc4] ss:$8 sps:$4 sm:$0xff]   ;;  %v5769_v57 = vld [vmem:[%s9028_s7 + $0xd4] ss:$8 sps:$4 sm:$0xff]  }
  0x3c   : > { %1553 = vmatpush1.bf16.msra.mxu1 %v5705_v14  ;;  %v5747_v50 = vld [vmem:[%s9029_s8 + $0x1a0] ss:$16 sps:$4 sm:$0xff]   ;;  %v5757_v55 = vld [vmem:[%s9029_s8 + $0x1e4] ss:$16 sps:$4 sm:$0xff]  }
  0x3d   : > { %1554 = vmatprep.subr.bf16.mxu1 %v5709_v15  ;;  %1094 = vmatpush1.bf16.msra.mxu0 %v5732_v26  ;;  %v5753_v54 = vld [vmem:[%s9029_s8 + $0x1c0] ss:$16 sps:$4 sm:$0xff]   ;;  %v5772_v61 = vld [vmem:[%s9028_s7 + $0xe4] ss:$8 sps:$4 sm:$0xff]   ;;  %v5775_v63 = vld [vmem:[%s9028_s7 + $0xf4] ss:$8 sps:$4 sm:$0xff]  }
  0x3e   : > { %761 = vadd.xlane.f32.xlu1 %v760_v52  ;;  %1095 = vmatprep.subr.bf16.mxu0 %v5736_v27  ;;  %v5751_v52 = vld [vmem:[%s9029_s8 + $0x1c4] ss:$16 sps:$4 sm:$0xff]   ;;  %v5759_v58 = vld [vmem:[%s9029_s8 + $0x1e0] ss:$16 sps:$4 sm:$0xff]  }
  0x3f   : > { %758 = vadd.xlane.f32.xlu0 %v757_v56  ;;  %v5768_v56 = vld [vmem:[%s9028_s7 + $0xc0] ss:$8 sps:$4 sm:$0xff]   ;;  %v5771_v60 = vld [vmem:[%s9028_s7 + $0xd0] ss:$8 sps:$4 sm:$0xff]  }
  0x40   : > { %1555 = vmatpush1.bf16.msra.mxu1 %v5711_v24  ;;  %v5774_v62 = vld [vmem:[%s9028_s7 + $0xe0] ss:$8 sps:$4 sm:$0xff]   ;;  %v5777_v0 = vld [vmem:[%s9028_s7 + $0xf0] ss:$8 sps:$4 sm:$0xff]   ;;  %v6832_v24 = vshrl.u32 %v9042_v17, 7 }
  0x41   : > { %1556 = vmatprep.subr.bf16.mxu1 %v5715_v25  ;;  %1096 = vmatpush1.bf16.msra.mxu0 %v5738_v32  ;;  %v534_v32 = vld [vmem:[%s9027_s6] sm:$0x3] }
  0x42   : > { %561 = vadd.xlane.f32.xlu1 %v560_v2  ;;  %1097 = vmatprep.subr.bf16.mxu0 %v5742_v33  ;;  %9083 = vst [vmem:[#allocation11_spill] sm:$0xff] %v6832_v24  ;;  %v6841_v33 = vsub.s32 0, %v6832_v24 }
  0x43   : > { %558 = vadd.xlane.f32.xlu0 %v557_v7 }
  0x44   : > { %1557 = vmatpush1.bf16.msra.mxu1 %v5717_v30  ;;  %9085 = vst [vmem:[#allocation13_spill] sm:$0xff] %v6841_v33 }
  0x45   : > { %1558 = vmatprep.subr.bf16.mxu1 %v5721_v31  ;;  %1098 = vmatpush1.bf16.msra.mxu0 %v5744_v36  ;;  %v6835_v31 = vsub.s32 1, %v6832_v24 }
  0x46   : > { %567 = vadd.xlane.f32.xlu1 %v566_v18  ;;  %1099 = vmatprep.subr.bf16.mxu0 %v5748_v37 }
  0x47   : > { %564 = vadd.xlane.f32.xlu0 %v563_v21  ;;  %9084 = vst [vmem:[#allocation12_spill] sm:$0xff] %v6835_v31 }
  0x48   : > { %1559 = vmatpush1.bf16.msra.mxu1 %v5723_v34 }
  0x49   : > { %1560 = vmatprep.subr.bf16.mxu1 %v5727_v35  ;;  %1100 = vmatpush1.bf16.msra.mxu0 %v5750_v40 }
  0x4a   : > { %573 = vadd.xlane.f32.xlu1 %v572_v28  ;;  %1101 = vmatprep.subr.bf16.mxu0 %v5754_v41  ;;  %v6844_v41 = vrot.slane %v534_v32, %v6835_v31 }
  0x4b   : > { %570 = vadd.xlane.f32.xlu0 %v569_v29 }
  0x4c   : > { %1561 = vmatpush1.bf16.msra.mxu1 %v5729_v38 }
  0x4d   : > { %1562 = vmatprep.subr.bf16.mxu1 %v5733_v39  ;;  %1102 = vmatpush1.bf16.msra.mxu0 %v5756_v43 }
  0x4e   : > { %1103 = vmatprep.subr.bf16.mxu0 %v5760_v45  ;;  %v6242_v45 = vld [vmem:[%s9022_s1] sm:$0xff] }
  0x50   : > { %1563 = vmatpush1.bf16.msra.mxu1 %v5735_v42 }
  0x51   : > { %1564 = vmatprep.subr.bf16.mxu1 %v5739_v44  ;;  %1104 = vmatpush1.bf16.msra.mxu0 %v5762_v47  ;;  %v6848_v44 = vrot.slane %v534_v32, %v6841_v33 }
  0x52   : > { %1105 = vmatprep.subr.bf16.mxu0 %v5763_v49 }
  0x54   : > { %1565 = vmatpush1.bf16.msra.mxu1 %v5741_v46 }
  0x55   : > { %1566 = vmatprep.subr.bf16.mxu1 %v5745_v48  ;;  %1106 = vmatpush1.bf16.msra.mxu0 %v5765_v51 }
  0x56   : > { %1107 = vmatprep.subr.bf16.mxu0 %v5766_v53 }
  0x58   : > { %1567 = vmatpush1.bf16.msra.mxu1 %v5747_v50 }
  0x59   : > { %1568 = vmatprep.subr.bf16.mxu1 %v5751_v52  ;;  %1108 = vmatpush1.bf16.msra.mxu0 %v5768_v56 }
  0x5a   : > { %1109 = vmatprep.subr.bf16.mxu0 %v5769_v57 }
  0x5c   : > { %1569 = vmatpush1.bf16.msra.mxu1 %v5753_v54 }
  0x5d   : > { %1570 = vmatprep.subr.bf16.mxu1 %v5757_v55  ;;  %1110 = vmatpush1.bf16.msra.mxu0 %v5771_v60 }
  0x5e   : > { %1111 = vmatprep.subr.bf16.mxu0 %v5772_v61 }
  0x60   : > { %1571 = vmatpush1.bf16.msra.mxu1 %v5759_v58 }
  0x61   : > { %1112 = vmatpush1.bf16.msra.mxu0 %v5774_v62 }
  0x62   : > { %1113 = vmatprep.subr.bf16.mxu0 %v5775_v63 }
  0x65   : > { %1114 = vmatpush1.bf16.msra.mxu0 %v5777_v0 }
  0x66   : > { %1653 = vmatprep.subr.bf16.mxu0 %v5780_v1 }
  0xab   : > { %v723_v2 = vpop.xlane.xlu1 %722 }
  0xac   : > { %v765_v3 = vmul.f32 0.00390625, %v723_v2  ;;  %v717_v4 = vpop.xlane.xlu0 %716 }
  0xad   : > { %v763_v6 = vmul.f32 0.00390625, %v717_v4 }
  0xae   : > { %v781_v7 = vadd.f32 1e-06, %v765_v3  ;;  %v6244_v3 = vld [vmem:[%s9022_s1 + $0x30] sm:$0xff] }
  0xaf   : > { %v779_v9 = vadd.f32 1e-06, %v763_v6  ;;  %v726_v10 = vpop.xlane.xlu1 %725 }
  0xb0   : > { %v766_v14 = vmul.f32 0.00390625, %v726_v10  ;;  %v720_v15 = vpop.xlane.xlu0 %719  ;;  %v6246_v10 = vld [vmem:[%s9022_s1 + $0x58] sm:$0xff] }
  0xb1   : > { %5970 = vrsqrt.f32 %v779_v9  ;;  %v764_v16 = vmul.f32 0.00390625, %v720_v15 }
  0xb2   : > { %v782_v18 = vadd.f32 1e-06, %v766_v14  ;;  %5972 = vrsqrt.f32 %v781_v7  ;;  %v6245_v7 = vld [vmem:[%s9022_s1 + $0x48] sm:$0xff] }
  0xb3   : > { %v780_v19 = vadd.f32 1e-06, %v764_v16  ;;  %v732_v20 = vpop.xlane.xlu1 %731 }
  0xb4   : > { %5974 = vrsqrt.f32 %v782_v18  ;;  %v768_v21 = vmul.f32 0.00390625, %v732_v20  ;;  %v729_v22 = vpop.xlane.xlu0 %728  ;;  %v6247_v18 = vld [vmem:[%s9022_s1 + $0x20] sm:$0xff] }
  0xb5   : > { %5976 = vrsqrt.f32 %v780_v19  ;;  %v767_v23 = vmul.f32 0.00390625, %v729_v22 }
  0xb6   : > { %v784_v25 = vadd.f32 1e-06, %v768_v21 }
  0xb7   : > { %v783_v26 = vadd.f32 1e-06, %v767_v23  ;;  %v738_v27 = vpop.xlane.xlu1 %737 }
  0xb8   : > { %5978 = vrsqrt.f32 %v784_v25  ;;  %v770_v28 = vmul.f32 0.00390625, %v738_v27  ;;  %v735_v29 = vpop.xlane.xlu0 %734 }
  0xb9   : > { %5980 = vrsqrt.f32 %v783_v26  ;;  %v769_v30 = vmul.f32 0.00390625, %v735_v29 }
  0xba   : > { %v786_v36 = vadd.f32 1e-06, %v770_v28 }
  0xbb   : > { %v5971_v34 = vpop.eup %5970  ;;  %v744_v35 = vpop.xlane.xlu1 %743  ;;  %v785_v39 = vadd.f32 1e-06, %v769_v30 }
  0xbc   : > { %v741_v37 = vpop.xlane.xlu0 %740  ;;  %v5973_v38 = vpop.eup %5972  ;;  %v772_v40 = vmul.f32 0.00390625, %v744_v35  ;;  %v812_v42 = vmul.f32 %v5971_v34, %v6503_v5  ;;  %v811_v46 = vmul.f32 %v6242_v45, %v5971_v34  ;;  %5982 = vrsqrt.f32 %v786_v36  ;;  %v6243_v5 = vld [vmem:[%s9022_s1 + $0x28] sm:$0xff] }
  0xbd   : > { %v816_v53 = vmul.f32 %v6243_v5, %v5973_v38  ;;  %5984 = vrsqrt.f32 %v785_v39  ;;  %v771_v55 = vmul.f32 0.00390625, %v741_v37  ;;  %v815_v19 = vmul.f32 %v6247_v18, %v5973_v38 }
  0xbe   : > { %v5975_v43 = vpop.eup %5974  ;;  %v788_v54 = vadd.f32 1e-06, %v772_v40  ;;  %v844_v56 = vmul.f32 %v812_v42, %v6844_v41  ;;  %v6248_v40 = vld [vmem:[%s9022_s1 + $0x40] sm:$0xff] }
  0xbf   : > { %v5977_v47 = vpop.eup %5976  ;;  %v750_v48 = vpop.xlane.xlu1 %749  ;;  %v818_v49 = vmul.f32 %v5975_v43, %v6511_v8  ;;  %v843_v8 = vmul.f32 %v811_v46, %v6848_v44  ;;  %v848_v1 = vmul.f32 %v816_v53, %v6844_v41  ;;  %v787_v2 = vadd.f32 1e-06, %v771_v55 }
  0xc0   : > { %v747_v50 = vpop.xlane.xlu0 %746  ;;  %v814_v51 = vmul.f32 %v5977_v47, %v6525_v13  ;;  %v813_v52 = vmul.f32 %v5977_v47, %v6520_v12  ;;  %v817_v4 = vmul.f32 %v6244_v3, %v5975_v43  ;;  %5986 = vrsqrt.f32 %v788_v54  ;;  %v6249_v43 = vld [vmem:[%s9022_s1 + $0x50] sm:$0xff] }
  0xc1   : > { %v850_v13 = vmul.f32 %v818_v49, %v6844_v41  ;;  %v774_v15 = vmul.f32 0.00390625, %v750_v48  ;;  %5988 = vrsqrt.f32 %v787_v2  ;;  %v773_v22 = vmul.f32 0.00390625, %v747_v50  ;;  %v6250_v50 = vld [vmem:[%s9022_s1 + $0x68] sm:$0xff] }
  0xc2   : > { %v5979_v57 = vpop.eup %5978  ;;  %v846_v58 = vmul.f32 %v814_v51, %v6844_v41  ;;  %v845_v60 = vmul.f32 %v813_v52, %v6848_v44  ;;  %v849_v25 = vmul.f32 %v817_v4, %v6848_v44  ;;  %v847_v38 = vmul.f32 %v815_v19, %v6848_v44  ;;  %v6251_v52 = vld [vmem:[%s9022_s1 + $0x78] sm:$0xff] }
  0xc3   : > { %v5981_v12 = vpop.eup %5980  ;;  %v756_v61 = vpop.xlane.xlu1 %755  ;;  %v6873_v6 = vpack.c.bf16 %v850_v13, %v848_v1  ;;  %v822_v14 = vmul.f32 %v6246_v10, %v5979_v57  ;;  %v790_v34 = vadd.f32 1e-06, %v774_v15  ;;  %v821_v45 = vmul.f32 %v6249_v43, %v5979_v57  ;;  %v6254_v10 = vld [vmem:[%s9022_s1 + $0x98] sm:$0xff]  ;;  %v6259_v43 = vld [vmem:[%s6595_s19] sm:$0xff] }
  0xc4   : > { %v753_v62 = vpop.xlane.xlu0 %752  ;;  %v6864_v63 = vpack.c.bf16 %v846_v58, %v844_v56  ;;  %v6866_v0 = vpack.c.bf16 %v845_v60, %v843_v8  ;;  %v820_v9 = vmul.f32 %v6245_v7, %v5981_v12  ;;  %v776_v27 = vmul.f32 0.00390625, %v756_v61  ;;  %v6252_v60 = vld [vmem:[%s9022_s1 + $0x70] sm:$0xff]  ;;  %v6253_v61 = vld [vmem:[%s9022_s1 + $0x60] sm:$0xff] }
  0xc5   : > { %v854_v30 = vmul.f32 %v822_v14, %v6844_v41  ;;  %v775_v35 = vmul.f32 0.00390625, %v753_v62  ;;  %v819_v42 = vmul.f32 %v6248_v40, %v5981_v12  ;;  %v789_v46 = vadd.f32 1e-06, %v773_v22  ;;  %v6258_v40 = vld [vmem:[%s6595_s19 + $0x8] sm:$0xff] }
  0xc6   : > { %1572 = vmatprep.mubr.bf16.mxu1 %v6864_v63  ;;  %v5983_v26 = vpop.eup %5982  ;;  %v852_v29 = vmul.f32 %v820_v9, %v6844_v41  ;;  %v6896_v47 = vpack.c.bf16 %v849_v25, %v847_v38  ;;  %v792_v48 = vadd.f32 1e-06, %v776_v27  ;;  %v853_v8 = vmul.f32 %v821_v45, %v6848_v44 }
  0xc7   : > { %1573 = vmatmul.mubr.bf16.vlgmr.msra.gmra.mrb[0].mxu1 %v6866_v0  ;;  %v556_v16 = vpop.xlane.xlu1 %555  ;;  %v5985_v32 = vpop.eup %5984  ;;  %v826_v5 = vmul.f32 %v6251_v52, %v5983_v26  ;;  %v791_v53 = vadd.f32 1e-06, %v775_v35  ;;  %v851_v58 = vmul.f32 %v819_v42, %v6848_v44  ;;  %v825_v13 = vmul.f32 %v6252_v60, %v5983_v26 }
  0xc8   : > { %1582 = vmatprep.mubr.bf16.mxu1 %v6873_v6  ;;  %v577_v20 = vmul.f32 0.00390625, %v556_v16  ;;  %v553_v21 = vpop.xlane.xlu0 %552  ;;  %v6898_v49 = vpack.c.bf16 %v854_v30, %v852_v29  ;;  %v824_v51 = vmul.f32 %v6250_v50, %v5985_v32  ;;  %v823_v62 = vmul.f32 %v6253_v61, %v5985_v32 }
  0xc9   : > { %v576_v23 = vmul.f32 0.00390625, %v553_v21  ;;  %v858_v3 = vmul.f32 %v826_v5, %v6844_v41  ;;  %v6924_v15 = vpack.c.bf16 %v853_v8, %v851_v58  ;;  %v857_v19 = vmul.f32 %v825_v13, %v6848_v44 }
  0xca   : > { %v585_v28 = vadd.f32 1e-06, %v577_v20  ;;  %v6907_v55 = vpop.eup %5986  ;;  %v856_v2 = vmul.f32 %v824_v51, %v6844_v41  ;;  %v855_v22 = vmul.f32 %v823_v62, %v6848_v44  ;;  %v5778_v62 = vld [vmem:[%s9029_s8 + $0x8] ss:$16 sps:$4 sm:$0xff]  }
  0xcb   : > { %v584_v36 = vadd.f32 1e-06, %v576_v23  ;;  %v762_v37 = vpop.xlane.xlu1 %761  ;;  %v5989_v4 = vpop.eup %5988  ;;  %v830_v14 = vmul.f32 %v6254_v10, %v6907_v55 }
  0xcc   : > { %5990 = vrsqrt.f32 %v585_v28  ;;  %v759_v39 = vpop.xlane.xlu0 %758  ;;  %v778_v20 = vmul.f32 0.00390625, %v762_v37  ;;  %v6928_v26 = vpack.c.bf16 %v858_v3, %v856_v2  ;;  %v6255_v28 = vld [vmem:[%s9022_s1 + $0x88] sm:$0xff]  ;;  %v6952_v3 = vpack.c.bf16 %v857_v19, %v855_v22 }
  0xcd   : > { %5992 = vrsqrt.f32 %v584_v36  ;;  %v777_v25 = vmul.f32 0.00390625, %v759_v39  ;;  %v828_v29 = vmul.f32 %v6255_v28, %v5989_v4  ;;  %v6257_v36 = vld [vmem:[%s6595_s19 + $0x10] sm:$0xff]  ;;  %v862_v38 = vmul.f32 %v830_v14, %v6844_v41 }
  0xce   : > { %5994 = vrsqrt.f32 %v790_v34  ;;  %v6256_v34 = vld [vmem:[%s6595_s19 + $0x18] sm:$0xff]  ;;  %v794_v8 = vadd.f32 1e-06, %v778_v20  ;;  %v6261_v14 = vld [vmem:[%s9022_s1 + $0x90] sm:$0xff]  ;;  %v6262_v20 = vld [vmem:[%s9022_s1 + $0xa8] sm:$0xff] }
  0xcf   : > { %1583 = vmatmul.mubr.bf16.gmra.mrb[4].mxu1 %v6896_v47  ;;  %v562_v54 = vpop.xlane.xlu1 %561  ;;  %5996 = vrsqrt.f32 %v789_v46 }
  0xd0   : > { %1592 = vmatprep.mubr.bf16.mxu1 %v6898_v49  ;;  %v579_v56 = vmul.f32 0.00390625, %v562_v54  ;;  %v559_v57 = vpop.xlane.xlu0 %558  ;;  %5998 = vrsqrt.f32 %v792_v48 }
  0xd1   : > { %v578_v12 = vmul.f32 0.00390625, %v559_v57  ;;  %6000 = vrsqrt.f32 %v791_v53 }
  0xd2   : > { %v587_v1 = vadd.f32 1e-06, %v579_v56  ;;  %v860_v56 = vmul.f32 %v828_v29, %v6844_v41  ;;  %v5781_v29 = vld [vmem:[%s9029_s8 + $0x28] ss:$16 sps:$4 sm:$0xff]  }
  0xd3   : > { %v586_v7 = vadd.f32 1e-06, %v578_v12  ;;  %v568_v9 = vpop.xlane.xlu1 %567  ;;  %v793_v12 = vadd.f32 1e-06, %v777_v25 }
  0xd4   : > { %6002 = vrsqrt.f32 %v587_v1  ;;  %v581_v16 = vmul.f32 0.00390625, %v568_v9  ;;  %v565_v18 = vpop.xlane.xlu0 %564  ;;  %v6260_v9 = vld [vmem:[%s9022_s1 + $0x80] sm:$0xff]  ;;  %v6964_v19 = vpack.c.bf16 %v862_v38, %v860_v56 }
  0xd5   : > { %6004 = vrsqrt.f32 %v586_v7  ;;  %v580_v21 = vmul.f32 0.00390625, %v565_v18  ;;  %v5783_v7 = vld [vmem:[%s9029_s8 + $0x2c] ss:$16 sps:$4 sm:$0xff]   ;;  %v827_v10 = vmul.f32 %v6260_v9, %v5989_v4 }
  0xd6   : > { %v5991_v23 = vpop.eup %5990  ;;  %v589_v27 = vadd.f32 1e-06, %v581_v16  ;;  %v829_v16 = vmul.f32 %v6261_v14, %v6907_v55  ;;  %v6263_v4 = vld [vmem:[%s9022_s1 + $0xb8] sm:$0xff] }
  0xd7   : > { %v5993_v30 = vpop.eup %5992  ;;  %1593 = vmatmul.mubr.bf16.gmra.mrb[8].mxu1 %v6924_v15  ;;  %v588_v32 = vadd.f32 1e-06, %v580_v21  ;;  %v603_v35 = vmul.f32 %v6256_v34, %v5991_v23  ;;  %v602_v37 = vmul.f32 %v6257_v36, %v5991_v23  ;;  %v574_v39 = vpop.xlane.xlu1 %573  ;;  %v6264_v55 = vld [vmem:[%s6595_s19 + $0x38] sm:$0xff]  ;;  %v6267_v34 = vld [vmem:[%s6595_s19 + $0x20] sm:$0xff]  ;;  %v6268_v36 = vld [vmem:[%s9022_s1 + $0xb0] sm:$0xff] }
  0xd8   : > { %1602 = vmatprep.mubr.bf16.mxu1 %v6928_v26  ;;  %6006 = vrsqrt.f32 %v589_v27  ;;  %v601_v42 = vmul.f32 %v6258_v40, %v5993_v30  ;;  %v600_v45 = vmul.f32 %v6259_v43, %v5993_v30  ;;  %v583_v46 = vmul.f32 0.00390625, %v574_v39  ;;  %v571_v48 = vpop.xlane.xlu0 %570  ;;  %v5995_v50 = vpop.eup %5994  ;;  %v6265_v27 = vld [vmem:[%s6595_s19 + $0x30] sm:$0xff]  ;;  %v6266_v30 = vld [vmem:[%s6595_s19 + $0x28] sm:$0xff] }
  0xd9   : > { %6008 = vrsqrt.f32 %v588_v32  ;;  %v630_v51 = vmul.f32 %v6844_v41, %v603_v35  ;;  %v629_v52 = vmul.f32 %v6848_v44, %v602_v37  ;;  %v582_v5 = vmul.f32 0.00390625, %v571_v48  ;;  %v5997_v58 = vpop.eup %5996  ;;  %v5786_v39 = vld [vmem:[%s9029_s8 + $0x4c] ss:$16 sps:$4 sm:$0xff]  }
  0xda   : > { %v628_v53 = vmul.f32 %v6844_v41, %v601_v42  ;;  %v627_v54 = vmul.f32 %v6848_v44, %v600_v45  ;;  %v591_v57 = vadd.f32 1e-06, %v583_v46  ;;  %v6945_v13 = vpop.eup %5998  ;;  %v832_v21 = vmul.f32 %v6262_v20, %v5997_v58  ;;  %v6273_v20 = vld [vmem:[%s9022_s1 + $0xc8] sm:$0xff] }
  0xdb   : > { %v590_v60 = vadd.f32 1e-06, %v582_v5  ;;  %v6950_v2 = vpop.eup %6000  ;;  %v834_v22 = vmul.f32 %v6263_v4, %v5995_v50  ;;  %v833_v37 = vmul.f32 %v6268_v36, %v5995_v50  ;;  %v859_v42 = vmul.f32 %v827_v10, %v6848_v44  ;;  %v6269_v5 = vld [vmem:[%s6595_s19 + $0x58] sm:$0xff] }
  0xdc   : > { %v644_v61 = vpack.c.bf16 %v630_v51, %v628_v53  ;;  %v643_v1 = vpack.c.bf16 %v629_v52, %v627_v54  ;;  %6010 = vrsqrt.f32 %v591_v57  ;;  %v861_v43 = vmul.f32 %v829_v16, %v6848_v44  ;;  %v6270_v54 = vld [vmem:[%s6595_s19 + $0x50] sm:$0xff]  ;;  %v6271_v57 = vld [vmem:[%s9022_s1 + $0xa0] sm:$0xff]  ;;  %v5789_v10 = vld [vmem:[%s9029_s8 + $0x6c] ss:$16 sps:$4 sm:$0xff]  }
  0xdd   : > { %6012 = vrsqrt.f32 %v590_v60  ;;  %v864_v50 = vmul.f32 %v832_v21, %v6844_v41  ;;  %v866_v51 = vmul.f32 %v834_v22, %v6844_v41  ;;  %v865_v14 = vmul.f32 %v833_v37, %v6848_v44  ;;  %v6274_v4 = vld [vmem:[%s9022_s1 + $0xd8] sm:$0xff] }
  0xde   : > { %v6003_v18 = vpop.eup %6002  ;;  %1115 = vmatprep.mubr.bf16.mxu0 %v644_v61  ;;  %6014 = vrsqrt.f32 %v794_v8  ;;  %v831_v8 = vmul.f32 %v6271_v57, %v5997_v58  ;;  %v7005_v9 = vpack.c.bf16 %v861_v43, %v859_v42  ;;  %v836_v21 = vmul.f32 %v6273_v20, %v6950_v2  ;;  %v5792_v36 = vld [vmem:[%s9029_s8 + $0x8c] ss:$16 sps:$4 sm:$0xff]   ;;  %v6282_v20 = vld [vmem:[%s9022_s1 + $0xe0] sm:$0xff] }
  0xdf   : > { %v6005_v23 = vpop.eup %6004  ;;  %1116 = vmatmul.mubr.bf16.vlgmr.msra.gmra.mrb[0].mxu0 %v643_v1  ;;  %1603 = vmatmul.mubr.bf16.gmra.mrb[12].mxu1 %v6952_v3  ;;  %v607_v25 = vmul.f32 %v6264_v55, %v6003_v18  ;;  %v606_v28 = vmul.f32 %v6265_v27, %v6003_v18  ;;  %6016 = vrsqrt.f32 %v793_v12  ;;  %v5784_v12 = vld [vmem:[%s9029_s8 + $0x48] ss:$16 sps:$4 sm:$0xff]   ;;  %v6272_v1 = vld [vmem:[%s6595_s19 + $0x40] sm:$0xff]  ;;  %v7012_v18 = vpack.c.bf16 %v866_v51, %v864_v50 }
  0xe0   : > { %1654 = vmatpush1.bf16.msra.mxu0 %v5778_v62  ;;  %1612 = vmatprep.mubr.bf16.mxu1 %v6964_v19  ;;  %v605_v32 = vmul.f32 %v6266_v30, %v6005_v23  ;;  %v604_v35 = vmul.f32 %v6267_v34, %v6005_v23  ;;  %v838_v22 = vmul.f32 %v6274_v4, %v6945_v13  ;;  %v6275_v27 = vld [vmem:[%s6595_s19 + $0x78] sm:$0xff]  ;;  %v6283_v4 = vld [vmem:[%s9022_s1 + $0xf0] sm:$0xff] }
  0xe1   : > { %1655 = vmatprep.subr.bf16.mxu0 %v5783_v7  ;;  %v634_v38 = vmul.f32 %v6844_v41, %v607_v25  ;;  %v633_v40 = vmul.f32 %v6848_v44, %v606_v28  ;;  %v5790_v50 = vld [vmem:[%s9029_s8 + $0x88] ss:$16 sps:$4 sm:$0xff]  }
  0xe2   : > { %v6007_v45 = vpop.eup %6006  ;;  %v632_v46 = vmul.f32 %v6844_v41, %v605_v32  ;;  %v631_v48 = vmul.f32 %v6848_v44, %v604_v35  ;;  %v863_v32 = vmul.f32 %v831_v8, %v6848_v44  ;;  %v6280_v8 = vld [vmem:[%s9022_s1 + $0xe8] sm:$0xff] }
  0xe3   : > { %v6009_v52 = vpop.eup %6008  ;;  %v611_v53 = vmul.f32 %v6269_v5, %v6007_v45  ;;  %v610_v56 = vmul.f32 %v6270_v54, %v6007_v45  ;;  %v6276_v45 = vld [vmem:[%s6595_s19 + $0x60] sm:$0xff] }
  0xe4   : > { %1656 = vmatpush1.bf16.msra.mxu0 %v5781_v29  ;;  %v646_v60 = vpack.c.bf16 %v634_v38, %v632_v46  ;;  %v645_v61 = vpack.c.bf16 %v633_v40, %v631_v48  ;;  %v609_v62 = vmul.f32 %v6009_v52, %v6678_v59  ;;  %v608_v7 = vmul.f32 %v6272_v1, %v6009_v52  ;;  %v5787_v29 = vld [vmem:[%s9029_s8 + $0x68] ss:$16 sps:$4 sm:$0xff]   ;;  %v6278_v52 = vld [vmem:[%s9022_s1 + $0xc0] sm:$0xff] }
  0xe5   : > { %1657 = vmatprep.subr.bf16.mxu0 %v5786_v39  ;;  %v638_v58 = vmul.f32 %v6844_v41, %v611_v53  ;;  %v637_v25 = vmul.f32 %v6848_v44, %v610_v56  ;;  %v868_v39 = vmul.f32 %v836_v21, %v6844_v41  ;;  %v870_v40 = vmul.f32 %v838_v22, %v6844_v41  ;;  %v5795_v53 = vld [vmem:[%s9029_s8 + $0xac] ss:$16 sps:$4 sm:$0xff]   ;;  %v6279_v56 = vld [vmem:[%s9022_s1 + $0xd0] sm:$0xff] }
  0xe6   : > { %v6011_v16 = vpop.eup %6010  ;;  %1125 = vmatprep.mubr.bf16.mxu0 %v646_v60  ;;  %v636_v59 = vmul.f32 %v6844_v41, %v609_v62  ;;  %v635_v55 = vmul.f32 %v6848_v44, %v608_v7  ;;  %v7045_v51 = vpack.c.bf16 %v865_v14, %v863_v32  ;;  %v835_v5 = vmul.f32 %v6278_v52, %v6950_v2  ;;  %v6281_v2 = vld [vmem:[%s9022_s1 + $0xf8] sm:$0xff] }
  0xe7   : > { %v6013_v23 = vpop.eup %6012  ;;  %1126 = vmatmul.mubr.bf16.gmra.mrb[4].mxu0 %v645_v61  ;;  %1613 = vmatmul.mubr.bf16.gmra.mrb[16].mxu1 %v7005_v9  ;;  %v615_v28 = vmul.f32 %v6275_v27, %v6011_v16  ;;  %v837_v57 = vmul.f32 %v6279_v56, %v6945_v13  ;;  %v7064_v61 = vpack.c.bf16 %v870_v40, %v868_v39  ;;  %v5793_v13 = vld [vmem:[%s9029_s8 + $0xa8] ss:$16 sps:$4 sm:$0xff]   ;;  %v5816_v39 = vld [vmem:[%s9029_s8 + $0x18c] ss:$16 sps:$4 sm:$0xff]  }
  0xe8   : > { %1658 = vmatpush1.bf16.msra.mxu0 %v5784_v12  ;;  %1622 = vmatprep.mubr.bf16.mxu1 %v7012_v18  ;;  %v648_v30 = vpack.c.bf16 %v638_v58, %v636_v59  ;;  %v613_v34 = vmul.f32 %v6013_v23, %v6698_v11  ;;  %v6015_v35 = vpop.eup %6014  ;;  %v647_v43 = vpack.c.bf16 %v637_v25, %v635_v55  ;;  %v6277_v11 = vld [vmem:[%s6595_s19 + $0x70] sm:$0xff]  ;;  %v5814_v40 = vld [vmem:[%s9029_s8 + $0x188] ss:$16 sps:$4 sm:$0xff]  }
  0xe9   : > { %1659 = vmatprep.subr.bf16.mxu0 %v5789_v10  ;;  %v642_v37 = vmul.f32 %v6844_v41, %v615_v28  ;;  %v6017_v38 = vpop.eup %6016  ;;  %v612_v46 = vmul.f32 %v6276_v45, %v6013_v23  ;;  %v614_v48 = vmul.f32 %v6277_v11, %v6011_v16  ;;  %v842_v12 = vmul.f32 %v6281_v2, %v6015_v35  ;;  %v5798_v10 = vld [vmem:[%s9029_s8 + $0xcc] ss:$16 sps:$4 sm:$0xff]   ;;  %v5796_v23 = vld [vmem:[%s9029_s8 + $0xc8] ss:$16 sps:$4 sm:$0xff]  }
  0xea   : > { %1135 = vmatprep.mubr.bf16.mxu0 %v648_v30  ;;  %v640_v42 = vmul.f32 %v6844_v41, %v613_v34  ;;  %v840_v60 = vmul.f32 %v6280_v8, %v6017_v38  ;;  %v867_v7 = vmul.f32 %v835_v5, %v6848_v44  ;;  %v869_v58 = vmul.f32 %v837_v57, %v6848_v44  ;;  %v5804_v30 = vld [vmem:[%s9029_s8 + $0x10c] ss:$16 sps:$4 sm:$0xff]   ;;  %v5802_v34 = vld [vmem:[%s9029_s8 + $0x108] ss:$16 sps:$4 sm:$0xff]  }
  0xeb   : > { %v639_v62 = vmul.f32 %v6848_v44, %v612_v46  ;;  %v641_v1 = vmul.f32 %v6848_v44, %v614_v48  ;;  %v874_v16 = vmul.f32 %v842_v12, %v6844_v41  ;;  %v839_v21 = vmul.f32 %v6282_v20, %v6017_v38  ;;  %v5811_v38 = vld [vmem:[%s9029_s8 + $0x168] ss:$16 sps:$4 sm:$0xff]   ;;  %v5822_v45 = vld [vmem:[%s9029_s8 + $0x1cc] ss:$16 sps:$4 sm:$0xff]  }
  0xec   : > { %1660 = vmatpush1.bf16.msra.mxu0 %v5787_v29  ;;  %v650_v54 = vpack.c.bf16 %v642_v37, %v640_v42  ;;  %v872_v14 = vmul.f32 %v840_v60, %v6844_v41  ;;  %v841_v22 = vmul.f32 %v6283_v4, %v6015_v35  ;;  %v887_v55 = vpack.c.bf16 %v869_v58, %v867_v7  ;;  %v5801_v41 = vld [vmem:[%s9029_s8 + $0xec] ss:$16 sps:$4 sm:$0xff]   ;;  %v5799_v29 = vld [vmem:[%s9029_s8 + $0xe8] ss:$16 sps:$4 sm:$0xff]   ;;  %v1798_v58 = vld [vmem:[%s7244_s28 + $0x20] sm:$0xff] }
  0xed   : > { %1661 = vmatprep.subr.bf16.mxu0 %v5792_v36  ;;  %v649_v59 = vpack.c.bf16 %v641_v1, %v639_v62  ;;  %v871_v27 = vmul.f32 %v839_v21, %v6848_v44  ;;  %v5810_v35 = vld [vmem:[%s9029_s8 + $0x14c] ss:$16 sps:$4 sm:$0xff]   ;;  %v5808_v36 = vld [vmem:[%s9029_s8 + $0x148] ss:$16 sps:$4 sm:$0xff]  }
  0xee   : > { %v890_v25 = vpack.c.bf16 %v874_v16, %v872_v14  ;;  %v873_v28 = vmul.f32 %v841_v22, %v6848_v44  ;;  %v5807_v44 = vld [vmem:[%s9029_s8 + $0x12c] ss:$16 sps:$4 sm:$0xff]   ;;  %v5820_v46 = vld [vmem:[%s9029_s8 + $0x1c8] ss:$16 sps:$4 sm:$0xff]  }
  0xef   : > { %1136 = vmatmul.mubr.bf16.gmra.mrb[8].mxu0 %v647_v43  ;;  %1623 = vmatmul.mubr.bf16.gmra.mrb[20].mxu1 %v7045_v51  ;;  %v5813_v37 = vld [vmem:[%s9029_s8 + $0x16c] ss:$16 sps:$4 sm:$0xff]   ;;  %v5817_v43 = vld [vmem:[%s9029_s8 + $0x1a8] ss:$16 sps:$4 sm:$0xff]  }
  0xf0   : > { %1662 = vmatpush1.bf16.msra.mxu0 %v5790_v50  ;;  %1632 = vmatprep.mubr.bf16.mxu1 %v7064_v61  ;;  %v889_v32 = vpack.c.bf16 %v873_v28, %v871_v27  ;;  %v5819_v42 = vld [vmem:[%s9029_s8 + $0x1ac] ss:$16 sps:$4 sm:$0xff]   ;;  %v5823_v48 = vld [vmem:[%s9029_s8 + $0x1e8] ss:$16 sps:$4 sm:$0xff]  }
  0xf1   : > { %1663 = vmatprep.subr.bf16.mxu0 %v5795_v53  ;;  %1145 = vmatprep.mubr.bf16.mxu0 %v650_v54  ;;  %v5825_v11 = vld [vmem:[%s9029_s8 + $0x1ec] ss:$16 sps:$4 sm:$0xff]  }
  0xf4   : > { %1664 = vmatpush1.bf16.msra.mxu0 %v5793_v13 }
  0xf5   : > { %1665 = vmatprep.subr.bf16.mxu0 %v5798_v10 }
  0xf7   : > { %1146 = vmatmul.mubr.bf16.gmra.mrb[12].mxu0 %v649_v59  ;;  %1633 = vmatmul.mubr.bf16.gmra.mrb[24].mxu1 %v887_v55  ;;  %v1799_v59 = vld [vmem:[%s7244_s28 + $0x28] sm:$0xff] }
  0xf8   : > { %1666 = vmatpush1.bf16.msra.mxu0 %v5796_v23  ;;  %1685 = vmatprep.mubr.bf16.mxu0 %v6864_v63  ;;  %v5805_v63 = vld [vmem:[%s9029_s8 + $0x128] ss:$16 sps:$4 sm:$0xff]  }
  0xf9   : > { %1667 = vmatprep.subr.bf16.mxu0 %v5801_v41  ;;  %1642 = vmatprep.mubr.bf16.mxu1 %v890_v25 }
  0xfc   : > { %1668 = vmatpush1.bf16.msra.mxu0 %v5799_v29  ;;  %v1800_v29 = vld [vmem:[%s7244_s28 + $0x30] sm:$0xff] }
  0xfd   : > { %1669 = vmatprep.subr.bf16.mxu0 %v5804_v30 }
  0xff   : > { %1643 = vmatmul.mubr.bf16.gmra.mrb[28].mxu1 %v889_v32 }
 0x100   : > { %1670 = vmatpush1.bf16.msra.mxu0 %v5802_v34  ;;  %v1801_v34 = vld [vmem:[%s7244_s28 + $0x38] sm:$0xff] }
 0x101   : > { %1671 = vmatprep.subr.bf16.mxu0 %v5807_v44 }
 0x104   : > { %1672 = vmatpush1.bf16.msra.mxu0 %v5805_v63 }
 0x105   : > { %1673 = vmatprep.subr.bf16.mxu0 %v5810_v35 }
 0x108   : > { %1674 = vmatpush1.bf16.msra.mxu0 %v5808_v36 }
 0x109   : > { %1675 = vmatprep.subr.bf16.mxu0 %v5813_v37 }
 0x10c   : > { %1676 = vmatpush1.bf16.msra.mxu0 %v5811_v38 }
 0x10d   : > { %1677 = vmatprep.subr.bf16.mxu0 %v5816_v39 }
 0x110   : > { %1678 = vmatpush1.bf16.msra.mxu0 %v5814_v40 }
 0x111   : > { %1679 = vmatprep.subr.bf16.mxu0 %v5819_v42 }
 0x114   : > { %1680 = vmatpush1.bf16.msra.mxu0 %v5817_v43 }
 0x115   : > { %1681 = vmatprep.subr.bf16.mxu0 %v5822_v45 }
 0x118   : > { %1682 = vmatpush1.bf16.msra.mxu0 %v5820_v46 }
 0x119   : > { %1683 = vmatprep.subr.bf16.mxu0 %v5825_v11 }
 0x11c   : > { %1684 = vmatpush1.bf16.msra.mxu0 %v5823_v48 }
 0x11f   : > { %1686 = vmatmul.mubr.bf16.vlgmr.msra.gmra.mrb[16].mxu0 %v6866_v0 }
 0x120   : > { %1695 = vmatprep.mubr.bf16.mxu0 %v6873_v6 }
 0x127   : > { %1696 = vmatmul.mubr.bf16.gmra.mrb[20].mxu0 %v6896_v47 }
 0x128   : > { %1705 = vmatprep.mubr.bf16.mxu0 %v6898_v49 }
 0x12f   : > { %1706 = vmatmul.mubr.bf16.gmra.mrb[24].mxu0 %v6924_v15 }
 0x130   : > { %1715 = vmatprep.mubr.bf16.mxu0 %v6928_v26 }
 0x137   : > { %1716 = vmatmul.mubr.bf16.gmra.mrb[28].mxu0 %v6952_v3 }
 0x138   : > { %1725 = vmatprep.mubr.bf16.mxu0 %v6964_v19 }
 0x13f   : > { %1726 = vmatmul.mubr.bf16.gmra.mrb[32].mxu0 %v7005_v9 }
 0x140   : > { %1735 = vmatprep.mubr.bf16.mxu0 %v7012_v18 }
 0x147   : > { %1736 = vmatmul.mubr.bf16.gmra.mrb[36].mxu0 %v7045_v51 }
 0x148   : > { %1745 = vmatprep.mubr.bf16.mxu0 %v7064_v61 }
 0x14f   : > { %1746 = vmatmul.mubr.bf16.gmra.mrb[40].mxu0 %v887_v55 }
 0x150   : > { %1755 = vmatprep.mubr.bf16.mxu0 %v890_v25 }
 0x157   : > { %1756 = vmatmul.mubr.bf16.gmra.mrb[44].mxu0 %v889_v32 }
 0x19a   : > { %v7158_v0 = vpop.f32.mrb[0].mxu1 }
 0x19b   : > { %v7160_v6 = vpop.f32.mrb[1].mxu1  ;;  %1902 = vrot.lane.b32.xlu1 %v7158_v0, %s6364_s21 }
 0x19c   : > { %v7164_v47 = vpop.f32.mrb[2].mxu1  ;;  %2304 = vrot.lane.b32.xlu0 %v7160_v6, %s6364_s21 }
 0x19d   : > { %v7168_v49 = vpop.f32.mrb[3].mxu1 }
 0x19f   : > { %1904 = vrot.lane.b32.xlu1 %v7164_v47, %s6364_s21 }
 0x1a2   : > { %v7172_v15 = vpop.f32.mrb[4].mxu1 }
 0x1a3   : > { %v7174_v26 = vpop.f32.mrb[5].mxu1  ;;  %2306 = vrot.lane.b32.xlu1 %v7168_v49, %s6364_s21  ;;  %1906 = vrot.lane.b32.xlu0 %v7172_v15, %s6364_s21 }
 0x1a4   : > { %v7180_v3 = vpop.f32.mrb[6].mxu1 }
 0x1a5   : > { %v7182_v19 = vpop.f32.mrb[7].mxu1 }
 0x1a7   : > { %1908 = vrot.lane.b32.xlu1 %v7180_v3, %s6364_s21 }
 0x1aa   : > { %v7186_v9 = vpop.f32.mrb[8].mxu1 }
 0x1ab   : > { %v7188_v18 = vpop.f32.mrb[9].mxu1 }
 0x1ac   : > { %v7190_v50 = vpop.f32.mrb[10].mxu1 }
 0x1ad   : > { %v7192_v51 = vpop.f32.mrb[11].mxu1 }
 0x1b2   : > { %v7194_v52 = vpop.f32.mrb[0].mxu0  ;;  %v7196_v5 = vpop.f32.mrb[12].mxu1 }
 0x1b3   : > { %v7198_v53 = vpop.f32.mrb[1].mxu0  ;;  %v7200_v54 = vpop.f32.mrb[13].mxu1 }
 0x1b4   : > { %v7202_v56 = vpop.f32.mrb[14].mxu1  ;;  %2220 = vrot.lane.b32.xlu0 %v7198_v53, %s6364_s21  ;;  %v7206_v57 = vpop.f32.mrb[2].mxu0 }
 0x1b5   : > { %v7208_v8 = vpop.f32.mrb[3].mxu0  ;;  %v7210_v60 = vpop.f32.mrb[15].mxu1 }
 0x1b6   : > { %2222 = vrot.lane.b32.xlu1 %v7208_v8, %s6364_s21 }
 0x1b8   : > { %2308 = vrot.lane.b32.xlu0 %v7174_v26, %s6364_s21 }
 0x1ba   : > { %v7216_v2 = vpop.f32.mrb[16].mxu1  ;;  %2310 = vrot.lane.b32.xlu1 %v7182_v19, %s6364_s21  ;;  %v7220_v12 = vpop.f32.mrb[4].mxu0 }
 0x1bb   : > { %v7222_v61 = vpop.f32.mrb[17].mxu1  ;;  %v7224_v62 = vpop.f32.mrb[5].mxu0 }
 0x1bc   : > { %v7227_v1 = vpop.f32.mrb[18].mxu1  ;;  %1910 = vrot.lane.b32.xlu0 %v7186_v9, %s6364_s21  ;;  %v7231_v13 = vpop.f32.mrb[6].mxu0 }
 0x1bd   : > { %v7233_v7 = vpop.f32.mrb[19].mxu1  ;;  %v7235_v10 = vpop.f32.mrb[7].mxu0 }
 0x1be   : > { %1912 = vrot.lane.b32.xlu1 %v7190_v50, %s6364_s21 }
 0x1c0   : > { %2312 = vrot.lane.b32.xlu0 %v7188_v18, %s6364_s21 }
 0x1c2   : > { %v7249_v14 = vpop.f32.mrb[20].mxu1  ;;  %2314 = vrot.lane.b32.xlu1 %v7192_v51, %s6364_s21  ;;  %v7253_v16 = vpop.f32.mrb[8].mxu0 }
 0x1c3   : > { %v7256_v20 = vpop.f32.mrb[21].mxu1  ;;  %v7259_v21 = vmul.f32 %v1798_v58, %v7253_v16  ;;  %v1139_v4 = vpop.f32.mrb[9].mxu0 }
 0x1c4   : > { %v7261_v22 = vpop.f32.mrb[22].mxu1  ;;  %1914 = vrot.lane.b32.xlu0 %v7196_v5, %s6364_s21  ;;  %v7265_v23 = vmul.f32 %v1798_v58, %v1139_v4  ;;  %v7267_v55 = vpop.f32.mrb[10].mxu0 }
 0x1c5   : > { %9086 = vst [vmem:[#allocation14_spill] sm:$0xff] %v7259_v21  ;;  %v7269_v41 = vpop.f32.mrb[23].mxu1  ;;  %v7272_v25 = vmul.f32 %v1799_v59, %v7267_v55  ;;  %v1143_v27 = vpop.f32.mrb[11].mxu0 }
 0x1c6   : > { %9087 = vst [vmem:[#allocation15_spill] sm:$0xff] %v7265_v23  ;;  %1916 = vrot.lane.b32.xlu1 %v7202_v56, %s6364_s21  ;;  %v7276_v28 = vmul.f32 %v1799_v59, %v1143_v27 }
 0x1c7   : > { %9088 = vst [vmem:[#allocation16_spill] sm:$0xff] %v7272_v25 }
 0x1c8   : > { %9089 = vst [vmem:[#allocation17_spill] sm:$0xff] %v7276_v28  ;;  %2316 = vrot.lane.b32.xlu0 %v7200_v54, %s6364_s21 }
 0x1ca   : > { %v7281_v30 = vpop.f32.mrb[24].mxu1  ;;  %2318 = vrot.lane.b32.xlu1 %v7210_v60, %s6364_s21  ;;  %v1147_v32 = vpop.f32.mrb[12].mxu0 }
 0x1cb   : > { %v7286_v44 = vpop.f32.mrb[25].mxu1  ;;  %v7288_v63 = vmul.f32 %v1800_v29, %v1147_v32  ;;  %v1149_v35 = vpop.f32.mrb[13].mxu0 }
 0x1cc   : > { %v7290_v36 = vpop.f32.mrb[26].mxu1  ;;  %1918 = vrot.lane.b32.xlu0 %v7216_v2, %s6364_s21  ;;  %v7294_v37 = vmul.f32 %v1800_v29, %v1149_v35  ;;  %v1151_v38 = vpop.f32.mrb[14].mxu0 }
 0x1cd   : > { %9090 = vst [vmem:[#allocation18_spill] sm:$0xff] %v7288_v63  ;;  %v7296_v39 = vpop.f32.mrb[27].mxu1  ;;  %v7298_v40 = vmul.f32 %v1801_v34, %v1151_v38  ;;  %v1153_v42 = vpop.f32.mrb[15].mxu0 }
 0x1ce   : > { %9091 = vst [vmem:[#allocation19_spill] sm:$0xff] %v7294_v37  ;;  %1920 = vrot.lane.b32.xlu1 %v7227_v1, %s6364_s21  ;;  %v7302_v43 = vmul.f32 %v1801_v34, %v1153_v42 }
 0x1cf   : > { %9092 = vst [vmem:[#allocation20_spill] sm:$0xff] %v7298_v40 }
 0x1d0   : > { %9093 = vst [vmem:[#allocation21_spill] sm:$0xff] %v7302_v43  ;;  %2320 = vrot.lane.b32.xlu0 %v7222_v61, %s6364_s21 }
 0x1d2   : > { %2322 = vrot.lane.b32.xlu1 %v7233_v7, %s6364_s21  ;;  %v7308_v45 = vpop.f32.mrb[28].mxu1 }
 0x1d3   : > { %v7310_v46 = vpop.f32.mrb[29].mxu1 }
 0x1d4   : > { %1922 = vrot.lane.b32.xlu0 %v7249_v14, %s6364_s21  ;;  %v7314_v11 = vpop.f32.mrb[30].mxu1 }
 0x1d5   : > { %v7316_v48 = vpop.f32.mrb[31].mxu1 }
 0x1d6   : > { %1924 = vrot.lane.b32.xlu1 %v7261_v22, %s6364_s21 }
 0x1d8   : > { %2324 = vrot.lane.b32.xlu0 %v7256_v20, %s6364_s21 }
 0x1da   : > { %2326 = vrot.lane.b32.xlu1 %v7269_v41, %s6364_s21 }
 0x1dc   : > { %1926 = vrot.lane.b32.xlu0 %v7281_v30, %s6364_s21 }
 0x1de   : > { %1928 = vrot.lane.b32.xlu1 %v7290_v36, %s6364_s21 }
 0x1e0   : > { %2328 = vrot.lane.b32.xlu0 %v7286_v44, %s6364_s21 }
 0x1e2   : > { %2330 = vrot.lane.b32.xlu1 %v7296_v39, %s6364_s21 }
 0x1e4   : > { %1930 = vrot.lane.b32.xlu0 %v7308_v45, %s6364_s21 }
 0x1e6   : > { %1932 = vrot.lane.b32.xlu1 %v7314_v11, %s6364_s21 }
 0x1e8   : > { %2332 = vrot.lane.b32.xlu0 %v7310_v46, %s6364_s21 }
 0x1ea   : > { %2334 = vrot.lane.b32.xlu1 %v7316_v48, %s6364_s21 }
 0x1ec   : > { %1818 = vrot.lane.b32.xlu0 %v7194_v52, %s6364_s21 }
 0x1ee   : > { %1820 = vrot.lane.b32.xlu1 %v7206_v57, %s6364_s21 }
 0x1f0   : > { %2224 = vrot.lane.b32.xlu0 %v7224_v62, %s6364_s21 }
 0x1f2   : > { %v1687_v58 = vpop.f32.mrb[16].mxu0  ;;  %2226 = vrot.lane.b32.xlu1 %v7235_v10, %s6364_s21 }
 0x1f3   : > { %v1689_v59 = vpop.f32.mrb[17].mxu0 }
 0x1f4   : > { %v1691_v29 = vpop.f32.mrb[18].mxu0  ;;  %1822 = vrot.lane.b32.xlu0 %v7220_v12, %s6364_s21 }
 0x1f5   : > { %v7350_v34 = vpack.c.bf16 %v1691_v29, %v1687_v58  ;;  %v1693_v17 = vpop.f32.mrb[19].mxu0 }
 0x1f6   : > { %v7352_v31 = vpack.c.bf16 %v1693_v17, %v1689_v59  ;;  %1824 = vrot.lane.b32.xlu1 %v7231_v13, %s6364_s21 }
 0x1f8   : > { %2228 = vrot.lane.b32.xlu0 %v1139_v4, %s6364_s21 }
 0x1fa   : > { %v1697_v33 = vpop.f32.mrb[20].mxu0  ;;  %2230 = vrot.lane.b32.xlu1 %v1143_v27, %s6364_s21 }
 0x1fb   : > { %v1699_v24 = vpop.f32.mrb[21].mxu0 }
 0x1fc   : > { %v1701_v40 = vpop.f32.mrb[22].mxu0  ;;  %1826 = vrot.lane.b32.xlu0 %v7253_v16, %s6364_s21 }
 0x1fd   : > { %v7360_v63 = vpack.c.bf16 %v1701_v40, %v1697_v33  ;;  %v1703_v58 = vpop.f32.mrb[23].mxu0 }
 0x1fe   : > { %v7362_v29 = vpack.c.bf16 %v1703_v58, %v1699_v24  ;;  %1828 = vrot.lane.b32.xlu1 %v7267_v55, %s6364_s21 }
 0x1ff   : > { %9094 = vst [vmem:[#allocation22_spill] sm:$0xff] %v7360_v63 }
 0x200   : > { %9095 = vst [vmem:[#allocation23_spill] sm:$0xff] %v7362_v29  ;;  %2232 = vrot.lane.b32.xlu0 %v1149_v35, %s6364_s21 }
 0x202   : > { %v1707_v17 = vpop.f32.mrb[24].mxu0  ;;  %2234 = vrot.lane.b32.xlu1 %v1153_v42, %s6364_s21  ;;  %v1870_v42 = vld [vmem:[%s9026_s5] sm:$0xff] }
 0x203   : > { %v1709_v4 = vpop.f32.mrb[25].mxu0 }
 0x204   : > { %v1711_v27 = vpop.f32.mrb[26].mxu0  ;;  %1830 = vrot.lane.b32.xlu0 %v1147_v32, %s6364_s21  ;;  %v1854_v32 = vld [vmem:[%s9025_s4] sm:$0xff] }
 0x205   : > { %v7369_v59 = vpack.c.bf16 %v1711_v27, %v1707_v17  ;;  %v1713_v16 = vpop.f32.mrb[27].mxu0  ;;  %v1871_v17 = vld [vmem:[%s9026_s5 + $0x8] sm:$0xff] }
 0x206   : > { %v7371_v33 = vpack.c.bf16 %v1713_v16, %v1709_v4  ;;  %1832 = vrot.lane.b32.xlu1 %v1151_v38, %s6364_s21  ;;  %v1855_v38 = vld [vmem:[%s9025_s4 + $0x8] sm:$0xff]  ;;  %s5110_s21 = sshll.u32 %s493_s27, 7 }
 0x207   : > { %9096 = vst [vmem:[#allocation24_spill] sm:$0xff] %v7369_v59 }
 0x208   : > { %9097 = vst [vmem:[#allocation25_spill] sm:$0xff] %v7371_v33  ;;  %v2288_v33 = vmul.f32 %v1854_v32, %v7160_v6  ;;  %v1857_v6 = vld [vmem:[%s9025_s4 + $0x18] sm:$0xff] }
 0x20a   : > { %v1717_v24 = vpop.f32.mrb[28].mxu0 }
 0x20b   : > { %v1719_v40 = vpop.f32.mrb[29].mxu0 }
 0x20c   : > { %v1721_v58 = vpop.f32.mrb[30].mxu0 }
 0x20d   : > { %v7374_v55 = vpack.c.bf16 %v1721_v58, %v1717_v24  ;;  %v1723_v35 = vpop.f32.mrb[31].mxu0  ;;  %v1903_v43 = vpop.permute.xlu1 %1902  ;;  %v1886_v24 = vmul.f32 %v1854_v32, %v7158_v0  ;;  %v2289_v0 = vmul.f32 %v1855_v38, %v7168_v49 }
 0x20e   : > { %v7379_v37 = vpack.c.bf16 %v1723_v35, %v1719_v40  ;;  %v1934_v4 = vmul.f32 %v1903_v43, %v1870_v42  ;;  %v2305_v27 = vpop.permute.xlu0 %2304  ;;  %v1887_v40 = vmul.f32 %v1855_v38, %v7164_v47  ;;  %v1872_v43 = vld [vmem:[%s9026_s5 + $0x10] sm:$0xff] }
 0x20f   : > { %9098 = vst [vmem:[#allocation26_spill] sm:$0xff] %v7374_v55  ;;  %v2336_v59 = vmul.f32 %v2305_v27, %v1870_v42  ;;  %v1856_v42 = vld [vmem:[%s9025_s4 + $0x10] sm:$0xff] }
 0x210   : > { %9099 = vst [vmem:[#allocation27_spill] sm:$0xff] %v7379_v37  ;;  %v1950_v37 = vadd.f32 %v1934_v4, %v1886_v24 }
 0x211   : > { %v1905_v16 = vpop.permute.xlu1 %1904  ;;  %v2352_v32 = vadd.f32 %v2336_v59, %v2288_v33 }
 0x212   : > { %v1935_v58 = vmul.f32 %v1905_v16, %v1871_v17  ;;  %v1727_v35 = vpop.f32.mrb[32].mxu0 }
 0x213   : > { %v1729_v55 = vpop.f32.mrb[33].mxu0 }
 0x214   : > { %v1951_v25 = vadd.f32 %v1935_v58, %v1887_v40  ;;  %v1731_v21 = vpop.f32.mrb[34].mxu0 }
 0x215   : > { %v7393_v63 = vpack.c.bf16 %v1731_v21, %v1727_v35  ;;  %v1733_v28 = vpop.f32.mrb[35].mxu0  ;;  %v2307_v23 = vpop.permute.xlu1 %2306  ;;  %v1873_v21 = vld [vmem:[%s9026_s5 + $0x18] sm:$0xff] }
 0x216   : > { %v7399_v47 = vpack.c.bf16 %v1733_v28, %v1729_v55  ;;  %v2337_v16 = vmul.f32 %v2307_v23, %v1871_v17  ;;  %v1907_v29 = vpop.permute.xlu0 %1906  ;;  %v1966_v4 = vpack.c.bf16 %v1951_v25, %v1950_v37  ;;  %v1888_v25 = vmul.f32 %v1856_v42, %v7172_v15 }
 0x217   : > { %v1936_v49 = vmul.f32 %v1907_v29, %v1872_v43  ;;  %v1889_v28 = vmul.f32 %v1857_v6, %v7180_v3 }
 0x218   : > { %v2353_v27 = vadd.f32 %v2337_v16, %v2289_v0  ;;  %5528 = vmatprep.subr.bf16.mxu1 %v1966_v4  ;;  %v7424_v16 = vld [vmem:[%s7421_s29] sm:$0xff] }
 0x219   : > { %5529 = vmatpush3.bf16.xpose.msra.mxu1 %v1966_v4  ;;  %v1909_v23 = vpop.permute.xlu1 %1908  ;;  %v1952_v24 = vadd.f32 %v1936_v49, %v1888_v25  ;;  %v7432_v49 = vld [vmem:[%s7244_s28 + $0x8] sm:$0xff] }
 0x21a   : > { %v1937_v37 = vmul.f32 %v1909_v23, %v1873_v21  ;;  %v1737_v55 = vpop.f32.mrb[36].mxu0  ;;  %v2368_v38 = vpack.c.bf16 %v2353_v27, %v2352_v32  ;;  %v7429_v27 = vld [vmem:[%s7244_s28] sm:$0xff] }
 0x21b   : > { %v1739_v17 = vpop.f32.mrb[37].mxu0 }
 0x21c   : > { %v1953_v40 = vadd.f32 %v1937_v37, %v1889_v28  ;;  %v1741_v58 = vpop.f32.mrb[38].mxu0  ;;  %5576 = vmatprep.subr.bf16.mxu0 %v2368_v38  ;;  %v7437_v28 = vld [vmem:[%s7421_s29 + $0x8] sm:$0xff] }
 0x21d   : > { %v7412_v59 = vpack.c.bf16 %v1741_v58, %v1737_v55  ;;  %v1743_v29 = vpop.f32.mrb[39].mxu0  ;;  %5577 = vmatpush3.bf16.xpose.msra.mxu0 %v2368_v38  ;;  %v2212_v38 = vmul.f32 %v7429_v27, %v7198_v53  ;;  %v2291_v53 = vmul.f32 %v1857_v6, %v7182_v19  ;;  %v1875_v19 = vld [vmem:[%s9026_s5 + $0x28] sm:$0xff] }
 0x21e   : > { %v7414_v33 = vpack.c.bf16 %v1743_v29, %v1739_v17  ;;  %v1967_v15 = vpack.c.bf16 %v1953_v40, %v1952_v24  ;;  %v2213_v17 = vmul.f32 %v7432_v49, %v7208_v8 }
 0x21f   : > { %9100 = vst [vmem:[#allocation28_spill] sm:$0xff] %v7412_v59 }
 0x220   : > { %5530 = vmatprep.subr.bf16.mxu1 %v1967_v15 }
 0x221   : > { %5531 = vmatpush3.bf16.xpose.msra.mxu1 %v1967_v15 }
 0x222   : > { %v1747_v3 = vpop.f32.mrb[40].mxu0 }
 0x223   : > { %v1749_v35 = vpop.f32.mrb[41].mxu0 }
 0x224   : > { %v1751_v0 = vpop.f32.mrb[42].mxu0 }
 0x225   : > { %v7426_v4 = vpack.c.bf16 %v1751_v0, %v1747_v3  ;;  %v1753_v32 = vpop.f32.mrb[43].mxu0  ;;  %v2290_v0 = vmul.f32 %v1856_v42, %v7174_v26  ;;  %v1859_v26 = vld [vmem:[%s9025_s4 + $0x28] sm:$0xff] }
 0x226   : > { %v7434_v23 = vpack.c.bf16 %v1753_v32, %v1749_v35  ;;  %v2221_v25 = vpop.permute.xlu0 %2220 }
 0x227   : > { %9101 = vst [vmem:[#allocation29_spill] sm:$0xff] %v7426_v4  ;;  %v2236_v37 = vmul.f32 %v2221_v25, %v7424_v16  ;;  %v1874_v25 = vld [vmem:[%s9026_s5 + $0x20] sm:$0xff] }
 0x228   : > { %9102 = vst [vmem:[#allocation30_spill] sm:$0xff] %v7434_v23  ;;  %v2223_v55 = vpop.permute.xlu1 %2222 }
 0x229   : > { %v2237_v24 = vmul.f32 %v2223_v55, %v7437_v28  ;;  %v2244_v29 = vadd.f32 %v2236_v37, %v2212_v38  ;;  %v1858_v37 = vld [vmem:[%s9025_s4 + $0x20] sm:$0xff] }
 0x22a   : > { %v1757_v40 = vpop.f32.mrb[44].mxu0  ;;  %v2309_v58 = vpop.permute.xlu0 %2308 }
 0x22b   : > { %v2245_v15 = vadd.f32 %v2237_v24, %v2213_v17  ;;  %v1759_v3 = vpop.f32.mrb[45].mxu0  ;;  %v2338_v35 = vmul.f32 %v2309_v58, %v1872_v43  ;;  %v1890_v17 = vmul.f32 %v1858_v37, %v7186_v9  ;;  %v1891_v24 = vmul.f32 %v1859_v26, %v7190_v50  ;;  %v1860_v50 = vld [vmem:[%s9025_s4 + $0x30] sm:$0xff] }
 0x22c   : > { %v1761_v32 = vpop.f32.mrb[46].mxu0  ;;  %v2311_v4 = vpop.permute.xlu1 %2310 }
 0x22d   : > { %v7450_v23 = vpack.c.bf16 %v1761_v32, %v1757_v40  ;;  %v2339_v8 = vmul.f32 %v2311_v4, %v1873_v21  ;;  %v1763_v55 = vpop.f32.mrb[47].mxu0  ;;  %v2252_v59 = vpack.c.bf16 %v2245_v15, %v2244_v29  ;;  %v2354_v6 = vadd.f32 %v2338_v35, %v2290_v0  ;;  %v1876_v35 = vld [vmem:[%s9026_s5 + $0x30] sm:$0xff] }
 0x22e   : > { %v7458_v43 = vpack.c.bf16 %v1763_v55, %v1759_v3  ;;  %v1911_v42 = vpop.permute.xlu0 %1910  ;;  %v2293_v0 = vmul.f32 %v1859_v26, %v7192_v51 }
 0x22f   : > { %v2355_v38 = vadd.f32 %v2339_v8, %v2291_v53  ;;  %v1938_v21 = vmul.f32 %v1911_v42, %v1874_v25  ;;  %5592 = vmatprep.mubr.bf16.mxu0 %v2252_v59  ;;  %v2292_v59 = vmul.f32 %v1858_v37, %v7188_v18  ;;  %v1877_v42 = vld [vmem:[%s9026_s5 + $0x38] sm:$0xff]  ;;  %v1892_v37 = vmul.f32 %v1860_v50, %v7196_v5 }
 0x230   : > { %v1913_v4 = vpop.permute.xlu1 %1912 }
 0x231   : > { %v1939_v40 = vmul.f32 %v1913_v4, %v1875_v19  ;;  %v2369_v58 = vpack.c.bf16 %v2355_v38, %v2354_v6  ;;  %v1954_v15 = vadd.f32 %v1938_v21, %v1890_v17 }
 0x232   : > { %v2313_v29 = vpop.permute.xlu0 %2312 }
 0x233   : > { %v1955_v3 = vadd.f32 %v1939_v40, %v1891_v24  ;;  %v2340_v32 = vmul.f32 %v2313_v29, %v1874_v25  ;;  %5578 = vmatprep.subr.bf16.mxu0 %v2369_v58  ;;  %v1861_v25 = vld [vmem:[%s9025_s4 + $0x38] sm:$0xff]  ;;  %v1878_v29 = vld [vmem:[%s9026_s5 + $0x40] sm:$0xff] }
 0x234   : > { %v2315_v55 = vpop.permute.xlu1 %2314  ;;  %5579 = vmatpush3.bf16.xpose.msra.mxu0 %v2369_v58  ;;  %v1893_v26 = vmul.f32 %v1861_v25, %v7202_v56  ;;  %v1862_v56 = vld [vmem:[%s9025_s4 + $0x40] sm:$0xff] }
 0x235   : > { %v2341_v9 = vmul.f32 %v2315_v55, %v1875_v19  ;;  %v1968_v53 = vpack.c.bf16 %v1955_v3, %v1954_v15  ;;  %v2356_v6 = vadd.f32 %v2340_v32, %v2292_v59  ;;  %v2294_v15 = vmul.f32 %v1860_v50, %v7200_v54  ;;  %v1863_v55 = vld [vmem:[%s9025_s4 + $0x48] sm:$0xff] }
 0x236   : > { %v1915_v8 = vpop.permute.xlu0 %1914  ;;  %v2295_v3 = vmul.f32 %v1861_v25, %v7210_v60  ;;  %v1879_v59 = vld [vmem:[%s9026_s5 + $0x48] sm:$0xff]  ;;  %v1895_v50 = vmul.f32 %v1863_v55, %v7227_v1  ;;  %v1864_v1 = vld [vmem:[%s9025_s4 + $0x50] sm:$0xff] }
 0x237   : > { %v2357_v38 = vadd.f32 %v2341_v9, %v2293_v0  ;;  %v1940_v18 = vmul.f32 %v1915_v8, %v1876_v35  ;;  %5532 = vmatprep.subr.bf16.mxu1 %v1968_v53 }
 0x238   : > { %v1917_v51 = vpop.permute.xlu1 %1916  ;;  %5533 = vmatpush3.bf16.xpose.msra.mxu1 %v1968_v53  ;;  %v1894_v53 = vmul.f32 %v1862_v56, %v7216_v2 }
 0x239   : > { %v1941_v19 = vmul.f32 %v1917_v51, %v1877_v42  ;;  %v2370_v21 = vpack.c.bf16 %v2357_v38, %v2356_v6  ;;  %v1956_v17 = vadd.f32 %v1940_v18, %v1892_v37  ;;  %v1880_v37 = vld [vmem:[%s9026_s5 + $0x50] sm:$0xff] }
 0x23a   : > { %v2317_v4 = vpop.permute.xlu0 %2316 }
 0x23b   : > { %v1957_v24 = vadd.f32 %v1941_v19, %v1893_v26  ;;  %v2342_v40 = vmul.f32 %v2317_v4, %v1876_v35  ;;  %5580 = vmatprep.subr.bf16.mxu0 %v2370_v21  ;;  %v2296_v26 = vmul.f32 %v1862_v56, %v7222_v61  ;;  %v2297_v19 = vmul.f32 %v1863_v55, %v7233_v7  ;;  %v1865_v4 = vld [vmem:[%s9025_s4 + $0x58] sm:$0xff] }
 0x23c   : > { %v2319_v58 = vpop.permute.xlu1 %2318  ;;  %5581 = vmatpush3.bf16.xpose.msra.mxu0 %v2370_v21 }
 0x23d   : > { %v2343_v5 = vmul.f32 %v2319_v58, %v1877_v42  ;;  %v1969_v32 = vpack.c.bf16 %v1957_v24, %v1956_v17  ;;  %v2358_v0 = vadd.f32 %v2342_v40, %v2294_v15  ;;  %v1881_v24 = vld [vmem:[%s9026_s5 + $0x58] sm:$0xff]  ;;  %v1897_v15 = vmul.f32 %v1865_v4, %v7261_v22  ;;  %v1866_v22 = vld [vmem:[%s9025_s4 + $0x60] sm:$0xff] }
 0x23e   : > { %v1919_v35 = vpop.permute.xlu0 %1918 }
 0x23f   : > { %v2359_v9 = vadd.f32 %v2343_v5, %v2295_v3  ;;  %v1942_v54 = vmul.f32 %v1919_v35, %v1878_v29  ;;  %5534 = vmatprep.subr.bf16.mxu1 %v1969_v32 }
 0x240   : > { %v1921_v60 = vpop.permute.xlu1 %1920  ;;  %5535 = vmatpush3.bf16.xpose.msra.mxu1 %v1969_v32 }
 0x241   : > { %v1943_v25 = vmul.f32 %v1921_v60, %v1879_v59  ;;  %v2371_v8 = vpack.c.bf16 %v2359_v9, %v2358_v0  ;;  %v1958_v6 = vadd.f32 %v1942_v54, %v1894_v53  ;;  %v1882_v0 = vld [vmem:[%s9026_s5 + $0x60] sm:$0xff]  ;;  %v2298_v9 = vmul.f32 %v1864_v1, %v7256_v20  ;;  %v1867_v53 = vld [vmem:[%s9025_s4 + $0x68] sm:$0xff] }
 0x242   : > { %v2321_v42 = vpop.permute.xlu0 %2320  ;;  %v2299_v54 = vmul.f32 %v1865_v4, %v7269_v41  ;;  %v2300_v4 = vmul.f32 %v1866_v22, %v7286_v44 }
 0x243   : > { %v1959_v38 = vadd.f32 %v1943_v25, %v1895_v50  ;;  %v2344_v18 = vmul.f32 %v2321_v42, %v1878_v29  ;;  %5582 = vmatprep.subr.bf16.mxu0 %v2371_v8  ;;  %v1896_v29 = vmul.f32 %v1864_v1, %v7249_v14  ;;  %v1883_v25 = vld [vmem:[%s9026_s5 + $0x68] sm:$0xff]  ;;  %v1884_v1 = vld [vmem:[%s9026_s5 + $0x70] sm:$0xff] }
 0x244   : > { %v2323_v51 = vpop.permute.xlu1 %2322  ;;  %5583 = vmatpush3.bf16.xpose.msra.mxu0 %v2371_v8 }
 0x245   : > { %v2345_v2 = vmul.f32 %v2323_v51, %v1879_v59  ;;  %v1970_v21 = vpack.c.bf16 %v1959_v38, %v1958_v6  ;;  %v2360_v40 = vadd.f32 %v2344_v18, %v2296_v26  ;;  %v1898_v6 = vmul.f32 %v1866_v22, %v7281_v30 }
 0x246   : > { %v1923_v17 = vpop.permute.xlu0 %1922  ;;  %v1899_v38 = vmul.f32 %v1867_v53, %v7290_v36  ;;  %v1868_v36 = vld [vmem:[%s9025_s4 + $0x70] sm:$0xff] }
 0x247   : > { %v2361_v58 = vadd.f32 %v2345_v2, %v2297_v19  ;;  %v1944_v61 = vmul.f32 %v1923_v17, %v1880_v37  ;;  %5536 = vmatprep.subr.bf16.mxu1 %v1970_v21  ;;  %v2301_v17 = vmul.f32 %v1867_v53, %v7296_v39 }
 0x248   : > { %v1925_v7 = vpop.permute.xlu1 %1924  ;;  %5537 = vmatpush3.bf16.xpose.msra.mxu1 %v1970_v21 }
 0x249   : > { %v1945_v3 = vmul.f32 %v1925_v7, %v1881_v24  ;;  %v2372_v5 = vpack.c.bf16 %v2361_v58, %v2360_v40  ;;  %v1960_v56 = vadd.f32 %v1944_v61, %v1896_v29  ;;  %v1869_v40 = vld [vmem:[%s9025_s4 + $0x78] sm:$0xff] }
 0x24a   : > { %v2325_v32 = vpop.permute.xlu0 %2324  ;;  %v1885_v61 = vld [vmem:[%s9026_s5 + $0x78] sm:$0xff] }
 0x24b   : > { %v1961_v55 = vadd.f32 %v1945_v3, %v1897_v15  ;;  %v2346_v35 = vmul.f32 %v2325_v32, %v1880_v37  ;;  %5584 = vmatprep.subr.bf16.mxu0 %v2372_v5  ;;  %v1900_v15 = vmul.f32 %v1868_v36, %v7308_v45  ;;  %v1901_v3 = vmul.f32 %v1869_v40, %v7314_v11 }
 0x24c   : > { %v2327_v59 = vpop.permute.xlu1 %2326  ;;  %5585 = vmatpush3.bf16.xpose.msra.mxu0 %v2372_v5 }
 0x24d   : > { %v2347_v14 = vmul.f32 %v2327_v59, %v1881_v24  ;;  %v1971_v60 = vpack.c.bf16 %v1961_v55, %v1960_v56  ;;  %v2362_v8 = vadd.f32 %v2346_v35, %v2298_v9  ;;  %v2302_v9 = vmul.f32 %v1868_v36, %v7310_v46 }
 0x24e   : > { %v1927_v50 = vpop.permute.xlu0 %1926  ;;  %v1811_v46 = vmul.f32 %v7432_v49, %v7206_v57 }
 0x24f   : > { %v2363_v42 = vadd.f32 %v2347_v14, %v2299_v54  ;;  %v1946_v20 = vmul.f32 %v1927_v50, %v1882_v0  ;;  %5538 = vmatprep.subr.bf16.mxu1 %v1971_v60  ;;  %v2303_v54 = vmul.f32 %v1869_v40, %v7316_v48 }
 0x250   : > { %v1929_v41 = vpop.permute.xlu1 %1928  ;;  %5539 = vmatpush3.bf16.xpose.msra.mxu1 %v1971_v60 }
 0x251   : > { %v1947_v18 = vmul.f32 %v1929_v41, %v1883_v25  ;;  %v2373_v51 = vpack.c.bf16 %v2363_v42, %v2362_v8  ;;  %v1962_v26 = vadd.f32 %v1946_v20, %v1898_v6  ;;  %v1810_v8 = vmul.f32 %v7429_v27, %v7194_v52  ;;  %v1796_v20 = vld [vmem:[%s7244_s28 + $0x10] sm:$0xff]  ;;  %v1797_v41 = vld [vmem:[%s7244_s28 + $0x18] sm:$0xff]  ;;  %s5118_s28 = sshll.u32 %s6464_s17, 6 }
 0x252   : > { %v2329_v37 = vpop.permute.xlu0 %2328  ;;  %v2214_v52 = vmul.f32 %v1796_v20, %v7224_v62  ;;  %v2215_v57 = vmul.f32 %v1797_v41, %v7235_v10  ;;  %v2209_v10 = vld [vmem:[%s7421_s29 + $0x28] sm:$0xff] }
 0x253   : > { %v1963_v19 = vadd.f32 %v1947_v18, %v1899_v38  ;;  %v2348_v2 = vmul.f32 %v2329_v37, %v1882_v0  ;;  %5586 = vmatprep.subr.bf16.mxu0 %v2373_v51  ;;  %v2207_v38 = vld [vmem:[%s7421_s29 + $0x18] sm:$0xff] }
 0x254   : > { %v2331_v21 = vpop.permute.xlu1 %2330  ;;  %5587 = vmatpush3.bf16.xpose.msra.mxu0 %v2373_v51 }
 0x255   : > { %v2349_v30 = vmul.f32 %v2331_v21, %v1883_v25  ;;  %v1972_v24 = vpack.c.bf16 %v1963_v19, %v1962_v26  ;;  %v2364_v7 = vadd.f32 %v2348_v2, %v2300_v4  ;;  %v2206_v25 = vld [vmem:[%s7421_s29 + $0x10] sm:$0xff]  ;;  %v1812_v4 = vmul.f32 %v1796_v20, %v7220_v12 }
 0x256   : > { %v1931_v58 = vpop.permute.xlu0 %1930 }
 0x257   : > { %v2365_v29 = vadd.f32 %v2349_v30, %v2301_v17  ;;  %v1948_v44 = vmul.f32 %v1931_v58, %v1884_v1  ;;  %5540 = vmatprep.subr.bf16.mxu1 %v1972_v24  ;;  %v1813_v17 = vmul.f32 %v1797_v41, %v7231_v13 }
 0x258   : > { %v1933_v39 = vpop.permute.xlu1 %1932  ;;  %5541 = vmatpush3.bf16.xpose.msra.mxu1 %v1972_v24 }
 0x259   : > { %v1949_v5 = vmul.f32 %v1933_v39, %v1885_v61  ;;  %v2374_v32 = vpack.c.bf16 %v2365_v29, %v2364_v7  ;;  %v1964_v55 = vadd.f32 %v1948_v44, %v1900_v15  ;;  %v9103_v44 = vld [vmem:[#allocation23_spill] sm:$0xff]  ;;  %v9105_v15 = vld [vmem:[#allocation17_spill] sm:$0xff] }
 0x25a   : > { %v2333_v56 = vpop.permute.xlu0 %2332  ;;  %v9104_v39 = vld [vmem:[#allocation15_spill] sm:$0xff] }
 0x25b   : > { %v1965_v35 = vadd.f32 %v1949_v5, %v1901_v3  ;;  %v2350_v59 = vmul.f32 %v2333_v56, %v1884_v1  ;;  %5588 = vmatprep.subr.bf16.mxu0 %v2374_v32  ;;  %v2208_v1 = vld [vmem:[%s7421_s29 + $0x20] sm:$0xff]  ;;  %v2210_v56 = vld [vmem:[%s7421_s29 + $0x30] sm:$0xff] }
 0x25c   : > { %v2335_v0 = vpop.permute.xlu1 %2334  ;;  %5589 = vmatpush3.bf16.xpose.msra.mxu0 %v2374_v32 }
 0x25d   : > { %v2351_v14 = vmul.f32 %v2335_v0, %v1885_v61  ;;  %v1973_v45 = vpack.c.bf16 %v1965_v35, %v1964_v55  ;;  %v2366_v11 = vadd.f32 %v2350_v59, %v2302_v9  ;;  %v9107_v35 = vld [vmem:[#allocation25_spill] sm:$0xff]  ;;  %v2211_v9 = vld [vmem:[%s7421_s29 + $0x38] sm:$0xff]  ;;  %s5479_s29 = sshll.u32 %s6464_s17, 11  ;;  %s8980_s17 = scalar_lea.sflag [#allocation3], %s493_s27 }
 0x25e   : > { %v1819_v60 = vpop.permute.xlu0 %1818 }
 0x25f   : > { %v2367_v22 = vadd.f32 %v2351_v14, %v2303_v54  ;;  %v1834_v53 = vmul.f32 %v7424_v16, %v1819_v60  ;;  %5542 = vmatprep.subr.bf16.mxu1 %v1973_v45  ;;  %v9108_v54 = vld [vmem:[#allocation14_spill] sm:$0xff] }
 0x260   : > { %v1821_v50 = vpop.permute.xlu1 %1820  ;;  %5543 = vmatpush3.bf16.xpose.msra.mxu1 %v1973_v45  ;;  %v9109_v45 = vld [vmem:[#allocation16_spill] sm:$0xff] }
 0x261   : > { %v1835_v48 = vmul.f32 %v7437_v28, %v1821_v50  ;;  %5552 = vmatprep.subr.bf16.mxu1 %v7350_v34  ;;  %v2375_v42 = vpack.c.bf16 %v2367_v22, %v2366_v11  ;;  %v1842_v16 = vadd.f32 %v1834_v53, %v1810_v8  ;;  %v9110_v53 = vld [vmem:[#allocation24_spill] sm:$0xff]  ;;  %v9111_v50 = vld [vmem:[#allocation27_spill] sm:$0xff] }
 0x262   : > { %v2225_v6 = vpop.permute.xlu0 %2224 }
 0x263   : > { %v1843_v18 = vadd.f32 %v1835_v48, %v1811_v46  ;;  %v2238_v51 = vmul.f32 %v2225_v6, %v2206_v25  ;;  %5590 = vmatprep.subr.bf16.mxu0 %v2375_v42  ;;  %v9112_v46 = vld [vmem:[#allocation19_spill] sm:$0xff] }
 0x264   : > { %v2227_v37 = vpop.permute.xlu1 %2226  ;;  %5591 = vmatpush3.bf16.xpose.msra.mxu0 %v2375_v42  ;;  %v9113_v42 = vld [vmem:[#allocation21_spill] sm:$0xff] }
 0x265   : > { %v2239_v27 = vmul.f32 %v2227_v37, %v2207_v38  ;;  %5600 = vmatprep.subr.bf16.mxu0 %v7352_v31  ;;  %v1850_v49 = vpack.c.bf16 %v1843_v18, %v1842_v16  ;;  %v2246_v26 = vadd.f32 %v2238_v51, %v2214_v52  ;;  %v9114_v16 = vld [vmem:[#allocation26_spill] sm:$0xff]  ;;  %v9116_v52 = vld [vmem:[#allocation20_spill] sm:$0xff] }
 0x266   : > { %v1823_v28 = vpop.permute.xlu0 %1822  ;;  %v9115_v51 = vld [vmem:[#allocation18_spill] sm:$0xff] }
 0x267   : > { %v2247_v19 = vadd.f32 %v2239_v27, %v2215_v57  ;;  %v1836_v2 = vmul.f32 %v2206_v25, %v1823_v28  ;;  %5544 = vmatprep.mubr.bf16.mxu1 %v1850_v49  ;;  %v9117_v49 = vld [vmem:[#allocation28_spill] sm:$0xff]  ;;  %v9118_v28 = vld [vmem:[#allocation30_spill] sm:$0xff] }
 0x268   : > { %v1825_v21 = vpop.permute.xlu1 %1824 }
 0x269   : > { %v2253_v30 = vpack.c.bf16 %v2247_v19, %v2246_v26  ;;  %v1837_v62 = vmul.f32 %v2207_v38, %v1825_v21  ;;  %v1844_v36 = vadd.f32 %v1836_v2, %v1812_v4  ;;  %v1775_v26 = vstv %s5118_s28  ;;  %s8925_s28 = scalar_lea.vmem [#allocation2], %s5110_s21 }
 0x26a   : > { %v2229_v24 = vpop.permute.xlu0 %2228  ;;  %v9121_v21 = vlaneseq  ;;  %s5020_s26 = sshll.u32 %s8925_s28, 4  ;;  %s8970_s26 = int_to_ptr.vmem [resolvable:$true] %s5020_s26 }
 0x26b   : > { %v1845_v40 = vadd.f32 %v1837_v62, %v1813_v17  ;;  %v2240_v58 = vmul.f32 %v2229_v24, %v2208_v1  ;;  %5593 = vmatmul.mubr.bf16.vlgmr.msra.gmra.mrb[48].mxu0 %v2253_v30  ;;  %s6300_s25 = scalar_lea.vmem %s8970_s26, 2048  ;;  %p6307_p0 = scmp.lt.s32.totalorder %s8970_s26, %s6305_s24 }
 0x26c   : > { %v2231_v61 = vpop.permute.xlu1 %2230  ;;  %5601 = vmatpush3.bf16.msra.mxu0 %v7352_v31  ;;  %v9106_v31 = vld [vmem:[#allocation22_spill] sm:$0xff]  ;;  %p6301_p11 = scmp.ne.s32.totalorder %s8970_s26, %s6300_s25  ;;  %p6308_p1 = scmp.lt.s32.totalorder %s6306_s18, %s6300_s25 }
 0x26d   : > { %v1851_v7 = vpack.c.bf16 %v1845_v40, %v1844_v36  ;;  %v2241_v29 = vmul.f32 %v2231_v61, %v2209_v10  ;;  %5602 = vmatprep.subr.bf16.mxu0 %v9103_v44  ;;  %v2248_v13 = vadd.f32 %v2240_v58, %v9104_v39 }
 0x26e   : > { %v1827_v12 = vpop.permute.xlu0 %1826  ;;  %p6302_p12 = pnand %p6301_p11, %p6481_p5  ;;  %p6309_p2 = por %p6308_p1, %p6307_p0 }
 0x26f   : > { %v2249_v3 = vadd.f32 %v2241_v29, %v9105_v15  ;;  %v1838_v5 = vmul.f32 %v2208_v1, %v1827_v12  ;;  %5545 = vmatmul.mubr.bf16.vlgmr.msra.gmra.mrb[32].mxu1 %v1851_v7  ;;  %v7609_v1 = vand.u32 127, %v9121_v21 }
 0x270   : > { %5553 = vmatpush3.bf16.msra.mxu1 %v7350_v34  ;;  %v1829_v32 = vpop.permute.xlu1 %1828  ;;  %5603 = vmatpush3.bf16.msra.mxu0 %v9103_v44  ;;  %p6303_p13 = pneg %p6302_p12 }
 0x271   : > { %v1839_v55 = vmul.f32 %v2209_v10, %v1829_v32  ;;  %5554 = vmatprep.subr.bf16.mxu1 %v9106_v31  ;;  %5604 = vmatprep.subr.bf16.mxu0 %v9107_v35  ;;  %v2254_v59 = vpack.c.bf16 %v2249_v3, %v2248_v13  ;;  %v1846_v14 = vadd.f32 %v1838_v5, %v9108_v54 }
 0x272   : > { %v2233_v0 = vpop.permute.xlu0 %2232  ;;  %p6310_p3 = pnand %p6309_p2, %p6303_p13 }
 0x273   : > { %v1847_v60 = vadd.f32 %v1839_v55, %v9109_v45  ;;  %v2242_v11 = vmul.f32 %v2233_v0, %v2210_v56  ;;  %5596 = vmatprep.mubr.bf16.mxu0 %v2254_v59 }
 0x274   : > { %5555 = vmatpush3.bf16.msra.mxu1 %v9106_v31  ;;  %v2235_v34 = vpop.permute.xlu1 %2234  ;;  %5605 = vmatpush3.bf16.msra.mxu0 %v9107_v35 }
 0x275   : > { %v2243_v22 = vmul.f32 %v2235_v34, %v2211_v9  ;;  %5556 = vmatprep.subr.bf16.mxu1 %v9110_v53  ;;  %5606 = vmatprep.subr.bf16.mxu0 %v9111_v50  ;;  %v1852_v25 = vpack.c.bf16 %v1847_v60, %v1846_v14  ;;  %v2250_v48 = vadd.f32 %v2242_v11, %v9112_v46 }
 0x276   : > { %v1831_v8 = vpop.permute.xlu0 %1830 }
 0x277   : > { %v2251_v20 = vadd.f32 %v2243_v22, %v9113_v42  ;;  %v1840_v41 = vmul.f32 %v2210_v56, %v1831_v8  ;;  %5548 = vmatprep.mubr.bf16.mxu1 %v1852_v25 }
 0x278   : > { %5557 = vmatpush3.bf16.msra.mxu1 %v9110_v53  ;;  %v1833_v6 = vpop.permute.xlu1 %1832  ;;  %5607 = vmatpush3.bf16.msra.mxu0 %v9111_v50 }
 0x279   : > { %v1841_v38 = vmul.f32 %v2211_v9, %v1833_v6  ;;  %5558 = vmatprep.subr.bf16.mxu1 %v9114_v16  ;;  %5608 = vmatprep.subr.bf16.mxu0 %v7399_v47  ;;  %v2255_v18 = vpack.c.bf16 %v2251_v20, %v2250_v48  ;;  %v1848_v37 = vadd.f32 %v1840_v41, %v9115_v51 }
 0x27b   : > { %v1849_v57 = vadd.f32 %v1841_v38, %v9116_v52  ;;  %5597 = vmatmul.mubr.bf16.gmra.mrb[52].mxu0 %v2255_v18 }
 0x27c   : > { %5559 = vmatpush3.bf16.msra.mxu1 %v9114_v16  ;;  %5609 = vmatpush3.bf16.msra.mxu0 %v7399_v47  ;;  %v9119_v47 = vld [vmem:[#allocation29_spill] sm:$0xff] }
 0x27d   : > { %5560 = vmatprep.subr.bf16.mxu1 %v7393_v63  ;;  %5610 = vmatprep.subr.bf16.mxu0 %v7414_v33  ;;  %v1853_v27 = vpack.c.bf16 %v1849_v57, %v1848_v37 }
 0x27f   : > { %5549 = vmatmul.mubr.bf16.gmra.mrb[36].mxu1 %v1853_v27 }
 0x280   : > { %5561 = vmatpush3.bf16.msra.mxu1 %v7393_v63  ;;  %5611 = vmatpush3.bf16.msra.mxu0 %v7414_v33  ;;  %v9120_v63 = vld [vmem:[#allocation11_spill] sm:$0xff] }
 0x281   : > { %5562 = vmatprep.subr.bf16.mxu1 %v9117_v49  ;;  %5612 = vmatprep.subr.bf16.mxu0 %v9118_v28  ;;  %v1770_v33 = vadd.s32 24, %v9120_v63  ;;  %v1768_v2 = vadd.s32 8, %v9120_v63  ;;  %v1769_v4 = vadd.s32 16, %v9120_v63  ;;  %v1776_v62 = vadd.s32 %v1775_v26, %v9120_v63 }
 0x282   : > { %v1772_v15 = vadd.s32 40, %v9120_v63  ;;  %v1771_v32 = vadd.s32 32, %v9120_v63  ;;  %v1774_v56 = vadd.s32 56, %v9120_v63  ;;  %v1773_v0 = vadd.s32 48, %v9120_v63 }
 0x283   : > { %v1779_v19 = vadd.s32 %v1775_v26, %v1770_v33  ;;  %v1778_v36 = vadd.s32 %v1775_v26, %v1769_v4  ;;  %vm1786_vm2 = vcmp.le.s32.totalorder %v7609_v1, %v1776_v62 }
 0x284   : > { %5563 = vmatpush3.bf16.msra.mxu1 %v9117_v49  ;;  %5613 = vmatpush3.bf16.msra.mxu0 %v9118_v28  ;;  %v1781_v59 = vadd.s32 %v1775_v26, %v1772_v15  ;;  %v1780_v14 = vadd.s32 %v1775_v26, %v1771_v32  ;;  %v1783_v45 = vadd.s32 %v1775_v26, %v1774_v56 }
 0x285   : > { %5564 = vmatprep.subr.bf16.mxu1 %v9119_v47  ;;  %5614 = vmatprep.subr.bf16.mxu0 %v7458_v43  ;;  %vm1789_vm0 = vcmp.le.s32.totalorder %v7609_v1, %v1779_v19  ;;  %vm1788_vm3 = vcmp.le.s32.totalorder %v7609_v1, %v1778_v36  ;;  %v1782_v22 = vadd.s32 %v1775_v26, %v1773_v0 }
 0x286   : > { %vm1791_vm4 = vcmp.le.s32.totalorder %v7609_v1, %v1781_v59  ;;  %vm1790_vm5 = vcmp.le.s32.totalorder %v7609_v1, %v1780_v14  ;;  %vm1793_vm6 = vcmp.le.s32.totalorder %v7609_v1, %v1783_v45 }
 0x287   : > { %vm1792_vm7 = vcmp.le.s32.totalorder %v7609_v1, %v1782_v22 }
 0x288   : > { %5565 = vmatpush3.bf16.msra.mxu1 %v9119_v47  ;;  %5615 = vmatpush3.bf16.msra.mxu0 %v7458_v43  ;;  %v1777_v43 = vadd.s32 %v1775_v26, %v1768_v2 }
 0x289   : > { %5566 = vmatprep.subr.bf16.mxu1 %v7450_v23 }
 0x28a   : > { %vm1787_vm1 = vcmp.le.s32.totalorder %v7609_v1, %v1777_v43 }
 0x28c   : > { %5567 = vmatpush3.bf16.msra.mxu1 %v7450_v23 }
 0x33e   : > { %v5594_v17 = vpop.f32.mrb[48].mxu0 }
 0x33f   : > { %v2418_v30 = vpop.f32.mrb[49].mxu0  ;;  %v2451_v12 = vsel %vm1788_vm3, %v5594_v17, -1e+30 }
 0x340   : > { %v5595_v23 = vpop.f32.mrb[50].mxu0  ;;  %v2449_v13 = vsel %vm1786_vm2, %v2418_v30, -1e+30 }
 0x341   : > { %v2421_v24 = vpop.f32.mrb[51].mxu0  ;;  %v7616_v10 = vsel %vm1789_vm0, %v5595_v23, -1e+30 }
 0x342   : > { %2463 = vmax.xlane.f32.xlu1 %v7616_v10  ;;  %v5546_v40 = vpop.f32.mrb[32].mxu1  ;;  %v7623_v44 = vsel %vm1787_vm1, %v2421_v24, -1e+30 }
 0x343   : > { %v2016_v58 = vpop.f32.mrb[33].mxu1  ;;  %v2049_v11 = vsel %vm1788_vm3, %v5546_v40, -1e+30 }
 0x344   : > { %v5547_v61 = vpop.f32.mrb[34].mxu1  ;;  %v2047_v7 = vsel %vm1786_vm2, %v2016_v58, -1e+30 }
 0x345   : > { %2055 = vmax.xlane.f32.xlu0 %v2047_v7  ;;  %v2019_v29 = vpop.f32.mrb[35].mxu1  ;;  %v7631_v39 = vsel %vm1789_vm0, %v5547_v61, -1e+30 }
 0x346   : > { %2459 = vmax.xlane.f32.xlu1 %v7623_v44  ;;  %v2048_v31 = vsel %vm1787_vm1, %v2019_v29, -1e+30 }
 0x349   : > { %2461 = vmax.xlane.f32.xlu0 %v2451_v12 }
 0x34a   : > { %2061 = vmax.xlane.f32.xlu1 %v7631_v39 }
 0x34d   : > { %2457 = vmax.xlane.f32.xlu0 %v2449_v13 }
 0x34e   : > { %v5598_v3 = vpop.f32.mrb[52].mxu0 }
 0x34f   : > { %v2434_v5 = vpop.f32.mrb[53].mxu0  ;;  %v2455_v8 = vsel %vm1792_vm7, %v5598_v3, -1e+30 }
 0x350   : > { %v5599_v55 = vpop.f32.mrb[54].mxu0  ;;  %v7655_v48 = vsel %vm1790_vm5, %v2434_v5, -1e+30 }
 0x351   : > { %2057 = vmax.xlane.f32.xlu0 %v2048_v31  ;;  %v2437_v35 = vpop.f32.mrb[55].mxu0  ;;  %v7649_v25 = vsel %vm1793_vm6, %v5599_v55, -1e+30 }
 0x352   : > { %v5550_v9 = vpop.f32.mrb[36].mxu1  ;;  %v7652_v46 = vsel %vm1791_vm4, %v2437_v35, -1e+30 }
 0x353   : > { %v2032_v54 = vpop.f32.mrb[37].mxu1  ;;  %v7661_v20 = vsel %vm1792_vm7, %v5550_v9, -1e+30 }
 0x354   : > { %v5551_v60 = vpop.f32.mrb[38].mxu1  ;;  %v2051_v50 = vsel %vm1790_vm5, %v2032_v54, -1e+30 }
 0x355   : > { %2059 = vmax.xlane.f32.xlu0 %v2049_v11  ;;  %v2035_v34 = vpop.f32.mrb[39].mxu1  ;;  %v7658_v42 = vsel %vm1793_vm6, %v5551_v60, -1e+30 }
 0x356   : > { %v7643_v53 = vsel %vm1791_vm4, %v2035_v34, -1e+30 }
 0x357   : > { %2065 = vmax.xlane.f32.xlu1 %v7643_v53 }
 0x359   : > { %2063 = vmax.xlane.f32.xlu0 %v2051_v50 }
 0x35b   : > { %2471 = vmax.xlane.f32.xlu1 %v7649_v25 }
 0x35d   : > { %2469 = vmax.xlane.f32.xlu0 %v2455_v8 }
 0x35f   : > { %2467 = vmax.xlane.f32.xlu1 %v7652_v46 }
 0x361   : > { %2465 = vmax.xlane.f32.xlu0 %v7655_v48 }
 0x363   : > { %2069 = vmax.xlane.f32.xlu1 %v7658_v42 }
 0x365   : > { %2067 = vmax.xlane.f32.xlu0 %v7661_v20 }
 0x3cf   : > { %v2464_v38 = vpop.xlane.xlu1 %2463 }
 0x3d0   : > { %v2476_v28 = vsub.f32 %v7616_v10, %v2464_v38 }
 0x3d2   : > { %v2056_v41 = vpop.xlane.xlu0 %2055  ;;  %v2487_v2 = vmul.f32 1.442695, %v2476_v28 }
 0x3d3   : > { %v2071_v6 = vsub.f32 %v2047_v7, %v2056_v41  ;;  %v2460_v52 = vpop.xlane.xlu1 %2459  ;;  %v5828_v41 = vld [vmem:[%s9030_s9 + $0x4] ss:$8 sps:$4 sm:$0xff]  }
 0x3d4   : > { %v2474_v21 = vsub.f32 %v7623_v44, %v2460_v52  ;;  %2798 = vmatprep.subr.bf16.mxu0 %v5828_v41 }
 0x3d5   : > { %v2079_v16 = vmul.f32 1.442695, %v2071_v6 }
 0x3d6   : > { %v2462_v18 = vpop.xlane.xlu0 %2461  ;;  %v2483_v62 = vmul.f32 1.442695, %v2474_v21 }
 0x3d7   : > { %6018 = vpow2.f32 %v2079_v16  ;;  %v2475_v51 = vsub.f32 %v2451_v12, %v2462_v18  ;;  %v2062_v33 = vpop.xlane.xlu1 %2061 }
 0x3d8   : > { %v2074_v23 = vsub.f32 %v7631_v39, %v2062_v33 }
 0x3d9   : > { %v2485_v37 = vmul.f32 1.442695, %v2475_v51 }
 0x3da   : > { %v2458_v57 = vpop.xlane.xlu0 %2457  ;;  %v2085_v61 = vmul.f32 1.442695, %v2074_v23 }
 0x3db   : > { %6020 = vpow2.f32 %v2485_v37  ;;  %v2473_v27 = vsub.f32 %v2449_v13, %v2458_v57 }
 0x3dd   : > { %v2481_v49 = vmul.f32 1.442695, %v2473_v27 }
 0x3de   : > { %v2058_v47 = vpop.xlane.xlu0 %2057 }
 0x3df   : > { %6022 = vpow2.f32 %v2481_v49  ;;  %v2072_v63 = vsub.f32 %v2048_v31, %v2058_v47 }
 0x3e1   : > { %v7665_v26 = vpop.eup %6018  ;;  %v2081_v19 = vmul.f32 1.442695, %v2072_v63 }
 0x3e2   : > { %2095 = vadd.xlane.f32.xlu0 %v7665_v26  ;;  %v2060_v1 = vpop.xlane.xlu0 %2059 }
 0x3e3   : > { %6024 = vpow2.f32 %v2081_v19  ;;  %v2073_v4 = vsub.f32 %v2049_v11, %v2060_v1 }
 0x3e4   : > { %v2066_v17 = vpop.xlane.xlu1 %2065  ;;  %6026 = vpow2.f32 %v2487_v2 }
 0x3e5   : > { %v7669_v43 = vpop.eup %6020  ;;  %v2083_v30 = vmul.f32 1.442695, %v2073_v4  ;;  %v2076_v7 = vsub.f32 %v7643_v53, %v2066_v17 }
 0x3e6   : > { %2501 = vadd.xlane.f32.xlu0 %v7669_v43  ;;  %v2064_v24 = vpop.xlane.xlu0 %2063 }
 0x3e7   : > { %6028 = vpow2.f32 %v2083_v30  ;;  %v2075_v10 = vsub.f32 %v2051_v50, %v2064_v24  ;;  %v2089_v13 = vmul.f32 1.442695, %v2076_v7 }
 0x3e8   : > { %v2472_v36 = vpop.xlane.xlu1 %2471  ;;  %6030 = vpow2.f32 %v2483_v62 }
 0x3e9   : > { %v7673_v40 = vpop.eup %6022  ;;  %v2087_v58 = vmul.f32 1.442695, %v2075_v10  ;;  %v2480_v15 = vsub.f32 %v7649_v25, %v2472_v36 }
 0x3ea   : > { %2497 = vadd.xlane.f32.xlu0 %v7673_v40  ;;  %v2470_v29 = vpop.xlane.xlu0 %2469 }
 0x3eb   : > { %6032 = vpow2.f32 %v2087_v58  ;;  %v2479_v44 = vsub.f32 %v2455_v8, %v2470_v29  ;;  %v2495_v35 = vmul.f32 1.442695, %v2480_v15 }
 0x3ec   : > { %6034 = vpow2.f32 %v2085_v61  ;;  %v2468_v3 = vpop.xlane.xlu1 %2467  ;;  %v5826_v61 = vld [vmem:[%s9030_s9] ss:$8 sps:$4 sm:$0xff]  }
 0x3ed   : > { %v7677_v12 = vpop.eup %6024  ;;  %v2493_v39 = vmul.f32 1.442695, %v2479_v44  ;;  %v2478_v0 = vsub.f32 %v7652_v46, %v2468_v3  ;;  %v5831_v44 = vld [vmem:[%s9030_s9 + $0x14] ss:$8 sps:$4 sm:$0xff]   ;;  %v5829_v3 = vld [vmem:[%s9030_s9 + $0x10] ss:$8 sps:$4 sm:$0xff]  }
 0x3ee   : > { %2097 = vadd.xlane.f32.xlu1 %v7677_v12  ;;  %v2466_v5 = vpop.xlane.xlu0 %2465  ;;  %v7682_v56 = vpop.eup %6026 }
 0x3ef   : > { %6036 = vpow2.f32 %v2493_v39  ;;  %v2477_v32 = vsub.f32 %v7655_v48, %v2466_v5  ;;  %v2491_v11 = vmul.f32 1.442695, %v2478_v0  ;;  %v5837_v0 = vld [vmem:[%s9030_s9 + $0x34] ss:$8 sps:$4 sm:$0xff]  }
 0x3f0   : > { %6038 = vpow2.f32 %v2089_v13  ;;  %v2070_v14 = vpop.xlane.xlu1 %2069 }
 0x3f1   : > { %v7684_v55 = vpop.eup %6028  ;;  %v2489_v31 = vmul.f32 1.442695, %v2477_v32  ;;  %v2078_v34 = vsub.f32 %v7658_v42, %v2070_v14  ;;  %v5834_v32 = vld [vmem:[%s9030_s9 + $0x24] ss:$8 sps:$4 sm:$0xff]  }
 0x3f2   : > { %2503 = vadd.xlane.f32.xlu1 %v7682_v56  ;;  %2099 = vadd.xlane.f32.xlu0 %v7684_v55  ;;  %v2068_v59 = vpop.xlane.xlu0 %2067  ;;  %v7690_v54 = vpop.eup %6030 }
 0x3f3   : > { %6040 = vpow2.f32 %v2489_v31  ;;  %v2077_v9 = vsub.f32 %v7661_v20, %v2068_v59  ;;  %v2093_v50 = vmul.f32 1.442695, %v2078_v34  ;;  %v5832_v59 = vld [vmem:[%s9030_s9 + $0x20] ss:$8 sps:$4 sm:$0xff]   ;;  %v5840_v34 = vld [vmem:[%s9030_s9 + $0x44] ss:$8 sps:$4 sm:$0xff]  }
 0x3f4   : > { %6042 = vpow2.f32 %v2495_v35 }
 0x3f5   : > { %v7692_v45 = vpop.eup %6032  ;;  %v2091_v60 = vmul.f32 1.442695, %v2077_v9 }
 0x3f6   : > { %2499 = vadd.xlane.f32.xlu1 %v7690_v54  ;;  %2103 = vadd.xlane.f32.xlu0 %v7692_v45  ;;  %v7697_v22 = vpop.eup %6034 }
 0x3f7   : > { %6044 = vpow2.f32 %v2091_v60 }
 0x3f8   : > { %6046 = vpow2.f32 %v2491_v11 }
 0x3f9   : > { %v7699_v53 = vpop.eup %6036  ;;  %6048 = vpow2.f32 %v2093_v50 }
 0x3fa   : > { %2101 = vadd.xlane.f32.xlu1 %v7697_v22  ;;  %2509 = vadd.xlane.f32.xlu0 %v7699_v53  ;;  %v7703_v25 = vpop.eup %6038 }
 0x3fd   : > { %v7705_v8 = vpop.eup %6040 }
 0x3fe   : > { %2105 = vadd.xlane.f32.xlu1 %v7703_v25  ;;  %2505 = vadd.xlane.f32.xlu0 %v7705_v8  ;;  %v7709_v46 = vpop.eup %6042 }
 0x401   : > { %v7711_v48 = vpop.eup %6044 }
 0x402   : > { %2511 = vadd.xlane.f32.xlu1 %v7709_v46  ;;  %2107 = vadd.xlane.f32.xlu0 %v7711_v48  ;;  %v7715_v42 = vpop.eup %6046 }
 0x403   : > { %v7718_v20 = vpop.eup %6048 }
 0x406   : > { %2507 = vadd.xlane.f32.xlu1 %v7715_v42 }
 0x40a   : > { %2109 = vadd.xlane.f32.xlu1 %v7718_v20 }
 0x46f   : > { %v2096_v6 = vpop.xlane.xlu0 %2095 }
 0x470   : > { %6050 = vrcp.f32 %v2096_v6 }
 0x473   : > { %v2502_v38 = vpop.xlane.xlu0 %2501 }
 0x477   : > { %v2498_v16 = vpop.xlane.xlu0 %2497 }
 0x47a   : > { %v6051_v27 = vpop.eup %6050 }
 0x47b   : > { %v2098_v18 = vpop.xlane.xlu1 %2097  ;;  %v2119_v63 = vmul.f32 %v6051_v27, %v7665_v26  ;;  %v5850_v27 = vld [vmem:[%s9030_s9 + $0x80] ss:$8 sps:$4 sm:$0xff]  }
 0x47c   : > { %6052 = vrcp.f32 %v2098_v18  ;;  %v5843_v18 = vld [vmem:[%s9030_s9 + $0x54] ss:$8 sps:$4 sm:$0xff]  }
 0x47f   : > { %v2504_v51 = vpop.xlane.xlu1 %2503  ;;  %v2100_v37 = vpop.xlane.xlu0 %2099 }
 0x480   : > { %6054 = vrcp.f32 %v2504_v51  ;;  %v5841_v51 = vld [vmem:[%s9030_s9 + $0x50] ss:$8 sps:$4 sm:$0xff]  }
 0x481   : > { %6056 = vrcp.f32 %v2498_v16 }
 0x482   : > { %6058 = vrcp.f32 %v2502_v38  ;;  %v5838_v38 = vld [vmem:[%s9030_s9 + $0x40] ss:$8 sps:$4 sm:$0xff]  }
 0x483   : > { %v2500_v52 = vpop.xlane.xlu1 %2499  ;;  %v2104_v57 = vpop.xlane.xlu0 %2103 }
 0x484   : > { %6060 = vrcp.f32 %v2500_v52  ;;  %v5847_v52 = vld [vmem:[%s9030_s9 + $0x70] ss:$8 sps:$4 sm:$0xff]  }
 0x485   : > { %6062 = vrcp.f32 %v2100_v37  ;;  %v5846_v37 = vld [vmem:[%s9030_s9 + $0x64] ss:$8 sps:$4 sm:$0xff]  }
 0x486   : > { %v6053_v49 = vpop.eup %6052 }
 0x487   : > { %v2102_v28 = vpop.xlane.xlu1 %2101  ;;  %v2510_v47 = vpop.xlane.xlu0 %2509  ;;  %v2120_v33 = vmul.f32 %v6053_v49, %v7677_v12  ;;  %v5855_v49 = vld [vmem:[%s9030_s9 + $0x94] ss:$8 sps:$4 sm:$0xff]  }
 0x488   : > { %6064 = vrcp.f32 %v2102_v28  ;;  %v5853_v28 = vld [vmem:[%s9030_s9 + $0x90] ss:$8 sps:$4 sm:$0xff]  }
 0x489   : > { %v2127_v19 = vpack.c.bf16 %v2120_v33, %v2119_v63  ;;  %6066 = vrcp.f32 %v2104_v57  ;;  %v5852_v57 = vld [vmem:[%s9030_s9 + $0x84] ss:$8 sps:$4 sm:$0xff]   ;;  %v5856_v63 = vld [vmem:[%s9030_s9 + $0xa0] ss:$8 sps:$4 sm:$0xff]   ;;  %v5861_v33 = vld [vmem:[%s9030_s9 + $0xb4] ss:$8 sps:$4 sm:$0xff]  }
 0x48a   : > { %v6055_v2 = vpop.eup %6054 }
 0x48b   : > { %v2106_v21 = vpop.xlane.xlu1 %2105  ;;  %5568 = vmatprep.mubr.bf16.mxu1 %v2127_v19  ;;  %v6057_v1 = vpop.eup %6056  ;;  %v2524_v62 = vmul.f32 %v6055_v2, %v7682_v56  ;;  %v5859_v19 = vld [vmem:[%s9030_s9 + $0xb0] ss:$8 sps:$4 sm:$0xff]   ;;  %v5864_v2 = vld [vmem:[%s9030_s9 + $0xc4] ss:$8 sps:$4 sm:$0xff]  }
 0x48c   : > { %6068 = vrcp.f32 %v2106_v21  ;;  %v6059_v4 = vpop.eup %6058  ;;  %v2506_v17 = vpop.xlane.xlu0 %2505  ;;  %v2521_v24 = vmul.f32 %v6057_v1, %v7673_v40  ;;  %v5862_v21 = vld [vmem:[%s9030_s9 + $0xc0] ss:$8 sps:$4 sm:$0xff]   ;;  %v5867_v1 = vld [vmem:[%s9030_s9 + $0xd4] ss:$8 sps:$4 sm:$0xff]  }
 0x48d   : > { %v2523_v36 = vmul.f32 %v6059_v4, %v7669_v43  ;;  %v5865_v4 = vld [vmem:[%s9030_s9 + $0xd0] ss:$8 sps:$4 sm:$0xff]  }
 0x48e   : > { %v6061_v30 = vpop.eup %6060 }
 0x48f   : > { %v2512_v23 = vpop.xlane.xlu1 %2511  ;;  %v2522_v26 = vmul.f32 %v6061_v30, %v7690_v54  ;;  %v6063_v10 = vpop.eup %6062  ;;  %v2530_v29 = vpack.c.bf16 %v2524_v62, %v2523_v36  ;;  %v5870_v30 = vld [vmem:[%s9030_s9 + $0xe4] ss:$8 sps:$4 sm:$0xff]   ;;  %v5871_v62 = vld [vmem:[%s9030_s9 + $0xf0] ss:$8 sps:$4 sm:$0xff]  }
 0x490   : > { %6070 = vrcp.f32 %v2512_v23  ;;  %v2121_v40 = vmul.f32 %v6063_v10, %v7684_v55  ;;  %v2108_v39 = vpop.xlane.xlu0 %2107  ;;  %v5873_v23 = vld [vmem:[%s9030_s9 + $0xf4] ss:$8 sps:$4 sm:$0xff]  }
 0x491   : > { %v2529_v58 = vpack.c.bf16 %v2522_v26, %v2521_v24  ;;  %6072 = vrcp.f32 %v2506_v17  ;;  %v5868_v17 = vld [vmem:[%s9030_s9 + $0xe0] ss:$8 sps:$4 sm:$0xff]  }
 0x492   : > { %v6065_v7 = vpop.eup %6064  ;;  %6074 = vrcp.f32 %v2510_v47  ;;  %v5858_v47 = vld [vmem:[%s9030_s9 + $0xa4] ss:$8 sps:$4 sm:$0xff]  }
 0x493   : > { %v2122_v12 = vmul.f32 %v6065_v7, %v7697_v22  ;;  %v2508_v43 = vpop.xlane.xlu1 %2507  ;;  %5616 = vmatprep.mubr.bf16.mxu0 %v2529_v58  ;;  %v6067_v13 = vpop.eup %6066 }
 0x494   : > { %6076 = vrcp.f32 %v2508_v43  ;;  %5617 = vmatmul.mubr.bf16.vlgmr.msra.gmra.mrb[56].mxu0 %v2530_v29  ;;  %v2123_v55 = vmul.f32 %v6067_v13, %v7692_v45  ;;  %v5835_v45 = vld [vmem:[%s9030_s9 + $0x30] ss:$8 sps:$4 sm:$0xff]  }
 0x495   : > { %v2128_v15 = vpack.c.bf16 %v2122_v12, %v2121_v40  ;;  %2799 = vmatpush1.bf16.msra.mxu0 %v5826_v61  ;;  %6078 = vrcp.f32 %v2108_v39 }
 0x496   : > { %v6069_v5 = vpop.eup %6068  ;;  %2800 = vmatprep.subr.bf16.mxu0 %v5831_v44 }
 0x497   : > { %v2110_v56 = vpop.xlane.xlu1 %2109  ;;  %5569 = vmatmul.mubr.bf16.vlgmr.msra.gmra.mrb[40].mxu1 %v2128_v15  ;;  %v2124_v31 = vmul.f32 %v6069_v5, %v7703_v25 }
 0x498   : > { %6080 = vrcp.f32 %v2110_v56 }
 0x499   : > { %v2129_v35 = vpack.c.bf16 %v2124_v31, %v2123_v55  ;;  %2801 = vmatpush1.bf16.msra.mxu0 %v5829_v3 }
 0x49a   : > { %2802 = vmatprep.subr.bf16.mxu0 %v5834_v32  ;;  %v6071_v9 = vpop.eup %6070 }
 0x49b   : > { %5572 = vmatprep.mubr.bf16.mxu1 %v2129_v35  ;;  %v6073_v54 = vpop.eup %6072  ;;  %v2528_v11 = vmul.f32 %v6071_v9, %v7709_v46  ;;  %v3003_v9 = vld [vmem:[%s9032_s11] sm:$0xff] }
 0x49c   : > { %v6075_v14 = vpop.eup %6074  ;;  %v2525_v22 = vmul.f32 %v6073_v54, %v7705_v8  ;;  %v3007_v54 = vld [vmem:[%s9032_s11 + $0x20] sm:$0xff] }
 0x49d   : > { %2803 = vmatpush1.bf16.msra.mxu0 %v5832_v59  ;;  %v2527_v41 = vmul.f32 %v6075_v14, %v7699_v53  ;;  %v3004_v14 = vld [vmem:[%s9032_s11 + $0x8] sm:$0xff] }
 0x49e   : > { %v6077_v60 = vpop.eup %6076  ;;  %2804 = vmatprep.subr.bf16.mxu0 %v5837_v0 }
 0x49f   : > { %v2526_v50 = vmul.f32 %v6077_v60, %v7715_v42  ;;  %v6079_v25 = vpop.eup %6078  ;;  %v2532_v46 = vpack.c.bf16 %v2528_v11, %v2527_v41  ;;  %v5248_v60 = vcombine.high %v3003_v9, %v3007_v54  ;;  %v3008_v11 = vld [vmem:[%s9032_s11 + $0x28] sm:$0xff] }
 0x4a0   : > { %v2125_v8 = vmul.f32 %v6079_v25, %v7711_v48  ;;  %v5844_v48 = vld [vmem:[%s9030_s9 + $0x60] ss:$8 sps:$4 sm:$0xff]   ;;  %v5250_v25 = vcombine.high %v3004_v14, %v3008_v11 }
 0x4a1   : > { %v2531_v6 = vpack.c.bf16 %v2526_v50, %v2525_v22  ;;  %2805 = vmatpush1.bf16.msra.mxu0 %v5835_v45  ;;  %v5247_v45 = vcombine.low %v3003_v9, %v3007_v54  ;;  %v3015_v22 = vld [vmem:[%s9032_s11 + $0x60] sm:$0xff]  ;;  %v5249_v50 = vcombine.low %v3004_v14, %v3008_v11  ;;  %3771 = vmatprep.subr.bf16.mxu1 %v5248_v60  ;;  %v3068_v9 = vld [vmem:[%s9032_s11 + $0x208] sm:$0xff] }
 0x4a2   : > { %v6081_v16 = vpop.eup %6080  ;;  %2806 = vmatprep.subr.bf16.mxu0 %v5840_v34  ;;  %v3011_v34 = vld [vmem:[%s9032_s11 + $0x40] sm:$0xff]  ;;  %v3072_v54 = vld [vmem:[%s9032_s11 + $0x228] sm:$0xff] }
 0x4a3   : > { %5620 = vmatprep.mubr.bf16.mxu0 %v2531_v6  ;;  %v2126_v42 = vmul.f32 %v6081_v16, %v7718_v20  ;;  %v5849_v20 = vld [vmem:[%s9030_s9 + $0x74] ss:$8 sps:$4 sm:$0xff]   ;;  %v5256_v41 = vcombine.high %v3011_v34, %v3015_v22  ;;  %v3012_v6 = vld [vmem:[%s9032_s11 + $0x48] sm:$0xff]  ;;  %v3019_v16 = vld [vmem:[%s9032_s11 + $0x80] sm:$0xff]  ;;  %3772 = vmatpush1.bf16.msra.mxu1 %v5247_v45  ;;  %v5314_v11 = vcombine.high %v3068_v9, %v3072_v54 }
 0x4a4   : > { %5621 = vmatmul.mubr.bf16.gmra.mrb[60].mxu0 %v2532_v46 }
 0x4a5   : > { %v2130_v53 = vpack.c.bf16 %v2126_v42, %v2125_v8  ;;  %2807 = vmatpush1.bf16.msra.mxu0 %v5838_v38  ;;  %v3016_v38 = vld [vmem:[%s9032_s11 + $0x68] sm:$0xff]  ;;  %3773 = vmatprep.subr.bf16.mxu1 %v5256_v41 }
 0x4a6   : > { %2808 = vmatprep.subr.bf16.mxu0 %v5843_v18  ;;  %v5258_v46 = vcombine.high %v3012_v6, %v3016_v38  ;;  %v3023_v18 = vld [vmem:[%s9032_s11 + $0xa0] sm:$0xff]  ;;  %v3020_v8 = vld [vmem:[%s9032_s11 + $0x88] sm:$0xff] }
 0x4a7   : > { %5573 = vmatmul.mubr.bf16.gmra.mrb[44].mxu1 %v2130_v53  ;;  %v3024_v42 = vld [vmem:[%s9032_s11 + $0xa8] sm:$0xff]  ;;  %v5255_v53 = vcombine.low %v3011_v34, %v3015_v22  ;;  %v3075_v34 = vld [vmem:[%s9032_s11 + $0x240] sm:$0xff] }
 0x4a8   : > { %v3079_v22 = vld [vmem:[%s9032_s11 + $0x260] sm:$0xff] }
 0x4a9   : > { %2809 = vmatpush1.bf16.msra.mxu0 %v5841_v51  ;;  %v5257_v51 = vcombine.low %v3012_v6, %v3016_v38  ;;  %3774 = vmatpush1.bf16.msra.mxu1 %v5255_v53  ;;  %v5313_v6 = vcombine.low %v3068_v9, %v3072_v54  ;;  %v5320_v38 = vcombine.high %v3075_v34, %v3079_v22  ;;  %v6293_v9 = vld [vmem:[%s6595_s19 + $0x48] sm:$0xff] }
 0x4aa   : > { %2810 = vmatprep.subr.bf16.mxu0 %v5846_v37  ;;  %v5264_v37 = vcombine.high %v3019_v16, %v3023_v18  ;;  %v5319_v53 = vcombine.low %v3075_v34, %v3079_v22 }
 0x4ac   : > { %3775 = vmatprep.subr.bf16.mxu1 %v5264_v37 }
 0x4ad   : > { %2811 = vmatpush1.bf16.msra.mxu0 %v5844_v48  ;;  %v5266_v48 = vcombine.high %v3020_v8, %v3024_v42 }
 0x4ae   : > { %2812 = vmatprep.subr.bf16.mxu0 %v5849_v20  ;;  %v3027_v20 = vld [vmem:[%s9032_s11 + $0xc0] sm:$0xff] }
 0x4b1   : > { %2813 = vmatpush1.bf16.msra.mxu0 %v5847_v52  ;;  %v3031_v52 = vld [vmem:[%s9032_s11 + $0xe0] sm:$0xff] }
 0x4b2   : > { %2814 = vmatprep.subr.bf16.mxu0 %v5852_v57  ;;  %v3028_v57 = vld [vmem:[%s9032_s11 + $0xc8] sm:$0xff] }
 0x4b5   : > { %2815 = vmatpush1.bf16.msra.mxu0 %v5850_v27  ;;  %v3032_v27 = vld [vmem:[%s9032_s11 + $0xe8] sm:$0xff] }
 0x4b6   : > { %2816 = vmatprep.subr.bf16.mxu0 %v5855_v49  ;;  %v5263_v49 = vcombine.low %v3019_v16, %v3023_v18  ;;  %v3087_v18 = vld [vmem:[%s9032_s11 + $0x2a0] sm:$0xff] }
 0x4b8   : > { %3776 = vmatpush1.bf16.msra.mxu1 %v5263_v49 }
 0x4b9   : > { %2817 = vmatpush1.bf16.msra.mxu0 %v5853_v28  ;;  %v5265_v28 = vcombine.low %v3020_v8, %v3024_v42  ;;  %v3084_v8 = vld [vmem:[%s9032_s11 + $0x288] sm:$0xff] }
 0x4ba   : > { %2818 = vmatprep.subr.bf16.mxu0 %v5858_v47  ;;  %v5272_v47 = vcombine.high %v3027_v20, %v3031_v52  ;;  %v3088_v42 = vld [vmem:[%s9032_s11 + $0x2a8] sm:$0xff] }
 0x4bc   : > { %3777 = vmatprep.subr.bf16.mxu1 %v5272_v47  ;;  %v6285_v47 = vld [vmem:[%s6595_s19 + $0x8] sm:$0xff] }
 0x4bd   : > { %2819 = vmatpush1.bf16.msra.mxu0 %v5856_v63  ;;  %v5274_v63 = vcombine.high %v3028_v57, %v3032_v27 }
 0x4be   : > { %2820 = vmatprep.subr.bf16.mxu0 %v5861_v33  ;;  %v3035_v33 = vld [vmem:[%s9032_s11 + $0x100] sm:$0xff] }
 0x4c1   : > { %2821 = vmatpush1.bf16.msra.mxu0 %v5859_v19  ;;  %v3039_v19 = vld [vmem:[%s9032_s11 + $0x120] sm:$0xff] }
 0x4c2   : > { %2822 = vmatprep.subr.bf16.mxu0 %v5864_v2  ;;  %v3036_v2 = vld [vmem:[%s9032_s11 + $0x108] sm:$0xff] }
 0x4c5   : > { %2823 = vmatpush1.bf16.msra.mxu0 %v5862_v21  ;;  %v3040_v21 = vld [vmem:[%s9032_s11 + $0x128] sm:$0xff] }
 0x4c6   : > { %2824 = vmatprep.subr.bf16.mxu0 %v5867_v1  ;;  %v5271_v1 = vcombine.low %v3027_v20, %v3031_v52  ;;  %v5329_v52 = vcombine.low %v3084_v8, %v3088_v42 }
 0x4c8   : > { %3778 = vmatpush1.bf16.msra.mxu1 %v5271_v1 }
 0x4c9   : > { %2825 = vmatpush1.bf16.msra.mxu0 %v5865_v4  ;;  %v5273_v4 = vcombine.low %v3028_v57, %v3032_v27  ;;  %v6284_v27 = vld [vmem:[%s6595_s19] sm:$0xff] }
 0x4ca   : > { %2826 = vmatprep.subr.bf16.mxu0 %v5870_v30  ;;  %v5282_v30 = vcombine.high %v3036_v2, %v3040_v21 }
 0x4cd   : > { %2827 = vmatpush1.bf16.msra.mxu0 %v5868_v17  ;;  %v5280_v17 = vcombine.high %v3035_v33, %v3039_v19 }
 0x4ce   : > { %2828 = vmatprep.subr.bf16.mxu0 %v5873_v23  ;;  %v3047_v23 = vld [vmem:[%s9032_s11 + $0x160] sm:$0xff] }
 0x4cf   : > { %3779 = vmatprep.subr.bf16.mxu1 %v5280_v17  ;;  %v6287_v17 = vld [vmem:[%s6595_s19 + $0x18] sm:$0xff] }
 0x4d1   : > { %2829 = vmatpush1.bf16.msra.mxu0 %v5871_v62  ;;  %v3043_v62 = vld [vmem:[%s9032_s11 + $0x140] sm:$0xff] }
 0x4d2   : > { %3844 = vmatprep.subr.bf16.mxu0 %v5250_v25  ;;  %v3080_v25 = vld [vmem:[%s9032_s11 + $0x268] sm:$0xff] }
 0x567   : > { %v5618_v24 = vpop.f32.mrb[56].mxu0 }
 0x568   : > { %v2567_v26 = vpop.f32.mrb[57].mxu0 }
 0x569   : > { %v5619_v10 = vpop.f32.mrb[58].mxu0 }
 0x56a   : > { %v2601_v36 = vpack.c.bf16 %v5619_v10, %v5618_v24  ;;  %v5570_v58 = vpop.f32.mrb[40].mxu1  ;;  %v2570_v61 = vpop.f32.mrb[59].mxu0  ;;  %v3044_v24 = vld [vmem:[%s9032_s11 + $0x148] sm:$0xff]  ;;  %v5279_v10 = vcombine.low %v3035_v33, %v3039_v19 }
 0x56b   : > { %v2599_v7 = vpack.c.bf16 %v2570_v61, %v2567_v26  ;;  %v2165_v29 = vpop.f32.mrb[41].mxu1  ;;  %v3048_v26 = vld [vmem:[%s9032_s11 + $0x168] sm:$0xff] }
 0x56c   : > { %v5571_v44 = vpop.f32.mrb[42].mxu1  ;;  %v5290_v61 = vcombine.high %v3044_v24, %v3048_v26  ;;  %3780 = vmatpush1.bf16.msra.mxu1 %v5279_v10 }
 0x56d   : > { %v2600_v40 = vpack.c.bf16 %v5571_v44, %v5570_v58  ;;  %v2168_v12 = vpop.f32.mrb[43].mxu1  ;;  %2830 = vmatprep.mubr.bf16.mxu0 %v2599_v7  ;;  %v5288_v58 = vcombine.high %v3043_v62, %v3047_v23  ;;  %v3051_v7 = vld [vmem:[%s9032_s11 + $0x180] sm:$0xff]  ;;  %v3052_v44 = vld [vmem:[%s9032_s11 + $0x188] sm:$0xff] }
 0x56e   : > { %v2598_v39 = vpack.c.bf16 %v2168_v12, %v2165_v29  ;;  %v3055_v29 = vld [vmem:[%s9032_s11 + $0x1a0] sm:$0xff]  ;;  %v5287_v12 = vcombine.low %v3043_v62, %v3047_v23 }
 0x56f   : > { %3781 = vmatprep.subr.bf16.mxu1 %v5288_v58 }
 0x570   : > { %2831 = vmatmul.mubr.bf16.vlgmr.msra.gmra.mrb[64].mxu0 %v2598_v39  ;;  %v5289_v39 = vcombine.low %v3044_v24, %v3048_v26  ;;  %3782 = vmatpush1.bf16.msra.mxu1 %v5287_v12  ;;  %v6290_v12 = vld [vmem:[%s6595_s19 + $0x30] sm:$0xff] }
 0x571   : > { %2840 = vmatprep.mubr.bf16.mxu0 %v2601_v36  ;;  %3845 = vmatpush1.bf16.msra.mxu0 %v5249_v50  ;;  %v5281_v36 = vcombine.low %v3036_v2, %v3040_v21  ;;  %v3076_v50 = vld [vmem:[%s9032_s11 + $0x248] sm:$0xff]  ;;  %v6286_v2 = vld [vmem:[%s6595_s19 + $0x10] sm:$0xff] }
 0x572   : > { %3846 = vmatprep.subr.bf16.mxu0 %v5258_v46  ;;  %v5322_v16 = vcombine.high %v3076_v50, %v3080_v25  ;;  %v3083_v46 = vld [vmem:[%s9032_s11 + $0x280] sm:$0xff] }
 0x573   : > { %v5328_v37 = vcombine.high %v3083_v46, %v3087_v18  ;;  %v5327_v20 = vcombine.low %v3083_v46, %v3087_v18  ;;  %v6296_v18 = vld [vmem:[%s6595_s19 + $0x60] sm:$0xff] }
 0x575   : > { %3847 = vmatpush1.bf16.msra.mxu0 %v5257_v51  ;;  %v5321_v51 = vcombine.low %v3076_v50, %v3080_v25  ;;  %v6295_v50 = vld [vmem:[%s6595_s19 + $0x58] sm:$0xff] }
 0x576   : > { %3848 = vmatprep.subr.bf16.mxu0 %v5266_v48  ;;  %v5330_v48 = vcombine.high %v3084_v8, %v3088_v42 }
 0x577   : > { %v5622_v43 = vpop.f32.mrb[60].mxu0 }
 0x578   : > { %v2583_v13 = vpop.f32.mrb[61].mxu0  ;;  %2841 = vmatmul.mubr.bf16.gmra.mrb[68].mxu0 %v2600_v40  ;;  %v3056_v40 = vld [vmem:[%s9032_s11 + $0x1a8] sm:$0xff] }
 0x579   : > { %v5623_v15 = vpop.f32.mrb[62].mxu0  ;;  %3849 = vmatpush1.bf16.msra.mxu0 %v5265_v28 }
 0x57a   : > { %v2605_v3 = vpack.c.bf16 %v5623_v15, %v5622_v43  ;;  %v5574_v5 = vpop.f32.mrb[44].mxu1  ;;  %v2586_v32 = vpop.f32.mrb[63].mxu0  ;;  %3850 = vmatprep.subr.bf16.mxu0 %v5274_v63  ;;  %v5296_v43 = vcombine.high %v3051_v7, %v3055_v29  ;;  %v3059_v15 = vld [vmem:[%s9032_s11 + $0x1c0] sm:$0xff] }
 0x57b   : > { %v2603_v56 = vpack.c.bf16 %v2586_v32, %v2583_v13  ;;  %v2181_v55 = vpop.f32.mrb[45].mxu1  ;;  %v5298_v13 = vcombine.high %v3052_v44, %v3056_v40  ;;  %v3064_v32 = vld [vmem:[%s9032_s11 + $0x1e8] sm:$0xff] }
 0x57c   : > { %v5575_v31 = vpop.f32.mrb[46].mxu1  ;;  %3783 = vmatprep.subr.bf16.mxu1 %v5296_v43 }
 0x57d   : > { %v2604_v35 = vpack.c.bf16 %v5575_v31, %v5574_v5  ;;  %v2184_v59 = vpop.f32.mrb[47].mxu1  ;;  %2850 = vmatprep.mubr.bf16.mxu0 %v2603_v56  ;;  %3851 = vmatpush1.bf16.msra.mxu0 %v5273_v4  ;;  %v3060_v5 = vld [vmem:[%s9032_s11 + $0x1c8] sm:$0xff]  ;;  %v5295_v56 = vcombine.low %v3051_v7, %v3055_v29 }
 0x57e   : > { %v2602_v0 = vpack.c.bf16 %v2184_v59, %v2181_v55  ;;  %3852 = vmatprep.subr.bf16.mxu0 %v5282_v30  ;;  %v5297_v55 = vcombine.low %v3052_v44, %v3056_v40  ;;  %v3067_v59 = vld [vmem:[%s9032_s11 + $0x200] sm:$0xff]  ;;  %v5305_v45 = vcombine.low %v3060_v5, %v3064_v32  ;;  %v6289_v7 = vld [vmem:[%s6595_s19 + $0x28] sm:$0xff] }
 0x57f   : > { %3784 = vmatpush1.bf16.msra.mxu1 %v5295_v56 }
 0x580   : > { %2851 = vmatmul.mubr.bf16.gmra.mrb[72].mxu0 %v2602_v0  ;;  %v3071_v0 = vld [vmem:[%s9032_s11 + $0x220] sm:$0xff] }
 0x581   : > { %2860 = vmatprep.mubr.bf16.mxu0 %v2605_v3  ;;  %3853 = vmatpush1.bf16.msra.mxu0 %v5281_v36  ;;  %v3063_v3 = vld [vmem:[%s9032_s11 + $0x1e0] sm:$0xff]  ;;  %v5312_v60 = vcombine.high %v3067_v59, %v3071_v0  ;;  %v5311_v41 = vcombine.low %v3067_v59, %v3071_v0 }
 0x582   : > { %3854 = vmatprep.subr.bf16.mxu0 %v5290_v61  ;;  %v5304_v31 = vcombine.high %v3059_v15, %v3063_v3  ;;  %v5303_v14 = vcombine.low %v3059_v15, %v3063_v3  ;;  %v6288_v36 = vld [vmem:[%s6595_s19 + $0x20] sm:$0xff]  ;;  %v6291_v15 = vld [vmem:[%s6595_s19 + $0x38] sm:$0xff] }
 0x584   : > { %3785 = vmatprep.subr.bf16.mxu1 %v5304_v31 }
 0x585   : > { %3855 = vmatpush1.bf16.msra.mxu0 %v5289_v39  ;;  %3786 = vmatpush1.bf16.msra.mxu1 %v5303_v14 }
 0x586   : > { %3856 = vmatprep.subr.bf16.mxu0 %v5298_v13  ;;  %3787 = vmatprep.subr.bf16.mxu1 %v5312_v60  ;;  %v6294_v60 = vld [vmem:[%s6595_s19 + $0x50] sm:$0xff] }
 0x588   : > { %2861 = vmatmul.mubr.bf16.gmra.mrb[76].mxu0 %v2604_v35  ;;  %v5306_v35 = vcombine.high %v3060_v5, %v3064_v32 }
 0x589   : > { %3857 = vmatpush1.bf16.msra.mxu0 %v5297_v55  ;;  %3788 = vmatpush1.bf16.msra.mxu1 %v5311_v41 }
 0x58a   : > { %3858 = vmatprep.subr.bf16.mxu0 %v5306_v35  ;;  %3789 = vmatprep.subr.bf16.mxu1 %v5320_v38  ;;  %v6292_v35 = vld [vmem:[%s6595_s19 + $0x40] sm:$0xff] }
 0x58d   : > { %3859 = vmatpush1.bf16.msra.mxu0 %v5305_v45  ;;  %3790 = vmatpush1.bf16.msra.mxu1 %v5319_v53  ;;  %v6297_v53 = vld [vmem:[%s6595_s19 + $0x68] sm:$0xff] }
 0x58e   : > { %3860 = vmatprep.subr.bf16.mxu0 %v5314_v11  ;;  %3791 = vmatprep.subr.bf16.mxu1 %v5328_v37 }
 0x591   : > { %3861 = vmatpush1.bf16.msra.mxu0 %v5313_v6  ;;  %3792 = vmatpush1.bf16.msra.mxu1 %v5327_v20  ;;  %v6298_v20 = vld [vmem:[%s6595_s19 + $0x70] sm:$0xff] }
 0x592   : > { %3862 = vmatprep.subr.bf16.mxu0 %v5322_v16 }
 0x595   : > { %3863 = vmatpush1.bf16.msra.mxu0 %v5321_v51 }
 0x596   : > { %3864 = vmatprep.subr.bf16.mxu0 %v5330_v48 }
 0x599   : > { %3865 = vmatpush1.bf16.msra.mxu0 %v5329_v52 }
 0x643   : > { %v2832_v57 = vpop.f32.mrb[64].mxu0 }
 0x644   : > { %v7966_v49 = vadd.f32 %v6284_v27, %v2832_v57  ;;  %v2834_v28 = vpop.f32.mrb[65].mxu0  ;;  %v3091_v27 = vld [vmem:[%s9032_s11 + $0x2c0] sm:$0xff] }
 0x645   : > { %v7969_v63 = vadd.f32 %v6285_v47, %v2834_v28  ;;  %v2836_v33 = vpop.f32.mrb[66].mxu0  ;;  %v3095_v28 = vld [vmem:[%s9032_s11 + $0x2e0] sm:$0xff]  ;;  %v3092_v47 = vld [vmem:[%s9032_s11 + $0x2c8] sm:$0xff] }
 0x646   : > { %9122 = vst [vmem:[#allocation23_spill] sm:$0xff] %v7966_v49  ;;  %v2888_v19 = vmul.f32 %v7966_v49, %v7966_v49  ;;  %v7974_v21 = vadd.f32 %v6286_v2, %v2836_v33  ;;  %v2838_v1 = vpop.f32.mrb[67].mxu0 }
 0x647   : > { %9123 = vst [vmem:[#allocation15_spill] sm:$0xff] %v7969_v63  ;;  %v2889_v4 = vmul.f32 %v7969_v63, %v7969_v63  ;;  %v7979_v30 = vadd.f32 %v6287_v17, %v2838_v1  ;;  %v5336_v1 = vcombine.high %v3091_v27, %v3095_v28 }
 0x648   : > { %9124 = vst [vmem:[#allocation17_spill] sm:$0xff] %v7974_v21  ;;  %v2890_v62 = vmul.f32 %v7974_v21, %v7974_v21 }
 0x649   : > { %9125 = vst [vmem:[#allocation22_spill] sm:$0xff] %v7979_v30  ;;  %v2891_v23 = vmul.f32 %v7979_v30, %v7979_v30  ;;  %v2904_v24 = vadd.f32 %v2889_v4, %v2888_v19  ;;  %v6299_v19 = vld [vmem:[%s6595_s19 + $0x78] sm:$0xff]  ;;  %v3096_v4 = vld [vmem:[%s9032_s11 + $0x2e8] sm:$0xff]  ;;  %3793 = vmatprep.subr.bf16.mxu1 %v5336_v1  ;;  %s8968_s19 = scalar_lea.hbm %s9035_s14, %s5479_s29 }
 0x64b   : > { %2905 = vadd.xlane.f32.xlu0 %v2904_v24  ;;  %v2842_v26 = vpop.f32.mrb[68].mxu0  ;;  %v2907_v10 = vadd.f32 %v2891_v23, %v2890_v62  ;;  %v5335_v62 = vcombine.low %v3091_v27, %v3095_v28  ;;  %v5337_v23 = vcombine.low %v3092_v47, %v3096_v4  ;;  %v5338_v24 = vcombine.high %v3092_v47, %v3096_v4  ;;  %v8118_v27 = vld [vmem:[%s9032_s11 + $0x18] sm:$0xff] }
 0x64c   : > { %v7986_v58 = vadd.f32 %v6288_v36, %v2842_v26  ;;  %v2844_v61 = vpop.f32.mrb[69].mxu0  ;;  %v3099_v36 = vld [vmem:[%s9032_s11 + $0x300] sm:$0xff] }
 0x64d   : > { %v7989_v29 = vadd.f32 %v6289_v7, %v2844_v61  ;;  %2908 = vadd.xlane.f32.xlu1 %v2907_v10  ;;  %v2846_v44 = vpop.f32.mrb[70].mxu0  ;;  %3866 = vmatprep.subr.bf16.mxu0 %v5338_v24  ;;  %v3103_v61 = vld [vmem:[%s9032_s11 + $0x320] sm:$0xff]  ;;  %v3100_v7 = vld [vmem:[%s9032_s11 + $0x308] sm:$0xff] }
 0x64e   : > { %9126 = vst [vmem:[#allocation25_spill] sm:$0xff] %v7986_v58  ;;  %v2892_v40 = vmul.f32 %v7986_v58, %v7986_v58  ;;  %v7994_v39 = vadd.f32 %v6290_v12, %v2846_v44  ;;  %v2848_v43 = vpop.f32.mrb[71].mxu0  ;;  %3794 = vmatpush1.bf16.msra.mxu1 %v5335_v62  ;;  %3867 = vmatpush1.bf16.msra.mxu0 %v5337_v23  ;;  %v3104_v12 = vld [vmem:[%s9032_s11 + $0x328] sm:$0xff] }
 0x64f   : > { %9127 = vst [vmem:[#allocation14_spill] sm:$0xff] %v7989_v29  ;;  %v2893_v13 = vmul.f32 %v7989_v29, %v7989_v29  ;;  %v7999_v3 = vadd.f32 %v6291_v15, %v2848_v43  ;;  %v5343_v43 = vcombine.low %v3099_v36, %v3103_v61  ;;  %v5346_v15 = vcombine.high %v3100_v7, %v3104_v12 }
 0x650   : > { %9128 = vst [vmem:[#allocation16_spill] sm:$0xff] %v7994_v39  ;;  %v2894_v5 = vmul.f32 %v7994_v39, %v7994_v39 }
 0x651   : > { %9129 = vst [vmem:[#allocation24_spill] sm:$0xff] %v7999_v3  ;;  %v2895_v32 = vmul.f32 %v7999_v3, %v7999_v3  ;;  %v2910_v56 = vadd.f32 %v2893_v13, %v2892_v40  ;;  %v5344_v40 = vcombine.high %v3099_v36, %v3103_v61  ;;  %v5345_v13 = vcombine.low %v3100_v7, %v3104_v12  ;;  %v2887_v12 = vld [vmem:[%s9031_s10] sm:$0x3] }
 0x652   : > { %3868 = vmatprep.subr.bf16.mxu0 %v5346_v15 }
 0x653   : > { %2911 = vadd.xlane.f32.xlu0 %v2910_v56  ;;  %v2852_v55 = vpop.f32.mrb[72].mxu0  ;;  %v2913_v31 = vadd.f32 %v2895_v32, %v2894_v5  ;;  %3795 = vmatprep.subr.bf16.mxu1 %v5344_v40  ;;  %v3107_v5 = vld [vmem:[%s9032_s11 + $0x340] sm:$0xff]  ;;  %v3108_v56 = vld [vmem:[%s9032_s11 + $0x348] sm:$0xff] }
 0x654   : > { %v8006_v59 = vadd.f32 %v6292_v35, %v2852_v55  ;;  %v2854_v0 = vpop.f32.mrb[73].mxu0  ;;  %3796 = vmatpush1.bf16.msra.mxu1 %v5343_v43  ;;  %v3111_v32 = vld [vmem:[%s9032_s11 + $0x360] sm:$0xff]  ;;  %3869 = vmatpush1.bf16.msra.mxu0 %v5345_v13 }
 0x655   : > { %v8009_v54 = vadd.f32 %v6293_v9, %v2854_v0  ;;  %2914 = vadd.xlane.f32.xlu1 %v2913_v31  ;;  %v2856_v14 = vpop.f32.mrb[74].mxu0  ;;  %v5352_v55 = vcombine.high %v3107_v5, %v3111_v32  ;;  %v3112_v31 = vld [vmem:[%s9032_s11 + $0x368] sm:$0xff]  ;;  %v5351_v35 = vcombine.low %v3107_v5, %v3111_v32  ;;  %v9138_v32 = vld [vmem:[#allocation13_spill] sm:$0xff] }
 0x656   : > { %9130 = vst [vmem:[#allocation27_spill] sm:$0xff] %v8006_v59  ;;  %v2896_v45 = vmul.f32 %v8006_v59, %v8006_v59  ;;  %v8014_v11 = vadd.f32 %v6294_v60, %v2856_v14  ;;  %v2858_v34 = vpop.f32.mrb[75].mxu0  ;;  %v5353_v0 = vcombine.low %v3108_v56, %v3112_v31  ;;  %v5354_v9 = vcombine.high %v3108_v56, %v3112_v31  ;;  %v3115_v14 = vld [vmem:[%s9032_s11 + $0x380] sm:$0xff]  ;;  %v3116_v60 = vld [vmem:[%s9032_s11 + $0x388] sm:$0xff] }
 0x657   : > { %9131 = vst [vmem:[#allocation19_spill] sm:$0xff] %v8009_v54  ;;  %v2897_v22 = vmul.f32 %v8009_v54, %v8009_v54  ;;  %v8019_v25 = vadd.f32 %v6295_v50, %v2858_v34  ;;  %3797 = vmatprep.subr.bf16.mxu1 %v5352_v55  ;;  %v3120_v50 = vld [vmem:[%s9032_s11 + $0x3a8] sm:$0xff]  ;;  %v8139_v56 = vrot.slane %v2887_v12, %v9138_v32 }
 0x658   : > { %9132 = vst [vmem:[#allocation21_spill] sm:$0xff] %v8014_v11  ;;  %v2898_v41 = vmul.f32 %v8014_v11, %v8014_v11  ;;  %3870 = vmatprep.subr.bf16.mxu0 %v5354_v9  ;;  %3798 = vmatpush1.bf16.msra.mxu1 %v5351_v35  ;;  %v9139_v55 = vld [vmem:[#allocation12_spill] sm:$0xff] }
 0x659   : > { %9133 = vst [vmem:[#allocation26_spill] sm:$0xff] %v8019_v25  ;;  %v2899_v6 = vmul.f32 %v8019_v25, %v8019_v25  ;;  %v2916_v38 = vadd.f32 %v2897_v22, %v2896_v45  ;;  %v3119_v45 = vld [vmem:[%s9032_s11 + $0x3a0] sm:$0xff]  ;;  %3871 = vmatpush1.bf16.msra.mxu0 %v5353_v0  ;;  %v8142_v31 = vrot.slane %v2887_v12, %v9139_v55 }
 0x65a   : > { %v5359_v34 = vcombine.low %v3115_v14, %v3119_v45  ;;  %v5360_v22 = vcombine.high %v3115_v14, %v3119_v45 }
 0x65b   : > { %2917 = vadd.xlane.f32.xlu0 %v2916_v38  ;;  %v2862_v16 = vpop.f32.mrb[76].mxu0  ;;  %v2919_v46 = vadd.f32 %v2899_v6, %v2898_v41  ;;  %v5361_v41 = vcombine.low %v3116_v60, %v3120_v50  ;;  %v5362_v6 = vcombine.high %v3116_v60, %v3120_v50  ;;  %v3123_v38 = vld [vmem:[%s9032_s11 + $0x3c0] sm:$0xff] }
 0x65c   : > { %v8026_v8 = vadd.f32 %v6296_v18, %v2862_v16  ;;  %v2864_v42 = vpop.f32.mrb[77].mxu0  ;;  %3799 = vmatprep.subr.bf16.mxu1 %v5360_v22  ;;  %v3127_v16 = vld [vmem:[%s9032_s11 + $0x3e0] sm:$0xff]  ;;  %v3013_v22 = vld [vmem:[%s9032_s11 + $0x50] sm:$0xff] }
 0x65d   : > { %v8029_v51 = vadd.f32 %v6297_v53, %v2864_v42  ;;  %2920 = vadd.xlane.f32.xlu1 %v2919_v46  ;;  %v2866_v37 = vpop.f32.mrb[78].mxu0  ;;  %3872 = vmatprep.subr.bf16.mxu0 %v5362_v6  ;;  %v3124_v46 = vld [vmem:[%s9032_s11 + $0x3c8] sm:$0xff]  ;;  %v5367_v18 = vcombine.low %v3123_v38, %v3127_v16  ;;  %v5368_v42 = vcombine.high %v3123_v38, %v3127_v16  ;;  %v3017_v16 = vld [vmem:[%s9032_s11 + $0x70] sm:$0xff] }
 0x65e   : > { %9134 = vst [vmem:[#allocation18_spill] sm:$0xff] %v8026_v8  ;;  %v2900_v48 = vmul.f32 %v8026_v8, %v8026_v8  ;;  %v8034_v52 = vadd.f32 %v6298_v20, %v2866_v37  ;;  %v2868_v57 = vpop.f32.mrb[79].mxu0  ;;  %3800 = vmatpush1.bf16.msra.mxu1 %v5359_v34  ;;  %3873 = vmatpush1.bf16.msra.mxu0 %v5361_v41  ;;  %v3128_v53 = vld [vmem:[%s9032_s11 + $0x3e8] sm:$0xff]  ;;  %v8108_v20 = vld [vmem:[%s9032_s11 + $0x10] sm:$0xff] }
 0x65f   : > { %9135 = vst [vmem:[#allocation20_spill] sm:$0xff] %v8029_v51  ;;  %v2901_v33 = vmul.f32 %v8029_v51, %v8029_v51  ;;  %v8048_v2 = vadd.f32 %v6299_v19, %v2868_v57  ;;  %v5369_v37 = vcombine.low %v3124_v46, %v3128_v53  ;;  %v8113_v57 = vld [vmem:[%s9032_s11 + $0x30] sm:$0xff]  ;;  %3801 = vmatprep.subr.bf16.mxu1 %v5368_v42 }
 0x660   : > { %9136 = vst [vmem:[#allocation28_spill] sm:$0xff] %v8034_v52  ;;  %v2902_v17 = vmul.f32 %v8034_v52, %v8034_v52  ;;  %v5251_v28 = vcombine.low %v8108_v20, %v8113_v57  ;;  %v5252_v47 = vcombine.high %v8108_v20, %v8113_v57  ;;  %v3029_v20 = vld [vmem:[%s9032_s11 + $0xd0] sm:$0xff] }
 0x661   : > { %9137 = vst [vmem:[#allocation30_spill] sm:$0xff] %v8048_v2  ;;  %v2903_v26 = vmul.f32 %v8048_v2, %v8048_v2  ;;  %v2922_v10 = vadd.f32 %v2901_v33, %v2900_v48  ;;  %v5370_v48 = vcombine.high %v3124_v46, %v3128_v53  ;;  %v8127_v33 = vld [vmem:[%s9032_s11 + $0x38] sm:$0xff] }
 0x662   : > { %3802 = vmatpush1.bf16.msra.mxu1 %v5367_v18  ;;  %v5253_v19 = vcombine.low %v8118_v27, %v8127_v33  ;;  %v5254_v1 = vcombine.high %v8118_v27, %v8127_v33  ;;  %v3014_v46 = vld [vmem:[%s9032_s11 + $0x58] sm:$0xff] }
 0x663   : > { %2923 = vadd.xlane.f32.xlu0 %v2922_v10  ;;  %v2925_v44 = vadd.f32 %v2903_v26, %v2902_v17  ;;  %3874 = vmatprep.subr.bf16.mxu0 %v5370_v48  ;;  %v3018_v18 = vld [vmem:[%s9032_s11 + $0x78] sm:$0xff] }
 0x664   : > { %3875 = vmatpush1.bf16.msra.mxu0 %v5369_v37  ;;  %3917 = vmatprep.subr.bf16.mxu1 %v5252_v47  ;;  %v5260_v47 = vcombine.high %v3013_v22, %v3017_v16 }
 0x665   : > { %2926 = vadd.xlane.f32.xlu1 %v2925_v44  ;;  %3990 = vmatprep.subr.bf16.mxu0 %v5254_v1  ;;  %v5262_v1 = vcombine.high %v3014_v46, %v3018_v18 }
 0x6d8   : > { %v2906_v4 = vpop.xlane.xlu0 %2905 }
 0x6d9   : > { %v2928_v17 = vmul.f32 0.00390625, %v2906_v4  ;;  %v3021_v4 = vld [vmem:[%s9032_s11 + $0x90] sm:$0xff] }
 0x6da   : > { %v2909_v62 = vpop.xlane.xlu1 %2908 }
 0x6db   : > { %v2936_v23 = vadd.f32 1e-06, %v2928_v17  ;;  %v2929_v24 = vmul.f32 0.00390625, %v2909_v62 }
 0x6dd   : > { %6082 = vrsqrt.f32 %v2936_v23  ;;  %v2937_v26 = vadd.f32 1e-06, %v2929_v24  ;;  %v3025_v23 = vld [vmem:[%s9032_s11 + $0xb0] sm:$0xff]  ;;  %v3022_v24 = vld [vmem:[%s9032_s11 + $0x98] sm:$0xff] }
 0x6df   : > { %6084 = vrsqrt.f32 %v2937_v26  ;;  %v3026_v26 = vld [vmem:[%s9032_s11 + $0xb8] sm:$0xff] }
 0x6e0   : > { %v2912_v10 = vpop.xlane.xlu0 %2911 }
 0x6e1   : > { %v2930_v36 = vmul.f32 0.00390625, %v2912_v10 }
 0x6e2   : > { %v2915_v61 = vpop.xlane.xlu1 %2914 }
 0x6e3   : > { %v2938_v7 = vadd.f32 1e-06, %v2930_v36  ;;  %v2931_v44 = vmul.f32 0.00390625, %v2915_v61 }
 0x6e5   : > { %6086 = vrsqrt.f32 %v2938_v7  ;;  %v2939_v40 = vadd.f32 1e-06, %v2931_v44  ;;  %v5259_v7 = vcombine.low %v3013_v22, %v3017_v16 }
 0x6e7   : > { %v6083_v43 = vpop.eup %6082  ;;  %6088 = vrsqrt.f32 %v2939_v40  ;;  %v5261_v40 = vcombine.low %v3014_v46, %v3018_v18  ;;  %v3041_v46 = vld [vmem:[%s9032_s11 + $0x130] sm:$0xff]  ;;  %v3038_v18 = vld [vmem:[%s9032_s11 + $0x118] sm:$0xff] }
 0x6e8   : > { %v2952_v13 = vmul.f32 %v6083_v43, %v7966_v49  ;;  %v2918_v15 = vpop.xlane.xlu0 %2917  ;;  %v2953_v5 = vmul.f32 %v6083_v43, %v7969_v63 }
 0x6e9   : > { %v6085_v35 = vpop.eup %6084  ;;  %v2932_v0 = vmul.f32 0.00390625, %v2918_v15 }
 0x6ea   : > { %v2954_v9 = vmul.f32 %v6085_v35, %v7974_v21  ;;  %v2921_v14 = vpop.xlane.xlu1 %2920  ;;  %v2955_v45 = vmul.f32 %v6085_v35, %v7979_v30  ;;  %v2980_v50 = vmul.f32 %v8142_v31, %v2953_v5  ;;  %v2979_v6 = vmul.f32 %v8139_v56, %v2952_v13 }
 0x6eb   : > { %v2940_v60 = vadd.f32 1e-06, %v2932_v0  ;;  %v2933_v34 = vmul.f32 0.00390625, %v2921_v14  ;;  %v5268_v5 = vcombine.high %v3021_v4, %v3025_v23  ;;  %v5270_v35 = vcombine.high %v3022_v24, %v3026_v26  ;;  %v3030_v0 = vld [vmem:[%s9032_s11 + $0xd8] sm:$0xff] }
 0x6ec   : > { %v2982_v41 = vmul.f32 %v8142_v31, %v2955_v45  ;;  %v2981_v38 = vmul.f32 %v8139_v56, %v2954_v9  ;;  %v3034_v9 = vld [vmem:[%s9032_s11 + $0xf8] sm:$0xff]  ;;  %v5267_v45 = vcombine.low %v3021_v4, %v3025_v23 }
 0x6ed   : > { %6090 = vrsqrt.f32 %v2940_v60  ;;  %v2941_v42 = vadd.f32 1e-06, %v2933_v34  ;;  %v5269_v34 = vcombine.low %v3022_v24, %v3026_v26  ;;  %v5277_v4 = vcombine.low %v3030_v0, %v3034_v9  ;;  %v3045_v26 = vld [vmem:[%s9032_s11 + $0x150] sm:$0xff] }
 0x6ee   : > { %v8162_v53 = vpack.c.bf16 %v2982_v41, %v2980_v50  ;;  %v8164_v37 = vpack.c.bf16 %v2981_v38, %v2979_v6  ;;  %v5278_v6 = vcombine.high %v3030_v0, %v3034_v9  ;;  %v3037_v38 = vld [vmem:[%s9032_s11 + $0x110] sm:$0xff]  ;;  %v3058_v0 = vld [vmem:[%s9032_s11 + $0x1b8] sm:$0xff] }
 0x6ef   : > { %v6087_v48 = vpop.eup %6086  ;;  %6092 = vrsqrt.f32 %v2941_v42  ;;  %v3042_v42 = vld [vmem:[%s9032_s11 + $0x138] sm:$0xff]  ;;  %v5284_v23 = vcombine.high %v3037_v38, %v3041_v46 }
 0x6f0   : > { %3803 = vmatprep.mubr.bf16.mxu1 %v8162_v53  ;;  %3876 = vmatprep.mubr.bf16.mxu0 %v8162_v53  ;;  %v2924_v17 = vpop.xlane.xlu0 %2923  ;;  %v2957_v62 = vmul.f32 %v6087_v48, %v7989_v29  ;;  %v2956_v10 = vmul.f32 %v6087_v48, %v7986_v58  ;;  %v5286_v24 = vcombine.high %v3038_v18, %v3042_v42 }
 0x6f1   : > { %v6089_v36 = vpop.eup %6088  ;;  %v2934_v61 = vmul.f32 0.00390625, %v2924_v17  ;;  %3804 = vmatmul.mubr.bf16.vlgmr.msra.gmra.mrb[48].mxu1 %v8164_v37  ;;  %3877 = vmatmul.mubr.bf16.vlgmr.msra.gmra.mrb[80].mxu0 %v8164_v37 }
 0x6f2   : > { %3918 = vmatpush1.bf16.msra.mxu1 %v5251_v28  ;;  %3991 = vmatpush1.bf16.msra.mxu0 %v5253_v19  ;;  %v2927_v44 = vpop.xlane.xlu1 %2926  ;;  %v2959_v12 = vmul.f32 %v6089_v36, %v7999_v3  ;;  %v2958_v43 = vmul.f32 %v6089_v36, %v7994_v39  ;;  %v2984_v57 = vmul.f32 %v8142_v31, %v2957_v62  ;;  %v3033_v19 = vld [vmem:[%s9032_s11 + $0xf0] sm:$0xff] }
 0x6f3   : > { %v2942_v13 = vadd.f32 1e-06, %v2934_v61  ;;  %v2935_v15 = vmul.f32 0.00390625, %v2927_v44  ;;  %3919 = vmatprep.subr.bf16.mxu1 %v5260_v47  ;;  %3992 = vmatprep.subr.bf16.mxu0 %v5262_v1  ;;  %v2983_v28 = vmul.f32 %v8139_v56, %v2956_v10  ;;  %v5276_v41 = vcombine.high %v3029_v20, %v3033_v19  ;;  %v3049_v44 = vld [vmem:[%s9032_s11 + $0x170] sm:$0xff] }
 0x6f4   : > { %v2986_v27 = vmul.f32 %v8142_v31, %v2959_v12  ;;  %v2985_v33 = vmul.f32 %v8139_v56, %v2958_v43  ;;  %v5275_v1 = vcombine.low %v3029_v20, %v3033_v19  ;;  %v3050_v12 = vld [vmem:[%s9032_s11 + $0x178] sm:$0xff]  ;;  %v5283_v43 = vcombine.low %v3037_v38, %v3041_v46 }
 0x6f5   : > { %6094 = vrsqrt.f32 %v2942_v13  ;;  %v2943_v14 = vadd.f32 1e-06, %v2935_v15  ;;  %v5285_v15 = vcombine.low %v3038_v18, %v3042_v42  ;;  %v5292_v20 = vcombine.high %v3045_v26, %v3049_v44  ;;  %v3054_v19 = vld [vmem:[%s9032_s11 + $0x198] sm:$0xff] }
 0x6f6   : > { %3920 = vmatpush1.bf16.msra.mxu1 %v5259_v7  ;;  %3993 = vmatpush1.bf16.msra.mxu0 %v5261_v40  ;;  %v8208_v60 = vpack.c.bf16 %v2986_v27, %v2984_v57  ;;  %v8210_v22 = vpack.c.bf16 %v2985_v33, %v2983_v28  ;;  %v3046_v40 = vld [vmem:[%s9032_s11 + $0x158] sm:$0xff]  ;;  %v3053_v27 = vld [vmem:[%s9032_s11 + $0x190] sm:$0xff]  ;;  %v5302_v38 = vcombine.high %v3054_v19, %v3058_v0 }
 0x6f7   : > { %v6091_v50 = vpop.eup %6090  ;;  %6096 = vrsqrt.f32 %v2943_v14  ;;  %3921 = vmatprep.subr.bf16.mxu1 %v5268_v5  ;;  %3994 = vmatprep.subr.bf16.mxu0 %v5270_v35  ;;  %v5294_v57 = vcombine.high %v3046_v40, %v3050_v12  ;;  %v3057_v33 = vld [vmem:[%s9032_s11 + $0x1b0] sm:$0xff] }
 0x6f8   : > { %3813 = vmatprep.mubr.bf16.mxu1 %v8208_v60  ;;  %3886 = vmatprep.mubr.bf16.mxu0 %v8208_v60  ;;  %v2961_v16 = vmul.f32 %v6091_v50, %v8009_v54  ;;  %v2960_v48 = vmul.f32 %v6091_v50, %v8006_v59 }
 0x6f9   : > { %v6093_v47 = vpop.eup %6092  ;;  %3814 = vmatmul.mubr.bf16.gmra.mrb[52].mxu1 %v8210_v22  ;;  %3887 = vmatmul.mubr.bf16.gmra.mrb[84].mxu0 %v8210_v22 }
 0x6fa   : > { %3922 = vmatpush1.bf16.msra.mxu1 %v5267_v45  ;;  %3995 = vmatpush1.bf16.msra.mxu0 %v5269_v34  ;;  %v2963_v17 = vmul.f32 %v6093_v47, %v8019_v25  ;;  %v2962_v62 = vmul.f32 %v6093_v47, %v8014_v11  ;;  %v2988_v10 = vmul.f32 %v8142_v31, %v2961_v16 }
 0x6fb   : > { %3923 = vmatprep.subr.bf16.mxu1 %v5276_v41  ;;  %3996 = vmatprep.subr.bf16.mxu0 %v5278_v6  ;;  %v2987_v61 = vmul.f32 %v8139_v56, %v2960_v48  ;;  %v5291_v45 = vcombine.low %v3045_v26, %v3049_v44  ;;  %v5293_v34 = vcombine.low %v3046_v40, %v3050_v12  ;;  %v3061_v48 = vld [vmem:[%s9032_s11 + $0x1d0] sm:$0xff] }
 0x6fc   : > { %v2990_v36 = vmul.f32 %v8142_v31, %v2963_v17  ;;  %v2989_v7 = vmul.f32 %v8139_v56, %v2962_v62  ;;  %v5300_v6 = vcombine.high %v3053_v27, %v3057_v33  ;;  %v5299_v47 = vcombine.low %v3053_v27, %v3057_v33  ;;  %v3085_v33 = vld [vmem:[%s9032_s11 + $0x290] sm:$0xff] }
 0x6fd   : > { %v5301_v17 = vcombine.low %v3054_v19, %v3058_v0  ;;  %v3089_v19 = vld [vmem:[%s9032_s11 + $0x2b0] sm:$0xff]  ;;  %v3086_v0 = vld [vmem:[%s9032_s11 + $0x298] sm:$0xff] }
 0x6fe   : > { %3924 = vmatpush1.bf16.msra.mxu1 %v5275_v1  ;;  %3997 = vmatpush1.bf16.msra.mxu0 %v5277_v4  ;;  %v8248_v13 = vpack.c.bf16 %v2990_v36, %v2988_v10  ;;  %v8250_v5 = vpack.c.bf16 %v2989_v7, %v2987_v61  ;;  %v3065_v1 = vld [vmem:[%s9032_s11 + $0x1f0] sm:$0xff]  ;;  %v3062_v4 = vld [vmem:[%s9032_s11 + $0x1d8] sm:$0xff] }
 0x6ff   : > { %v6095_v35 = vpop.eup %6094  ;;  %3925 = vmatprep.subr.bf16.mxu1 %v5284_v23  ;;  %3998 = vmatprep.subr.bf16.mxu0 %v5286_v24  ;;  %v3069_v23 = vld [vmem:[%s9032_s11 + $0x210] sm:$0xff]  ;;  %v5308_v24 = vcombine.high %v3061_v48, %v3065_v1  ;;  %v3070_v36 = vld [vmem:[%s9032_s11 + $0x218] sm:$0xff]  ;;  %v5307_v7 = vcombine.low %v3061_v48, %v3065_v1 }
 0x700   : > { %3823 = vmatprep.mubr.bf16.mxu1 %v8248_v13  ;;  %3896 = vmatprep.mubr.bf16.mxu0 %v8248_v13  ;;  %v2965_v28 = vmul.f32 %v6095_v35, %v8029_v51  ;;  %v2964_v9 = vmul.f32 %v6095_v35, %v8026_v8  ;;  %v3073_v10 = vld [vmem:[%s9032_s11 + $0x230] sm:$0xff]  ;;  %v3074_v61 = vld [vmem:[%s9032_s11 + $0x238] sm:$0xff] }
 0x701   : > { %v6097_v14 = vpop.eup %6096  ;;  %3824 = vmatmul.mubr.bf16.gmra.mrb[56].mxu1 %v8250_v5  ;;  %3897 = vmatmul.mubr.bf16.gmra.mrb[88].mxu0 %v8250_v5  ;;  %v5316_v40 = vcombine.high %v3069_v23, %v3073_v10  ;;  %v5318_v12 = vcombine.high %v3070_v36, %v3074_v61  ;;  %v3078_v35 = vld [vmem:[%s9032_s11 + $0x258] sm:$0xff]  ;;  %v3105_v1 = vld [vmem:[%s9032_s11 + $0x330] sm:$0xff] }
 0x702   : > { %3926 = vmatpush1.bf16.msra.mxu1 %v5283_v43  ;;  %3999 = vmatpush1.bf16.msra.mxu0 %v5285_v15  ;;  %v2967_v50 = vmul.f32 %v6097_v14, %v8048_v2  ;;  %v2966_v41 = vmul.f32 %v6097_v14, %v8034_v52  ;;  %v2992_v16 = vmul.f32 %v8142_v31, %v2965_v28  ;;  %v3077_v43 = vld [vmem:[%s9032_s11 + $0x250] sm:$0xff] }
 0x703   : > { %3927 = vmatprep.subr.bf16.mxu1 %v5292_v20  ;;  %4000 = vmatprep.subr.bf16.mxu0 %v5294_v57  ;;  %v2991_v18 = vmul.f32 %v8139_v56, %v2964_v9  ;;  %v3081_v15 = vld [vmem:[%s9032_s11 + $0x270] sm:$0xff]  ;;  %v5315_v20 = vcombine.low %v3069_v23, %v3073_v10  ;;  %v5317_v57 = vcombine.low %v3070_v36, %v3074_v61  ;;  %v3090_v9 = vld [vmem:[%s9032_s11 + $0x2b8] sm:$0xff] }
 0x704   : > { %v2994_v46 = vmul.f32 %v8142_v31, %v2967_v50  ;;  %v2993_v42 = vmul.f32 %v8139_v56, %v2966_v41  ;;  %v3066_v31 = vld [vmem:[%s9032_s11 + $0x1f8] sm:$0xff]  ;;  %v5324_v27 = vcombine.high %v3077_v43, %v3081_v15  ;;  %v5323_v14 = vcombine.low %v3077_v43, %v3081_v15  ;;  %v3093_v41 = vld [vmem:[%s9032_s11 + $0x2d0] sm:$0xff] }
 0x705   : > { %v5310_v26 = vcombine.high %v3062_v4, %v3066_v31  ;;  %v5309_v44 = vcombine.low %v3062_v4, %v3066_v31  ;;  %v5334_v50 = vcombine.high %v3086_v0, %v3090_v9  ;;  %v3102_v4 = vld [vmem:[%s9032_s11 + $0x318] sm:$0xff]  ;;  %v3109_v10 = vld [vmem:[%s9032_s11 + $0x350] sm:$0xff] }
 0x706   : > { %3928 = vmatpush1.bf16.msra.mxu1 %v5291_v45  ;;  %4001 = vmatpush1.bf16.msra.mxu0 %v5293_v34  ;;  %v8288_v56 = vpack.c.bf16 %v2994_v46, %v2992_v16  ;;  %v8290_v62 = vpack.c.bf16 %v2993_v42, %v2991_v18  ;;  %v5332_v34 = vcombine.high %v3085_v33, %v3089_v19  ;;  %v3098_v16 = vld [vmem:[%s9032_s11 + $0x2f8] sm:$0xff]  ;;  %v3113_v36 = vld [vmem:[%s9032_s11 + $0x370] sm:$0xff] }
 0x707   : > { %3929 = vmatprep.subr.bf16.mxu1 %v5300_v6  ;;  %4002 = vmatprep.subr.bf16.mxu0 %v5302_v38  ;;  %v3097_v6 = vld [vmem:[%s9032_s11 + $0x2f0] sm:$0xff]  ;;  %v3094_v38 = vld [vmem:[%s9032_s11 + $0x2d8] sm:$0xff]  ;;  %v5331_v46 = vcombine.low %v3085_v33, %v3089_v19  ;;  %v5333_v18 = vcombine.low %v3086_v0, %v3090_v9 }
 0x708   : > { %3833 = vmatprep.mubr.bf16.mxu1 %v8288_v56  ;;  %3906 = vmatprep.mubr.bf16.mxu0 %v8288_v56  ;;  %v5340_v42 = vcombine.high %v3093_v41, %v3097_v6  ;;  %v5342_v48 = vcombine.high %v3094_v38, %v3098_v16  ;;  %v3106_v31 = vld [vmem:[%s9032_s11 + $0x338] sm:$0xff]  ;;  %v5341_v23 = vcombine.low %v3094_v38, %v3098_v16  ;;  %v3117_v15 = vld [vmem:[%s9032_s11 + $0x390] sm:$0xff] }
 0x709   : > { %3834 = vmatmul.mubr.bf16.gmra.mrb[60].mxu1 %v8290_v62  ;;  %3907 = vmatmul.mubr.bf16.gmra.mrb[92].mxu0 %v8290_v62  ;;  %v3110_v61 = vld [vmem:[%s9032_s11 + $0x358] sm:$0xff]  ;;  %v3125_v19 = vld [vmem:[%s9032_s11 + $0x3d0] sm:$0xff] }
 0x70a   : > { %3930 = vmatpush1.bf16.msra.mxu1 %v5299_v47  ;;  %4003 = vmatpush1.bf16.msra.mxu0 %v5301_v17  ;;  %v3101_v47 = vld [vmem:[%s9032_s11 + $0x310] sm:$0xff]  ;;  %v5339_v17 = vcombine.low %v3093_v41, %v3097_v6  ;;  %v3126_v9 = vld [vmem:[%s9032_s11 + $0x3d8] sm:$0xff] }
 0x70b   : > { %3949 = vmatprep.mubr.bf16.mxu1 %v8162_v53  ;;  %4022 = vmatprep.mubr.bf16.mxu0 %v8162_v53  ;;  %v3082_v53 = vld [vmem:[%s9032_s11 + $0x278] sm:$0xff]  ;;  %v3129_v0 = vld [vmem:[%s9032_s11 + $0x3f0] sm:$0xff] }
 0x70c   : > { %3931 = vmatprep.subr.bf16.mxu1 %v5308_v24  ;;  %4004 = vmatprep.subr.bf16.mxu0 %v5310_v26  ;;  %v5326_v28 = vcombine.high %v3078_v35, %v3082_v53  ;;  %v5325_v45 = vcombine.low %v3078_v35, %v3082_v53  ;;  %v5348_v24 = vcombine.high %v3101_v47, %v3105_v1  ;;  %v3121_v35 = vld [vmem:[%s9032_s11 + $0x3b0] sm:$0xff]  ;;  %v3118_v53 = vld [vmem:[%s9032_s11 + $0x398] sm:$0xff] }
 0x70d   : > { %v5350_v26 = vcombine.high %v3102_v4, %v3106_v31  ;;  %v5371_v6 = vcombine.low %v3125_v19, %v3129_v0  ;;  %v5883_v16 = vld [vmem:[%s9033_s12 + $0x30] ss:$8 sps:$4 sm:$0xff]  }
 0x70e   : > { %3932 = vmatpush1.bf16.msra.mxu1 %v5307_v7  ;;  %4005 = vmatpush1.bf16.msra.mxu0 %v5309_v44  ;;  %v3114_v7 = vld [vmem:[%s9032_s11 + $0x378] sm:$0xff]  ;;  %v5347_v44 = vcombine.low %v3101_v47, %v3105_v1  ;;  %v5894_v47 = vld [vmem:[%s9033_s12 + $0x64] ss:$8 sps:$4 sm:$0xff]   ;;  %v5892_v1 = vld [vmem:[%s9033_s12 + $0x60] ss:$8 sps:$4 sm:$0xff]  }
 0x70f   : > { %3933 = vmatprep.subr.bf16.mxu1 %v5316_v40  ;;  %4006 = vmatprep.subr.bf16.mxu0 %v5318_v12  ;;  %v5349_v40 = vcombine.low %v3102_v4, %v3106_v31  ;;  %v5356_v12 = vcombine.high %v3109_v10, %v3113_v36  ;;  %v5358_v43 = vcombine.high %v3110_v61, %v3114_v7  ;;  %v5897_v4 = vld [vmem:[%s9033_s12 + $0x74] ss:$8 sps:$4 sm:$0xff]   ;;  %v5895_v31 = vld [vmem:[%s9033_s12 + $0x70] ss:$8 sps:$4 sm:$0xff]  }
 0x712   : > { %3934 = vmatpush1.bf16.msra.mxu1 %v5315_v20  ;;  %4007 = vmatpush1.bf16.msra.mxu0 %v5317_v57  ;;  %v3122_v20 = vld [vmem:[%s9032_s11 + $0x3b8] sm:$0xff]  ;;  %v5355_v57 = vcombine.low %v3109_v10, %v3113_v36  ;;  %v5906_v10 = vld [vmem:[%s9033_s12 + $0xa4] ss:$8 sps:$4 sm:$0xff]   ;;  %v5904_v36 = vld [vmem:[%s9033_s12 + $0xa0] ss:$8 sps:$4 sm:$0xff]  }
 0x713   : > { %3935 = vmatprep.subr.bf16.mxu1 %v5324_v27  ;;  %4008 = vmatprep.subr.bf16.mxu0 %v5326_v28  ;;  %v5357_v27 = vcombine.low %v3110_v61, %v3114_v7  ;;  %v5364_v28 = vcombine.high %v3117_v15, %v3121_v35  ;;  %v5366_v33 = vcombine.high %v3118_v53, %v3122_v20  ;;  %v5909_v61 = vld [vmem:[%s9033_s12 + $0xb4] ss:$8 sps:$4 sm:$0xff]   ;;  %v5907_v7 = vld [vmem:[%s9033_s12 + $0xb0] ss:$8 sps:$4 sm:$0xff]  }
 0x716   : > { %3936 = vmatpush1.bf16.msra.mxu1 %v5323_v14  ;;  %4009 = vmatpush1.bf16.msra.mxu0 %v5325_v45  ;;  %v3130_v14 = vld [vmem:[%s9032_s11 + $0x3f8] sm:$0xff]  ;;  %v5363_v45 = vcombine.low %v3117_v15, %v3121_v35  ;;  %v5918_v15 = vld [vmem:[%s9033_s12 + $0xe4] ss:$8 sps:$4 sm:$0xff]   ;;  %v5916_v35 = vld [vmem:[%s9033_s12 + $0xe0] ss:$8 sps:$4 sm:$0xff]  }
 0x717   : > { %3937 = vmatprep.subr.bf16.mxu1 %v5332_v34  ;;  %4010 = vmatprep.subr.bf16.mxu0 %v5334_v50  ;;  %v5365_v34 = vcombine.low %v3118_v53, %v3122_v20  ;;  %v5372_v50 = vcombine.high %v3125_v19, %v3129_v0  ;;  %v5374_v41 = vcombine.high %v3126_v9, %v3130_v14  ;;  %v5921_v53 = vld [vmem:[%s9033_s12 + $0xf4] ss:$8 sps:$4 sm:$0xff]   ;;  %v5919_v20 = vld [vmem:[%s9033_s12 + $0xf0] ss:$8 sps:$4 sm:$0xff]  }
 0x718   : > { %v5373_v38 = vcombine.low %v3126_v9, %v3130_v14 }
 0x71a   : > { %3938 = vmatpush1.bf16.msra.mxu1 %v5331_v46  ;;  %4011 = vmatpush1.bf16.msra.mxu0 %v5333_v18  ;;  %v5888_v46 = vld [vmem:[%s9033_s12 + $0x44] ss:$8 sps:$4 sm:$0xff]   ;;  %v5886_v18 = vld [vmem:[%s9033_s12 + $0x40] ss:$8 sps:$4 sm:$0xff]  }
 0x71b   : > { %3939 = vmatprep.subr.bf16.mxu1 %v5340_v42  ;;  %4012 = vmatprep.subr.bf16.mxu0 %v5342_v48  ;;  %v5891_v42 = vld [vmem:[%s9033_s12 + $0x54] ss:$8 sps:$4 sm:$0xff]   ;;  %v5889_v48 = vld [vmem:[%s9033_s12 + $0x50] ss:$8 sps:$4 sm:$0xff]  }
 0x71e   : > { %3940 = vmatpush1.bf16.msra.mxu1 %v5339_v17  ;;  %4013 = vmatpush1.bf16.msra.mxu0 %v5341_v23  ;;  %v5900_v17 = vld [vmem:[%s9033_s12 + $0x84] ss:$8 sps:$4 sm:$0xff]   ;;  %v5898_v23 = vld [vmem:[%s9033_s12 + $0x80] ss:$8 sps:$4 sm:$0xff]  }
 0x71f   : > { %3941 = vmatprep.subr.bf16.mxu1 %v5348_v24  ;;  %4014 = vmatprep.subr.bf16.mxu0 %v5350_v26  ;;  %v5903_v24 = vld [vmem:[%s9033_s12 + $0x94] ss:$8 sps:$4 sm:$0xff]   ;;  %v5901_v26 = vld [vmem:[%s9033_s12 + $0x90] ss:$8 sps:$4 sm:$0xff]  }
 0x722   : > { %3942 = vmatpush1.bf16.msra.mxu1 %v5347_v44  ;;  %4015 = vmatpush1.bf16.msra.mxu0 %v5349_v40  ;;  %v5912_v44 = vld [vmem:[%s9033_s12 + $0xc4] ss:$8 sps:$4 sm:$0xff]   ;;  %v5910_v40 = vld [vmem:[%s9033_s12 + $0xc0] ss:$8 sps:$4 sm:$0xff]  }
 0x723   : > { %3943 = vmatprep.subr.bf16.mxu1 %v5356_v12  ;;  %4016 = vmatprep.subr.bf16.mxu0 %v5358_v43  ;;  %v5915_v12 = vld [vmem:[%s9033_s12 + $0xd4] ss:$8 sps:$4 sm:$0xff]   ;;  %v5913_v43 = vld [vmem:[%s9033_s12 + $0xd0] ss:$8 sps:$4 sm:$0xff]  }
 0x726   : > { %3944 = vmatpush1.bf16.msra.mxu1 %v5355_v57  ;;  %4017 = vmatpush1.bf16.msra.mxu0 %v5357_v27  ;;  %v5924_v57 = vld [vmem:[%s9033_s12 + $0x104] ss:$8 sps:$4 sm:$0xff]  }
 0x727   : > { %3945 = vmatprep.subr.bf16.mxu1 %v5364_v28  ;;  %4018 = vmatprep.subr.bf16.mxu0 %v5366_v33 }
 0x72a   : > { %3946 = vmatpush1.bf16.msra.mxu1 %v5363_v45  ;;  %4019 = vmatpush1.bf16.msra.mxu0 %v5365_v34 }
 0x72b   : > { %3947 = vmatprep.subr.bf16.mxu1 %v5372_v50  ;;  %4020 = vmatprep.subr.bf16.mxu0 %v5374_v41 }
 0x72e   : > { %3948 = vmatpush1.bf16.msra.mxu1 %v5371_v6  ;;  %4021 = vmatpush1.bf16.msra.mxu0 %v5373_v38 }
 0x731   : > { %3950 = vmatmul.mubr.bf16.vlgmr.msra.gmra.mrb[64].mxu1 %v8164_v37  ;;  %4023 = vmatmul.mubr.bf16.vlgmr.msra.gmra.mrb[96].mxu0 %v8164_v37  ;;  %v5876_v37 = vld [vmem:[%s9033_s12 + $0x4] ss:$8 sps:$4 sm:$0xff]  }
 0x732   : > { %3959 = vmatprep.mubr.bf16.mxu1 %v8208_v60  ;;  %4032 = vmatprep.mubr.bf16.mxu0 %v8208_v60  ;;  %v5874_v60 = vld [vmem:[%s9033_s12] ss:$8 sps:$4 sm:$0xff]  }
 0x733   : > { %4719 = vmatprep.subr.bf16.mxu1 %v5876_v37 }
 0x734   : > { %4720 = vmatpush1.bf16.msra.mxu1 %v5874_v60 }
 0x739   : > { %3960 = vmatmul.mubr.bf16.gmra.mrb[68].mxu1 %v8210_v22  ;;  %4033 = vmatmul.mubr.bf16.gmra.mrb[100].mxu0 %v8210_v22  ;;  %v5879_v22 = vld [vmem:[%s9033_s12 + $0x14] ss:$8 sps:$4 sm:$0xff]  }
 0x73a   : > { %3969 = vmatprep.mubr.bf16.mxu1 %v8248_v13  ;;  %4042 = vmatprep.mubr.bf16.mxu0 %v8248_v13  ;;  %v5877_v13 = vld [vmem:[%s9033_s12 + $0x10] ss:$8 sps:$4 sm:$0xff]  }
 0x73b   : > { %4721 = vmatprep.subr.bf16.mxu1 %v5879_v22 }
 0x73c   : > { %4722 = vmatpush1.bf16.msra.mxu1 %v5877_v13 }
 0x741   : > { %3970 = vmatmul.mubr.bf16.gmra.mrb[72].mxu1 %v8250_v5  ;;  %4043 = vmatmul.mubr.bf16.gmra.mrb[104].mxu0 %v8250_v5  ;;  %v5882_v5 = vld [vmem:[%s9033_s12 + $0x24] ss:$8 sps:$4 sm:$0xff]  }
 0x742   : > { %3979 = vmatprep.mubr.bf16.mxu1 %v8288_v56  ;;  %4052 = vmatprep.mubr.bf16.mxu0 %v8288_v56  ;;  %v5880_v56 = vld [vmem:[%s9033_s12 + $0x20] ss:$8 sps:$4 sm:$0xff]  }
 0x743   : > { %4723 = vmatprep.subr.bf16.mxu1 %v5882_v5 }
 0x744   : > { %4724 = vmatpush1.bf16.msra.mxu1 %v5880_v56 }
 0x749   : > { %3980 = vmatmul.mubr.bf16.gmra.mrb[76].mxu1 %v8290_v62  ;;  %4053 = vmatmul.mubr.bf16.gmra.mrb[108].mxu0 %v8290_v62  ;;  %v5885_v62 = vld [vmem:[%s9033_s12 + $0x34] ss:$8 sps:$4 sm:$0xff]  }
 0x74a   : > { %4725 = vmatprep.subr.bf16.mxu1 %v5885_v62 }
 0x74b   : > { %4726 = vmatpush1.bf16.msra.mxu1 %v5883_v16 }
 0x74c   : > { %4727 = vmatprep.subr.bf16.mxu1 %v5888_v46 }
 0x74f   : > { %4728 = vmatpush1.bf16.msra.mxu1 %v5886_v18 }
 0x750   : > { %4729 = vmatprep.subr.bf16.mxu1 %v5891_v42 }
 0x753   : > { %4730 = vmatpush1.bf16.msra.mxu1 %v5889_v48 }
 0x754   : > { %4731 = vmatprep.subr.bf16.mxu1 %v5894_v47 }
 0x757   : > { %4732 = vmatpush1.bf16.msra.mxu1 %v5892_v1 }
 0x758   : > { %4733 = vmatprep.subr.bf16.mxu1 %v5897_v4 }
 0x75b   : > { %4734 = vmatpush1.bf16.msra.mxu1 %v5895_v31 }
 0x75c   : > { %4735 = vmatprep.subr.bf16.mxu1 %v5900_v17 }
 0x75f   : > { %4736 = vmatpush1.bf16.msra.mxu1 %v5898_v23 }
 0x760   : > { %4737 = vmatprep.subr.bf16.mxu1 %v5903_v24 }
 0x763   : > { %4738 = vmatpush1.bf16.msra.mxu1 %v5901_v26 }
 0x764   : > { %4739 = vmatprep.subr.bf16.mxu1 %v5906_v10 }
 0x767   : > { %4740 = vmatpush1.bf16.msra.mxu1 %v5904_v36 }
 0x768   : > { %4741 = vmatprep.subr.bf16.mxu1 %v5909_v61 }
 0x76b   : > { %4742 = vmatpush1.bf16.msra.mxu1 %v5907_v7 }
 0x76c   : > { %4743 = vmatprep.subr.bf16.mxu1 %v5912_v44 }
 0x76f   : > { %4744 = vmatpush1.bf16.msra.mxu1 %v5910_v40 }
 0x770   : > { %4745 = vmatprep.subr.bf16.mxu1 %v5915_v12 }
 0x773   : > { %4746 = vmatpush1.bf16.msra.mxu1 %v5913_v43 }
 0x774   : > { %4747 = vmatprep.subr.bf16.mxu1 %v5918_v15 }
 0x777   : > { %4748 = vmatpush1.bf16.msra.mxu1 %v5916_v35 }
 0x778   : > { %4749 = vmatprep.subr.bf16.mxu1 %v5921_v53 }
 0x77b   : > { %4750 = vmatpush1.bf16.msra.mxu1 %v5919_v20 }
 0x77c   : > { %4792 = vmatprep.subr.bf16.mxu1 %v5924_v57 }
 0x7c4   : > { %v8507_v27 = vpop.f32.mrb[48].mxu1  ;;  %v8509_v28 = vpop.f32.mrb[80].mxu0 }
 0x7c5   : > { %v8511_v33 = vpop.f32.mrb[49].mxu1  ;;  %v8513_v19 = vpop.f32.mrb[81].mxu0  ;;  %v5375_v34 = vmul.f32 -1.442695, %v8507_v27  ;;  %v5377_v50 = vmul.f32 -1.442695, %v8509_v28 }
 0x7c6   : > { %v8515_v0 = vpop.f32.mrb[50].mxu1  ;;  %v8517_v9 = vpop.f32.mrb[82].mxu0  ;;  %v5376_v41 = vmul.f32 -1.442695, %v8511_v33  ;;  %v5378_v37 = vmul.f32 -1.442695, %v8513_v19 }
 0x7c7   : > { %v8519_v14 = vpop.f32.mrb[51].mxu1  ;;  %v8521_v45 = vpop.f32.mrb[83].mxu0  ;;  %6098 = vpow2.f32 %v5375_v34  ;;  %v5379_v13 = vmul.f32 -1.442695, %v8515_v0  ;;  %v5381_v62 = vmul.f32 -1.442695, %v8517_v9 }
 0x7c8   : > { %6100 = vpow2.f32 %v5377_v50  ;;  %v5380_v18 = vmul.f32 -1.442695, %v8519_v14  ;;  %v5382_v42 = vmul.f32 -1.442695, %v8521_v45 }
 0x7c9   : > { %6102 = vpow2.f32 %v5376_v41 }
 0x7ca   : > { %6104 = vpow2.f32 %v5378_v37 }
 0x7cb   : > { %6106 = vpow2.f32 %v5379_v13 }
 0x7cc   : > { %v8526_v6 = vpop.f32.mrb[52].mxu1  ;;  %v8528_v38 = vpop.f32.mrb[84].mxu0  ;;  %6108 = vpow2.f32 %v5381_v62 }
 0x7cd   : > { %v8531_v60 = vpop.f32.mrb[53].mxu1  ;;  %v8533_v22 = vpop.f32.mrb[85].mxu0  ;;  %v5383_v48 = vmul.f32 -1.442695, %v8526_v6  ;;  %6110 = vpow2.f32 %v5380_v18  ;;  %v5385_v4 = vmul.f32 -1.442695, %v8528_v38 }
 0x7ce   : > { %v8536_v5 = vpop.f32.mrb[54].mxu1  ;;  %v8538_v56 = vpop.f32.mrb[86].mxu0  ;;  %6112 = vpow2.f32 %v5382_v42  ;;  %v5384_v17 = vmul.f32 -1.442695, %v8531_v60  ;;  %v5386_v26 = vmul.f32 -1.442695, %v8533_v22 }
 0x7cf   : > { %v8541_v16 = vpop.f32.mrb[55].mxu1  ;;  %v8543_v46 = vpop.f32.mrb[87].mxu0  ;;  %6114 = vpow2.f32 %v5383_v48  ;;  %v5387_v61 = vmul.f32 -1.442695, %v8536_v5 }
 0x7d0   : > { %6116 = vpow2.f32 %v5385_v4  ;;  %v5388_v2 = vmul.f32 -1.442695, %v8541_v16 }
 0x7d1   : > { %v6099_v36 = vpop.eup %6098  ;;  %6118 = vpow2.f32 %v5384_v17 }
 0x7d2   : > { %v6101_v40 = vpop.eup %6100  ;;  %v4159_v15 = vadd.f32 1.0, %v6099_v36  ;;  %6120 = vpow2.f32 %v5386_v26 }
 0x7d3   : > { %v6103_v12 = vpop.eup %6102  ;;  %v4161_v53 = vadd.f32 1.0, %v6101_v40  ;;  %6122 = vpow2.f32 %v5387_v61 }
 0x7d4   : > { %v8548_v47 = vpop.f32.mrb[56].mxu1  ;;  %v8550_v1 = vpop.f32.mrb[88].mxu0  ;;  %v4160_v50 = vadd.f32 1.0, %v6103_v12  ;;  %6124 = vrcp.f32 %v4159_v15  ;;  %v5389_v15 = vmul.f32 -1.442695, %v8538_v56 }
 0x7d5   : > { %v8553_v31 = vpop.f32.mrb[57].mxu1  ;;  %v8556_v23 = vpop.f32.mrb[89].mxu0  ;;  %6126 = vrcp.f32 %v4161_v53 }
 0x7d6   : > { %v8558_v24 = vpop.f32.mrb[58].mxu1  ;;  %v8561_v10 = vpop.f32.mrb[90].mxu0  ;;  %6128 = vrcp.f32 %v4160_v50 }
 0x7d7   : > { %v8564_v7 = vpop.f32.mrb[59].mxu1  ;;  %v8566_v44 = vpop.f32.mrb[91].mxu0 }
 0x7d8   : > { %v6105_v43 = vpop.eup %6104 }
 0x7d9   : > { %v6107_v35 = vpop.eup %6106  ;;  %v4162_v13 = vadd.f32 1.0, %v6105_v43 }
 0x7da   : > { %v6109_v34 = vpop.eup %6108  ;;  %v4163_v48 = vadd.f32 1.0, %v6107_v35 }
 0x7db   : > { %v6111_v37 = vpop.eup %6110  ;;  %v4165_v36 = vadd.f32 1.0, %v6109_v34  ;;  %6130 = vrcp.f32 %v4162_v13 }
 0x7dc   : > { %v8568_v20 = vpop.f32.mrb[60].mxu1  ;;  %v8570_v57 = vpop.f32.mrb[92].mxu0  ;;  %v4164_v40 = vadd.f32 1.0, %v6111_v37  ;;  %6132 = vrcp.f32 %v4163_v48  ;;  %v5390_v48 = vmul.f32 -1.442695, %v8543_v46 }
 0x7dd   : > { %v8572_v41 = vpop.f32.mrb[61].mxu1  ;;  %v8574_v62 = vpop.f32.mrb[93].mxu0  ;;  %6134 = vrcp.f32 %v4165_v36  ;;  %v5391_v36 = vmul.f32 -1.442695, %v8548_v47  ;;  %v5401_v25 = vmul.f32 -1.442695, %v8570_v57 }
 0x7de   : > { %v8576_v18 = vpop.f32.mrb[62].mxu1  ;;  %v6113_v42 = vpop.eup %6112  ;;  %6136 = vrcp.f32 %v4164_v40 }
 0x7df   : > { %v8578_v4 = vpop.f32.mrb[94].mxu0  ;;  %v8580_v17 = vpop.f32.mrb[63].mxu1  ;;  %v4166_v12 = vadd.f32 1.0, %v6113_v42 }
 0x7e0   : > { %v6115_v26 = vpop.eup %6114  ;;  %v8582_v61 = vpop.f32.mrb[95].mxu0 }
 0x7e1   : > { %9140 = vst [vmem:[#allocation29_spill] sm:$0xff] %v8582_v61  ;;  %v6117_v43 = vpop.eup %6116  ;;  %v4167_v55 = vadd.f32 1.0, %v6115_v26  ;;  %6138 = vrcp.f32 %v4166_v12  ;;  %v5394_v12 = vmul.f32 -1.442695, %v8556_v23 }
 0x7e2   : > { %v6119_v32 = vpop.eup %6118  ;;  %v4169_v53 = vadd.f32 1.0, %v6117_v43 }
 0x7e3   : > { %v6121_v35 = vpop.eup %6120  ;;  %6140 = vrcp.f32 %v4167_v55  ;;  %v4168_v34 = vadd.f32 1.0, %v6119_v32  ;;  %v5393_v32 = vmul.f32 -1.442695, %v8550_v1 }
 0x7e4   : > { %v6123_v52 = vpop.eup %6122  ;;  %v4170_v50 = vadd.f32 1.0, %v6121_v35  ;;  %6142 = vpow2.f32 %v5389_v15  ;;  %v5395_v15 = vmul.f32 -1.442695, %v8558_v24 }
 0x7e5   : > { %v8586_v37 = vpop.eup %6124  ;;  %v4171_v13 = vadd.f32 1.0, %v6123_v52  ;;  %6144 = vpow2.f32 %v5388_v2  ;;  %v5392_v52 = vmul.f32 -1.442695, %v8553_v31 }
 0x7e6   : > { %v8588_v42 = vpop.eup %6126  ;;  %6146 = vrcp.f32 %v4169_v53  ;;  %v5397_v53 = vmul.f32 -1.442695, %v8561_v10 }
 0x7e7   : > { %v8591_v26 = vpop.eup %6128  ;;  %6148 = vrcp.f32 %v4168_v34 }
 0x7e8   : > { %v8594_v40 = vpop.eup %6130  ;;  %6150 = vrcp.f32 %v4170_v50  ;;  %v5396_v50 = vmul.f32 -1.442695, %v8564_v7 }
 0x7e9   : > { %v8597_v55 = vpop.eup %6132  ;;  %6152 = vrcp.f32 %v4171_v13 }
 0x7ea   : > { %v8600_v2 = vpop.eup %6134  ;;  %6154 = vpow2.f32 %v5390_v48  ;;  %v5398_v48 = vmul.f32 -1.442695, %v8566_v44 }
 0x7eb   : > { %v8603_v43 = vpop.eup %6136  ;;  %6156 = vpow2.f32 %v5391_v36  ;;  %v5399_v36 = vmul.f32 -1.442695, %v8568_v20 }
 0x7ec   : > { %v8606_v35 = vpop.eup %6138  ;;  %6158 = vpow2.f32 %v5393_v32 }
 0x7ed   : > { %v8609_v34 = vpop.eup %6140  ;;  %6160 = vpow2.f32 %v5392_v52 }
 0x7ee   : > { %v6143_v13 = vpop.eup %6142  ;;  %6162 = vpow2.f32 %v5394_v12  ;;  %v5400_v12 = vmul.f32 -1.442695, %v8572_v41 }
 0x7ef   : > { %v6145_v51 = vpop.eup %6144  ;;  %6164 = vpow2.f32 %v5395_v15  ;;  %v4173_v11 = vadd.f32 1.0, %v6143_v13  ;;  %v5402_v15 = vmul.f32 -1.442695, %v8574_v62 }
 0x7f0   : > { %v6147_v8 = vpop.eup %6146  ;;  %6166 = vpow2.f32 %v5397_v53  ;;  %v4172_v52 = vadd.f32 1.0, %v6145_v51  ;;  %v5403_v53 = vmul.f32 -1.442695, %v8576_v18  ;;  %v5404_v51 = vmul.f32 -1.442695, %v8580_v17 }
 0x7f1   : > { %v6149_v32 = vpop.eup %6148  ;;  %6168 = vpow2.f32 %v5396_v50  ;;  %v5405_v50 = vmul.f32 -1.442695, %v8578_v4 }
 0x7f2   : > { %v8615_v54 = vpop.eup %6150  ;;  %6170 = vpow2.f32 %v5398_v48 }
 0x7f3   : > { %v8617_v59 = vpop.eup %6152  ;;  %6172 = vpow2.f32 %v5399_v36  ;;  %v5406_v36 = vmul.f32 -1.442695, %v8582_v61 }
 0x7f4   : > { %v6155_v3 = vpop.eup %6154  ;;  %6174 = vpow2.f32 %v5401_v25 }
 0x7f5   : > { %v6157_v39 = vpop.eup %6156  ;;  %6176 = vrcp.f32 %v4173_v11  ;;  %v4174_v25 = vadd.f32 1.0, %v6155_v3 }
 0x7f6   : > { %v6159_v29 = vpop.eup %6158  ;;  %6178 = vrcp.f32 %v4172_v52  ;;  %v4175_v21 = vadd.f32 1.0, %v6157_v39  ;;  %v4255_v52 = vmul.f32 %v8586_v37, %v8507_v27  ;;  %v4258_v39 = vmul.f32 %v8594_v40, %v8513_v19 }
 0x7f7   : > { %v6161_v13 = vpop.eup %6160  ;;  %6180 = vpow2.f32 %v5400_v12  ;;  %v4177_v63 = vadd.f32 1.0, %v6159_v29  ;;  %v4257_v12 = vmul.f32 %v8588_v42, %v8509_v28  ;;  %v4261_v37 = vmul.f32 %v8600_v2, %v8517_v9 }
 0x7f8   : > { %v6163_v48 = vpop.eup %6162  ;;  %6182 = vpow2.f32 %v5402_v15  ;;  %v4256_v15 = vmul.f32 %v8591_v26, %v8511_v33  ;;  %v4176_v61 = vadd.f32 1.0, %v6161_v13  ;;  %v4260_v28 = vmul.f32 %v8603_v43, %v8519_v14 }
 0x7f9   : > { %v6165_v58 = vpop.eup %6164  ;;  %6184 = vpow2.f32 %v5403_v53  ;;  %v4259_v53 = vmul.f32 %v8597_v55, %v8515_v0  ;;  %v4178_v27 = vadd.f32 1.0, %v6163_v48  ;;  %v4262_v26 = vmul.f32 %v8606_v35, %v8521_v45 }
 0x7fa   : > { %v6167_v30 = vpop.eup %6166  ;;  %6186 = vpow2.f32 %v5405_v50  ;;  %v4179_v33 = vadd.f32 1.0, %v6165_v58  ;;  %v8643_v19 = vmul.f32 %v8609_v34, %v8526_v6  ;;  %v4265_v55 = vmul.f32 %v6147_v8, %v8528_v38 }
 0x7fb   : > { %v6169_v11 = vpop.eup %6168  ;;  %6188 = vpow2.f32 %v5404_v51  ;;  %v4181_v0 = vadd.f32 1.0, %v6167_v30  ;;  %v8647_v9 = vmul.f32 %v6149_v32, %v8531_v60 }
 0x7fc   : > { %v6171_v49 = vpop.eup %6170  ;;  %6190 = vpow2.f32 %v5406_v36  ;;  %v4180_v14 = vadd.f32 1.0, %v6169_v11 }
 0x7fd   : > { %v6173_v3 = vpop.eup %6172  ;;  %6192 = vrcp.f32 %v4174_v25  ;;  %v4182_v43 = vadd.f32 1.0, %v6171_v49 }
 0x7fe   : > { %v6175_v29 = vpop.eup %6174  ;;  %6194 = vrcp.f32 %v4175_v21  ;;  %v4183_v30 = vadd.f32 1.0, %v6173_v3 }
 0x7ff   : > { %v6177_v42 = vpop.eup %6176  ;;  %6196 = vrcp.f32 %v4177_v63  ;;  %v4185_v32 = vadd.f32 1.0, %v6175_v29 }
 0x800   : > { %v6179_v40 = vpop.eup %6178  ;;  %6198 = vrcp.f32 %v4176_v61 }
 0x801   : > { %v6181_v2 = vpop.eup %6180  ;;  %6200 = vrcp.f32 %v4178_v27 }
 0x802   : > { %v6183_v63 = vpop.eup %6182  ;;  %6202 = vrcp.f32 %v4179_v33  ;;  %v4184_v25 = vadd.f32 1.0, %v6181_v2  ;;  %v4269_v2 = vmul.f32 %v6177_v42, %v8538_v56 }
 0x803   : > { %v6185_v61 = vpop.eup %6184  ;;  %6204 = vrcp.f32 %v4181_v0  ;;  %v4267_v0 = vmul.f32 %v8617_v59, %v8536_v5 }
 0x804   : > { %v3951_v21 = vpop.f32.mrb[64].mxu1  ;;  %v4024_v58 = vpop.f32.mrb[96].mxu0  ;;  %6206 = vrcp.f32 %v4180_v14 }
 0x805   : > { %v4287_v45 = vmul.f32 %v4255_v52, %v3951_v21  ;;  %v8649_v35 = vmul.f32 %v4257_v12, %v4024_v58  ;;  %v3953_v6 = vpop.f32.mrb[65].mxu1  ;;  %v4026_v34 = vpop.f32.mrb[97].mxu0  ;;  %6208 = vrcp.f32 %v4182_v43  ;;  %v5927_v21 = vld [vmem:[%s9033_s12 + $0x114] ss:$8 sps:$4 sm:$0xff]   ;;  %v4268_v43 = vmul.f32 %v6179_v40, %v8541_v16 }
 0x806   : > { %v4288_v50 = vmul.f32 %v4256_v15, %v3953_v6  ;;  %v8651_v8 = vmul.f32 %v4258_v39, %v4026_v34  ;;  %v3955_v38 = vpop.f32.mrb[66].mxu1  ;;  %v4028_v60 = vpop.f32.mrb[98].mxu0  ;;  %v4186_v15 = vadd.f32 1.0, %v6183_v63  ;;  %6210 = vrcp.f32 %v4183_v30 }
 0x807   : > { %v4291_v13 = vmul.f32 %v4259_v53, %v3955_v38  ;;  %v8653_v51 = vmul.f32 %v4261_v37, %v4028_v60  ;;  %v3957_v49 = vpop.f32.mrb[67].mxu1  ;;  %v4030_v48 = vpop.f32.mrb[99].mxu0  ;;  %v4187_v53 = vadd.f32 1.0, %v6185_v61  ;;  %6212 = vrcp.f32 %v4185_v32 }
 0x808   : > { %v6187_v36 = vpop.eup %6186  ;;  %v4292_v11 = vmul.f32 %v4260_v28, %v3957_v49  ;;  %v8655_v52 = vmul.f32 %v4262_v26, %v4030_v48  ;;  %v5922_v28 = vld [vmem:[%s9033_s12 + $0x100] ss:$8 sps:$4 sm:$0xff]   ;;  %v4266_v26 = vmul.f32 %v8615_v54, %v8533_v22  ;;  %6214 = vrcp.f32 %v4184_v25 }
 0x809   : > { %v6189_v12 = vpop.eup %6188  ;;  %v4319_v3 = vpack.c.bf16 %v4291_v13, %v4287_v45  ;;  %v4321_v39 = vpack.c.bf16 %v8653_v51, %v8649_v35  ;;  %v4189_v14 = vadd.f32 1.0, %v6187_v36  ;;  %6216 = vrcp.f32 %v4186_v15  ;;  %v9142_v51 = vld [vmem:[#allocation23_spill] sm:$0xff] }
 0x80a   : > { %v6191_v27 = vpop.eup %6190  ;;  %v4320_v29 = vpack.c.bf16 %v4292_v11, %v4288_v50  ;;  %v4322_v37 = vpack.c.bf16 %v8655_v52, %v8651_v8  ;;  %v4188_v45 = vadd.f32 1.0, %v6189_v12  ;;  %6218 = vrcp.f32 %v4187_v53  ;;  %v5951_v8 = vld [vmem:[%s9033_s12 + $0x194] ss:$8 sps:$4 sm:$0xff]   ;;  %v5949_v52 = vld [vmem:[%s9033_s12 + $0x190] ss:$8 sps:$4 sm:$0xff]  }
 0x80b   : > { %v6193_v33 = vpop.eup %6192  ;;  %v4190_v22 = vadd.f32 1.0, %v6191_v27  ;;  %6220 = vrcp.f32 %v4189_v14  ;;  %v5928_v27 = vld [vmem:[%s9033_s12 + $0x120] ss:$8 sps:$4 sm:$0xff]  }
 0x80c   : > { %v6195_v58 = vpop.eup %6194  ;;  %v3961_v6 = vpop.f32.mrb[68].mxu1  ;;  %4751 = vmatprep.mubr.bf16.mxu1 %v4320_v29  ;;  %v4270_v56 = vmul.f32 %v6193_v33, %v8543_v46  ;;  %v5930_v46 = vld [vmem:[%s9033_s12 + $0x124] ss:$8 sps:$4 sm:$0xff]   ;;  %6222 = vrcp.f32 %v4188_v45  ;;  %v5933_v33 = vld [vmem:[%s9033_s12 + $0x134] ss:$8 sps:$4 sm:$0xff]  }
 0x80d   : > { %v4034_v34 = vpop.f32.mrb[100].mxu0  ;;  %v6197_v54 = vpop.eup %6196  ;;  %v4295_v59 = vmul.f32 %v8643_v19, %v3961_v6  ;;  %4752 = vmatmul.mubr.bf16.vlgmr.msra.gmra.mrb[80].mxu1 %v4319_v3  ;;  %v5925_v19 = vld [vmem:[%s9033_s12 + $0x110] ss:$8 sps:$4 sm:$0xff]   ;;  %6224 = vrcp.f32 %v4190_v22  ;;  %v4271_v29 = vmul.f32 %v6195_v58, %v8548_v47 }
 0x80e   : > { %v8674_v5 = vmul.f32 %v4265_v55, %v4034_v34  ;;  %v3963_v63 = vpop.f32.mrb[69].mxu1  ;;  %v4036_v30 = vpop.f32.mrb[101].mxu0  ;;  %4793 = vmatpush1.bf16.msra.mxu1 %v5922_v28  ;;  %v4273_v28 = vmul.f32 %v6197_v54, %v8550_v1 }
 0x80f   : > { %v6199_v50 = vpop.eup %6198  ;;  %v4296_v16 = vmul.f32 %v8647_v9, %v3963_v63  ;;  %v8678_v42 = vmul.f32 %v4266_v26, %v4036_v30  ;;  %v3965_v40 = vpop.f32.mrb[70].mxu1  ;;  %4794 = vmatprep.subr.bf16.mxu1 %v5927_v21 }
 0x810   : > { %v4038_v38 = vpop.f32.mrb[102].mxu0  ;;  %v6201_v55 = vpop.eup %6200  ;;  %v4299_v60 = vmul.f32 %v4267_v0, %v3965_v40  ;;  %v4272_v0 = vmul.f32 %v6199_v50, %v8553_v31 }
 0x811   : > { %v8683_v61 = vmul.f32 %v4269_v2, %v4038_v38  ;;  %v3967_v32 = vpop.f32.mrb[71].mxu1  ;;  %v4040_v13 = vpop.f32.mrb[103].mxu0  ;;  %v4274_v14 = vmul.f32 %v6201_v55, %v8556_v23 }
 0x812   : > { %v6203_v9 = vpop.eup %6202  ;;  %v4300_v49 = vmul.f32 %v4268_v43, %v3967_v32  ;;  %v8688_v48 = vmul.f32 %v4270_v56, %v4040_v13  ;;  %v4323_v25 = vpack.c.bf16 %v4299_v60, %v4295_v59  ;;  %4795 = vmatpush1.bf16.msra.mxu1 %v5925_v19 }
 0x813   : > { %v6205_v36 = vpop.eup %6204  ;;  %v4325_v11 = vpack.c.bf16 %v8683_v61, %v8674_v5  ;;  %4796 = vmatprep.subr.bf16.mxu1 %v5930_v46  ;;  %v4275_v45 = vmul.f32 %v6203_v9, %v8558_v24  ;;  %v5931_v24 = vld [vmem:[%s9033_s12 + $0x130] ss:$8 sps:$4 sm:$0xff]  }
 0x814   : > { %v6207_v12 = vpop.eup %6206  ;;  %v4324_v15 = vpack.c.bf16 %v4300_v49, %v4296_v16  ;;  %v4326_v3 = vpack.c.bf16 %v8688_v48, %v8678_v42  ;;  %v3971_v21 = vpop.f32.mrb[72].mxu1  ;;  %v4277_v47 = vmul.f32 %v6205_v36, %v8561_v10  ;;  %v5934_v49 = vld [vmem:[%s9033_s12 + $0x140] ss:$8 sps:$4 sm:$0xff]  }
 0x815   : > { %v6209_v53 = vpop.eup %6208  ;;  %v4044_v2 = vpop.f32.mrb[104].mxu0  ;;  %v4303_v58 = vmul.f32 %v4271_v29, %v3971_v21  ;;  %v4276_v22 = vmul.f32 %v6207_v12, %v8564_v7  ;;  %v5936_v7 = vld [vmem:[%s9033_s12 + $0x144] ss:$8 sps:$4 sm:$0xff]  }
 0x816   : > { %v6211_v26 = vpop.eup %6210  ;;  %4761 = vmatprep.mubr.bf16.mxu1 %v4324_v15  ;;  %v8706_v1 = vmul.f32 %v4273_v28, %v4044_v2  ;;  %v3973_v6 = vpop.f32.mrb[73].mxu1  ;;  %v4278_v31 = vmul.f32 %v6209_v53, %v8566_v44  ;;  %4797 = vmatpush1.bf16.msra.mxu1 %v5928_v27  ;;  %v5939_v15 = vld [vmem:[%s9033_s12 + $0x154] ss:$8 sps:$4 sm:$0xff]   ;;  %v9143_v48 = vld [vmem:[#allocation15_spill] sm:$0xff] }
 0x817   : > { %v6213_v43 = vpop.eup %6212  ;;  %v4046_v34 = vpop.f32.mrb[105].mxu0  ;;  %4762 = vmatmul.mubr.bf16.gmra.mrb[84].mxu1 %v4323_v25  ;;  %v4304_v23 = vmul.f32 %v4272_v0, %v3973_v6  ;;  %4798 = vmatprep.subr.bf16.mxu1 %v5933_v33  ;;  %v4279_v25 = vmul.f32 %v6211_v26, %v8568_v20  ;;  %v9141_v2 = vld [vmem:[#allocation29_spill] sm:$0xff] }
 0x818   : > { %v6215_v54 = vpop.eup %6214  ;;  %v8710_v59 = vmul.f32 %v4274_v14, %v4046_v34  ;;  %v3975_v63 = vpop.f32.mrb[74].mxu1  ;;  %v4281_v12 = vmul.f32 %v6213_v43, %v8570_v57 }
 0x819   : > { %v4048_v30 = vpop.f32.mrb[106].mxu0  ;;  %v6217_v10 = vpop.eup %6216  ;;  %v4307_v50 = vmul.f32 %v4275_v45, %v3975_v63  ;;  %v4280_v27 = vmul.f32 %v6215_v54, %v8572_v41 }
 0x81a   : > { %v8715_v56 = vmul.f32 %v4277_v47, %v4048_v30  ;;  %v3977_v16 = vpop.f32.mrb[75].mxu1  ;;  %v4050_v40 = vpop.f32.mrb[107].mxu0  ;;  %4799 = vmatpush1.bf16.msra.mxu1 %v5931_v24  ;;  %v4282_v53 = vmul.f32 %v6217_v10, %v8574_v62  ;;  %v5940_v24 = vld [vmem:[%s9033_s12 + $0x160] ss:$8 sps:$4 sm:$0xff]   ;;  %v5945_v10 = vld [vmem:[%s9033_s12 + $0x174] ss:$8 sps:$4 sm:$0xff]  }
 0x81b   : > { %v6219_v44 = vpop.eup %6218  ;;  %v4308_v38 = vmul.f32 %v4276_v22, %v3977_v16  ;;  %v8720_v19 = vmul.f32 %v4278_v31, %v4050_v40  ;;  %v4327_v60 = vpack.c.bf16 %v4307_v50, %v4303_v58  ;;  %4800 = vmatprep.subr.bf16.mxu1 %v5936_v7  ;;  %v5943_v50 = vld [vmem:[%s9033_s12 + $0x170] ss:$8 sps:$4 sm:$0xff]   ;;  %v5948_v16 = vld [vmem:[%s9033_s12 + $0x184] ss:$8 sps:$4 sm:$0xff]   ;;  %v5946_v40 = vld [vmem:[%s9033_s12 + $0x180] ss:$8 sps:$4 sm:$0xff]  }
 0x81c   : > { %v6221_v55 = vpop.eup %6220  ;;  %v4329_v32 = vpack.c.bf16 %v8715_v56, %v8706_v1  ;;  %v3981_v29 = vpop.f32.mrb[76].mxu1  ;;  %v4283_v33 = vmul.f32 %v6219_v44, %v8576_v18  ;;  %v5937_v18 = vld [vmem:[%s9033_s12 + $0x150] ss:$8 sps:$4 sm:$0xff]   ;;  %v5952_v7 = vld [vmem:[%s9033_s12 + $0x1a0] ss:$8 sps:$4 sm:$0xff]  }
 0x81d   : > { %v6223_v13 = vpop.eup %6222  ;;  %v4328_v46 = vpack.c.bf16 %v4308_v38, %v4304_v23  ;;  %v4330_v9 = vpack.c.bf16 %v8720_v19, %v8710_v59  ;;  %v4054_v28 = vpop.f32.mrb[108].mxu0  ;;  %v4285_v0 = vmul.f32 %v6221_v55, %v8578_v4  ;;  %v4311_v14 = vmul.f32 %v4279_v25, %v3981_v29  ;;  %v5957_v44 = vld [vmem:[%s9033_s12 + $0x1b4] ss:$8 sps:$4 sm:$0xff]   ;;  %v5955_v38 = vld [vmem:[%s9033_s12 + $0x1b0] ss:$8 sps:$4 sm:$0xff]  }
 0x81e   : > { %v6225_v36 = vpop.eup %6224  ;;  %v8738_v20 = vmul.f32 %v4281_v12, %v4054_v28  ;;  %v3983_v57 = vpop.f32.mrb[77].mxu1  ;;  %v4284_v21 = vmul.f32 %v6223_v13, %v8580_v17  ;;  %4801 = vmatpush1.bf16.msra.mxu1 %v5934_v49  ;;  %v5942_v17 = vld [vmem:[%s9033_s12 + $0x164] ss:$8 sps:$4 sm:$0xff]   ;;  %v5963_v13 = vld [vmem:[%s9033_s12 + $0x1d4] ss:$8 sps:$4 sm:$0xff]  }
 0x81f   : > { %4771 = vmatprep.mubr.bf16.mxu1 %v4328_v46  ;;  %v4056_v26 = vpop.f32.mrb[109].mxu0  ;;  %v4286_v43 = vmul.f32 %v6225_v36, %v9141_v2  ;;  %v4312_v41 = vmul.f32 %v4280_v27, %v3983_v57  ;;  %v3985_v62 = vpop.f32.mrb[78].mxu1  ;;  %4802 = vmatprep.subr.bf16.mxu1 %v5939_v15  ;;  %v5960_v55 = vld [vmem:[%s9033_s12 + $0x1c4] ss:$8 sps:$4 sm:$0xff]   ;;  %v5961_v46 = vld [vmem:[%s9033_s12 + $0x1d0] ss:$8 sps:$4 sm:$0xff]  }
 0x820   : > { %4772 = vmatmul.mubr.bf16.gmra.mrb[88].mxu1 %v4327_v60  ;;  %v8742_v45 = vmul.f32 %v4282_v53, %v4056_v26  ;;  %v4058_v47 = vpop.f32.mrb[110].mxu0  ;;  %v4315_v4 = vmul.f32 %v4283_v33, %v3985_v62  ;;  %v3987_v6 = vpop.f32.mrb[79].mxu1  ;;  %v5958_v60 = vld [vmem:[%s9033_s12 + $0x1c0] ss:$8 sps:$4 sm:$0xff]   ;;  %v5966_v49 = vld [vmem:[%s9033_s12 + $0x1e4] ss:$8 sps:$4 sm:$0xff]  }
 0x821   : > { %v4317_v58 = vmul.f32 %v4285_v0, %v4058_v47  ;;  %v4060_v34 = vpop.f32.mrb[111].mxu0  ;;  %v4316_v54 = vmul.f32 %v4284_v21, %v3987_v6  ;;  %v5964_v36 = vld [vmem:[%s9033_s12 + $0x1e0] ss:$8 sps:$4 sm:$0xff]   ;;  %v5969_v25 = vld [vmem:[%s9033_s12 + $0x1f4] ss:$8 sps:$4 sm:$0xff]  }
 0x822   : > { %v4318_v22 = vmul.f32 %v4286_v43, %v4060_v34  ;;  %v4331_v31 = vpack.c.bf16 %v4315_v4, %v4311_v14  ;;  %4803 = vmatpush1.bf16.msra.mxu1 %v5937_v18  ;;  %v5967_v12 = vld [vmem:[%s9033_s12 + $0x1f0] ss:$8 sps:$4 sm:$0xff]   ;;  %v9148_v21 = vld [vmem:[#allocation16_spill] sm:$0xff]  ;;  %v9150_v34 = vld [vmem:[#allocation27_spill] sm:$0xff] }
 0x823   : > { %v4333_v23 = vpack.c.bf16 %v4317_v58, %v8738_v20  ;;  %v4332_v63 = vpack.c.bf16 %v4316_v54, %v4312_v41  ;;  %4804 = vmatprep.subr.bf16.mxu1 %v5942_v17  ;;  %v9145_v56 = vld [vmem:[#allocation22_spill] sm:$0xff]  ;;  %v9146_v28 = vld [vmem:[#allocation25_spill] sm:$0xff] }
 0x824   : > { %v4334_v30 = vpack.c.bf16 %v4318_v22, %v8742_v45  ;;  %v9147_v14 = vld [vmem:[#allocation14_spill] sm:$0xff]  ;;  %v9149_v45 = vld [vmem:[#allocation24_spill] sm:$0xff]  ;;  %v9151_v22 = vld [vmem:[#allocation19_spill] sm:$0xff] }
 0x825   : > { %4781 = vmatprep.mubr.bf16.mxu1 %v4332_v63 }
 0x826   : > { %4805 = vmatpush1.bf16.msra.mxu1 %v5940_v24 }
 0x827   : > { %4806 = vmatprep.subr.bf16.mxu1 %v5945_v10 }
 0x828   : > { %4782 = vmatmul.mubr.bf16.gmra.mrb[92].mxu1 %v4331_v31 }
 0x829   : > { %4824 = vmatprep.mubr.bf16.mxu1 %v4322_v37  ;;  %v5954_v37 = vld [vmem:[%s9033_s12 + $0x1a4] ss:$8 sps:$4 sm:$0xff]  }
 0x82a   : > { %4807 = vmatpush1.bf16.msra.mxu1 %v5943_v50 }
 0x82b   : > { %4808 = vmatprep.subr.bf16.mxu1 %v5948_v16  ;;  %v9153_v16 = vld [vmem:[#allocation26_spill] sm:$0xff] }
 0x82e   : > { %4809 = vmatpush1.bf16.msra.mxu1 %v5946_v40 }
 0x82f   : > { %4810 = vmatprep.subr.bf16.mxu1 %v5951_v8 }
 0x832   : > { %4811 = vmatpush1.bf16.msra.mxu1 %v5949_v52 }
 0x833   : > { %4812 = vmatprep.subr.bf16.mxu1 %v5954_v37 }
 0x836   : > { %4813 = vmatpush1.bf16.msra.mxu1 %v5952_v7 }
 0x837   : > { %4814 = vmatprep.subr.bf16.mxu1 %v5957_v44 }
 0x83a   : > { %4815 = vmatpush1.bf16.msra.mxu1 %v5955_v38  ;;  %v9154_v38 = vld [vmem:[#allocation18_spill] sm:$0xff] }
 0x83b   : > { %4816 = vmatprep.subr.bf16.mxu1 %v5960_v55 }
 0x83e   : > { %4817 = vmatpush1.bf16.msra.mxu1 %v5958_v60 }
 0x83f   : > { %4818 = vmatprep.subr.bf16.mxu1 %v5963_v13  ;;  %v9155_v13 = vld [vmem:[#allocation20_spill] sm:$0xff] }
 0x842   : > { %4819 = vmatpush1.bf16.msra.mxu1 %v5961_v46 }
 0x843   : > { %4820 = vmatprep.subr.bf16.mxu1 %v5966_v49 }
 0x846   : > { %4821 = vmatpush1.bf16.msra.mxu1 %v5964_v36 }
 0x847   : > { %4822 = vmatprep.subr.bf16.mxu1 %v5969_v25  ;;  %v9156_v25 = vld [vmem:[#allocation28_spill] sm:$0xff] }
 0x84a   : > { %4823 = vmatpush1.bf16.msra.mxu1 %v5967_v12 }
 0x84d   : > { %4825 = vmatmul.mubr.bf16.vlgmr.msra.gmra.mrb[80].mxu1 %v4321_v39 }
 0x84e   : > { %4834 = vmatprep.mubr.bf16.mxu1 %v4326_v3 }
 0x855   : > { %4835 = vmatmul.mubr.bf16.gmra.mrb[84].mxu1 %v4325_v11  ;;  %v9144_v11 = vld [vmem:[#allocation17_spill] sm:$0xff] }
 0x856   : > { %4844 = vmatprep.mubr.bf16.mxu1 %v4330_v9 }
 0x85d   : > { %4845 = vmatmul.mubr.bf16.gmra.mrb[88].mxu1 %v4329_v32 }
 0x85e   : > { %4854 = vmatprep.mubr.bf16.mxu1 %v4334_v30  ;;  %v9152_v30 = vld [vmem:[#allocation21_spill] sm:$0xff] }
 0x865   : > { %4855 = vmatmul.mubr.bf16.gmra.mrb[92].mxu1 %v4333_v23 }
 0x920   : > { %v4826_v35 = vpop.f32.mrb[80].mxu1 }
 0x921   : > { %v8828_v39 = vadd.f32 %v4826_v35, %v9142_v51  ;;  %v4828_v42 = vpop.f32.mrb[81].mxu1 }
 0x922   : > { %v8831_v3 = vadd.f32 %v4828_v42, %v9143_v48  ;;  %v4830_v5 = vpop.f32.mrb[82].mxu1  ;;  %v9157_v42 = vld [vmem:[#allocation30_spill] sm:$0xff] }
 0x923   : > { %v4882_v61 = vmul.f32 %v8828_v39, %v8828_v39  ;;  %v8836_v59 = vadd.f32 %v4830_v5, %v9144_v11  ;;  %v4832_v19 = vpop.f32.mrb[83].mxu1 }
 0x924   : > { %v4883_v1 = vmul.f32 %v8831_v3, %v8831_v3  ;;  %v8841_v32 = vadd.f32 %v4832_v19, %v9145_v56 }
 0x925   : > { %v4884_v9 = vmul.f32 %v8836_v59, %v8836_v59 }
 0x926   : > { %v4885_v15 = vmul.f32 %v8841_v32, %v8841_v32  ;;  %v4898_v27 = vadd.f32 %v4883_v1, %v4882_v61 }
 0x928   : > { %4899 = vadd.xlane.f32.xlu0 %v4898_v27  ;;  %v4836_v53 = vpop.f32.mrb[84].mxu1  ;;  %v4901_v29 = vadd.f32 %v4885_v15, %v4884_v9 }
 0x929   : > { %v8848_v33 = vadd.f32 %v4836_v53, %v9146_v28  ;;  %v4838_v0 = vpop.f32.mrb[85].mxu1 }
 0x92a   : > { %v8851_v20 = vadd.f32 %v4838_v0, %v9147_v14  ;;  %4902 = vadd.xlane.f32.xlu1 %v4901_v29  ;;  %v4840_v57 = vpop.f32.mrb[86].mxu1  ;;  %v4881_v14 = vld [vmem:[%s9034_s13] sm:$0x3] }
 0x92b   : > { %v4886_v26 = vmul.f32 %v8848_v33, %v8848_v33  ;;  %v8856_v2 = vadd.f32 %v4840_v57, %v9148_v21  ;;  %v4842_v43 = vpop.f32.mrb[87].mxu1 }
 0x92c   : > { %v4887_v41 = vmul.f32 %v8851_v20, %v8851_v20  ;;  %v8861_v62 = vadd.f32 %v4842_v43, %v9149_v45  ;;  %v9158_v43 = vld [vmem:[#allocation13_spill] sm:$0xff]  ;;  %v9159_v45 = vld [vmem:[#allocation12_spill] sm:$0xff] }
 0x92d   : > { %v4888_v47 = vmul.f32 %v8856_v2, %v8856_v2 }
 0x92e   : > { %v4889_v18 = vmul.f32 %v8861_v62, %v8861_v62  ;;  %v4904_v4 = vadd.f32 %v4887_v41, %v4886_v26  ;;  %v8912_v41 = vrot.slane %v4881_v14, %v9158_v43 }
 0x930   : > { %4905 = vadd.xlane.f32.xlu0 %v4904_v4  ;;  %v4846_v58 = vpop.f32.mrb[88].mxu1  ;;  %v4907_v6 = vadd.f32 %v4889_v18, %v4888_v47  ;;  %v8915_v47 = vrot.slane %v4881_v14, %v9159_v45 }
 0x931   : > { %v8868_v17 = vadd.f32 %v4846_v58, %v9150_v34  ;;  %v4848_v54 = vpop.f32.mrb[89].mxu1 }
 0x932   : > { %v8871_v31 = vadd.f32 %v4848_v54, %v9151_v22  ;;  %4908 = vadd.xlane.f32.xlu1 %v4907_v6  ;;  %v4850_v23 = vpop.f32.mrb[90].mxu1 }
 0x933   : > { %v4890_v63 = vmul.f32 %v8868_v17, %v8868_v17  ;;  %v8876_v24 = vadd.f32 %v4850_v23, %v9152_v30  ;;  %v4852_v10 = vpop.f32.mrb[91].mxu1 }
 0x934   : > { %v4891_v50 = vmul.f32 %v8871_v31, %v8871_v31  ;;  %v8881_v40 = vadd.f32 %v4852_v10, %v9153_v16 }
 0x935   : > { %v4892_v8 = vmul.f32 %v8876_v24, %v8876_v24 }
 0x936   : > { %v4893_v52 = vmul.f32 %v8881_v40, %v8881_v40  ;;  %v4910_v37 = vadd.f32 %v4891_v50, %v4890_v63 }
 0x938   : > { %4911 = vadd.xlane.f32.xlu0 %v4910_v37  ;;  %v4856_v7 = vpop.f32.mrb[92].mxu1  ;;  %v4913_v44 = vadd.f32 %v4893_v52, %v4892_v8 }
 0x939   : > { %v8888_v55 = vadd.f32 %v4856_v7, %v9154_v38  ;;  %v4858_v60 = vpop.f32.mrb[93].mxu1 }
 0x93a   : > { %v8891_v46 = vadd.f32 %v4858_v60, %v9155_v13  ;;  %4914 = vadd.xlane.f32.xlu1 %v4913_v44  ;;  %v4860_v49 = vpop.f32.mrb[94].mxu1 }
 0x93b   : > { %v4894_v36 = vmul.f32 %v8888_v55, %v8888_v55  ;;  %v8896_v12 = vadd.f32 %v4860_v49, %v9156_v25  ;;  %v4862_v35 = vpop.f32.mrb[95].mxu1 }
 0x93c   : > { %v4895_v51 = vmul.f32 %v8891_v46, %v8891_v46  ;;  %v8901_v48 = vadd.f32 %v4862_v35, %v9157_v42 }
 0x93d   : > { %v4896_v5 = vmul.f32 %v8896_v12, %v8896_v12 }
 0x93e   : > { %v4897_v61 = vmul.f32 %v8901_v48, %v8901_v48  ;;  %v4916_v11 = vadd.f32 %v4895_v51, %v4894_v36 }
 0x940   : > { %4917 = vadd.xlane.f32.xlu0 %v4916_v11  ;;  %v4919_v19 = vadd.f32 %v4897_v61, %v4896_v5 }
 0x942   : > { %4920 = vadd.xlane.f32.xlu1 %v4919_v19 }
 0x9b5   : > { %v4900_v1 = vpop.xlane.xlu0 %4899 }
 0x9b6   : > { %v4922_v56 = vmul.f32 0.00390625, %v4900_v1 }
 0x9b7   : > { %v4903_v9 = vpop.xlane.xlu1 %4902 }
 0x9b8   : > { %v4930_v15 = vadd.f32 1e-06, %v4922_v56  ;;  %v4923_v27 = vmul.f32 0.00390625, %v4903_v9 }
 0x9ba   : > { %6226 = vrsqrt.f32 %v4930_v15  ;;  %v4931_v53 = vadd.f32 1e-06, %v4923_v27 }
 0x9bc   : > { %6228 = vrsqrt.f32 %v4931_v53 }
 0x9bd   : > { %v4906_v29 = vpop.xlane.xlu0 %4905 }
 0x9be   : > { %v4924_v28 = vmul.f32 0.00390625, %v4906_v29 }
 0x9bf   : > { %v4909_v0 = vpop.xlane.xlu1 %4908 }
 0x9c0   : > { %v4932_v57 = vadd.f32 1e-06, %v4924_v28  ;;  %v4925_v26 = vmul.f32 0.00390625, %v4909_v0 }
 0x9c2   : > { %6230 = vrsqrt.f32 %v4932_v57  ;;  %v4933_v21 = vadd.f32 1e-06, %v4925_v26 }
 0x9c4   : > { %v6227_v18 = vpop.eup %6226  ;;  %6232 = vrsqrt.f32 %v4933_v21 }
 0x9c5   : > { %v4946_v4 = vmul.f32 %v6227_v18, %v8828_v39  ;;  %v4947_v58 = vmul.f32 %v6227_v18, %v8831_v3  ;;  %v4912_v6 = vpop.xlane.xlu0 %4911 }
 0x9c6   : > { %v6229_v34 = vpop.eup %6228  ;;  %v4926_v54 = vmul.f32 0.00390625, %v4912_v6 }
 0x9c7   : > { %v4973_v22 = vmul.f32 %v8912_v41, %v4946_v4  ;;  %v4974_v23 = vmul.f32 %v8915_v47, %v4947_v58  ;;  %v4948_v63 = vmul.f32 %v6229_v34, %v8836_v59  ;;  %v4949_v30 = vmul.f32 %v6229_v34, %v8841_v32  ;;  %v4915_v10 = vpop.xlane.xlu1 %4914 }
 0x9c8   : > { %v4934_v50 = vadd.f32 1e-06, %v4926_v54  ;;  %v4927_v16 = vmul.f32 0.00390625, %v4915_v10 }
 0x9c9   : > { %4989 = vst [vmem:[%s8925_s28] sm:$0xff] %v4973_v22  ;;  %4990 = vst [vmem:[%s8925_s28 + $0x8] sm:$0xff] %v4974_v23  ;;  %v4975_v39 = vmul.f32 %v8912_v41, %v4948_v63  ;;  %v4976_v3 = vmul.f32 %v8915_v47, %v4949_v30 }
 0x9ca   : > { %6234 = vrsqrt.f32 %v4934_v50  ;;  %v4935_v8 = vadd.f32 1e-06, %v4927_v16 }
 0x9cb   : > { %4991 = vst [vmem:[%s8925_s28 + $0x10] sm:$0xff] %v4975_v39  ;;  %4992 = vst [vmem:[%s8925_s28 + $0x18] sm:$0xff] %v4976_v3 }
 0x9cc   : > { %v6231_v59 = vpop.eup %6230  ;;  %6236 = vrsqrt.f32 %v4935_v8 }
 0x9cd   : > { %v4950_v32 = vmul.f32 %v6231_v59, %v8848_v33  ;;  %v4951_v52 = vmul.f32 %v6231_v59, %v8851_v20  ;;  %v4918_v37 = vpop.xlane.xlu0 %4917 }
 0x9ce   : > { %v6233_v7 = vpop.eup %6232  ;;  %v4928_v44 = vmul.f32 0.00390625, %v4918_v37 }
 0x9cf   : > { %v4977_v38 = vmul.f32 %v8912_v41, %v4950_v32  ;;  %v4978_v60 = vmul.f32 %v8915_v47, %v4951_v52  ;;  %v4952_v13 = vmul.f32 %v6233_v7, %v8856_v2  ;;  %v4953_v49 = vmul.f32 %v6233_v7, %v8861_v62  ;;  %v4921_v36 = vpop.xlane.xlu1 %4920 }
 0x9d0   : > { %v4936_v25 = vadd.f32 1e-06, %v4928_v44  ;;  %v4929_v35 = vmul.f32 0.00390625, %v4921_v36 }
 0x9d1   : > { %4993 = vst [vmem:[%s8925_s28 + $0x20] sm:$0xff] %v4977_v38  ;;  %4994 = vst [vmem:[%s8925_s28 + $0x28] sm:$0xff] %v4978_v60  ;;  %v4979_v33 = vmul.f32 %v8912_v41, %v4952_v13  ;;  %v4980_v20 = vmul.f32 %v8915_v47, %v4953_v49 }
 0x9d2   : > { %6238 = vrsqrt.f32 %v4936_v25  ;;  %v4937_v51 = vadd.f32 1e-06, %v4929_v35 }
 0x9d3   : > { %4995 = vst [vmem:[%s8925_s28 + $0x30] sm:$0xff] %v4979_v33  ;;  %4996 = vst [vmem:[%s8925_s28 + $0x38] sm:$0xff] %v4980_v20 }
 0x9d4   : > { %v6235_v2 = vpop.eup %6234  ;;  %6240 = vrsqrt.f32 %v4937_v51 }
 0x9d5   : > { %v4954_v62 = vmul.f32 %v6235_v2, %v8868_v17  ;;  %v4955_v42 = vmul.f32 %v6235_v2, %v8871_v31 }
 0x9d6   : > { %v6237_v5 = vpop.eup %6236 }
 0x9d7   : > { %v4981_v61 = vmul.f32 %v8912_v41, %v4954_v62  ;;  %v4982_v11 = vmul.f32 %v8915_v47, %v4955_v42  ;;  %v4956_v19 = vmul.f32 %v6237_v5, %v8876_v24  ;;  %v4957_v1 = vmul.f32 %v6237_v5, %v8881_v40 }
 0x9d9   : > { %4997 = vst [vmem:[%s8925_s28 + $0x40] sm:$0xff] %v4981_v61  ;;  %4998 = vst [vmem:[%s8925_s28 + $0x48] sm:$0xff] %v4982_v11  ;;  %v4983_v56 = vmul.f32 %v8912_v41, %v4956_v19  ;;  %v4984_v17 = vmul.f32 %v8915_v47, %v4957_v1 }
 0x9db   : > { %4999 = vst [vmem:[%s8925_s28 + $0x50] sm:$0xff] %v4983_v56  ;;  %5000 = vst [vmem:[%s8925_s28 + $0x58] sm:$0xff] %v4984_v17 }
 0x9dc   : > { %v6239_v31 = vpop.eup %6238 }
 0x9dd   : > { %v4958_v9 = vmul.f32 %v6239_v31, %v8888_v55  ;;  %v4959_v15 = vmul.f32 %v6239_v31, %v8891_v46 }
 0x9de   : > { %v6241_v24 = vpop.eup %6240 }
 0x9df   : > { %v4985_v40 = vmul.f32 %v8912_v41, %v4958_v9  ;;  %v4986_v27 = vmul.f32 %v8915_v47, %v4959_v15  ;;  %v4960_v53 = vmul.f32 %v6241_v24, %v8896_v12  ;;  %v4961_v29 = vmul.f32 %v6241_v24, %v8901_v48 }
 0x9e1   : > { %5001 = vst [vmem:[%s8925_s28 + $0x60] sm:$0xff] %v4985_v40  ;;  %5002 = vst [vmem:[%s8925_s28 + $0x68] sm:$0xff] %v4986_v27  ;;  %v4987_v55 = vmul.f32 %v8912_v41, %v4960_v53  ;;  %v4988_v46 = vmul.f32 %v8915_v47, %v4961_v29 }
 0x9e3   : > { %5003 = vst [vmem:[%s8925_s28 + $0x70] sm:$0xff] %v4987_v55  ;;  %5004 = vst [vmem:[%s8925_s28 + $0x78] sm:$0xff] %v4988_v46 }
 0x9e4   : > { %6313 = shalt.err (!%p6310_p3)
}
 0x9e5   : > { %s6314_s20 = scalar_lea.hbm %s8968_s19, 2048  ;;  %s6318_s28 = scalar_lea.hbm %s9035_s14, 4096 }
 0x9e6   : > { %p6315_p4 = scmp.ne.s32.totalorder %s8968_s19, %s6314_s20  ;;  %p6319_p9 = scmp.lt.u32.totalorder %s8968_s19, %s9035_s14 }
 0x9e7   : > { %p6320_p10 = scmp.lt.u32.totalorder %s6318_s28, %s6314_s20  ;;  %p6322_p12 = scmp.lt.u32.totalorder %s6314_s20, %s8968_s19 }
 0x9e8   : > { %p6316_p7 = pnand %p6315_p4, %p6481_p5 }
 0x9e9   : > { %p6321_p11 = por %p6320_p10, %p6319_p9 }
 0x9ea   : > { %p6317_p8 = pneg %p6316_p7 }
 0x9eb   : > { %p6323_p13 = por %p6322_p12, %p6321_p11 }
 0x9ed   : > { %p6324_p0 = pnand %p6323_p13, %p6317_p8 }
 0x9ef   : > { %6327 = shalt.err (!%p6324_p0)
}
 0x9f0   : > { %s6366_s15 = smov 256   ;;  %s6367_s25 = smov 16  }
 0x9f1   : > { %5640 = dma.vmem_to_hbm [thread:$0]  (%p6481_p5), %s8970_s26, 2048, %s8968_s19, %s8980_s17, %s6366_s15, %s6366_s15, %s6367_s25  }
 0x9f2 PF: > { %s9160_s16 = sld [smem:[#allocation7_spill]]  ;;  %s9161_s24 = sld [smem:[#allocation5_spill]] }
 0x9f8   : > { %p5646_p1 = scmp.ge.s32.totalorder %s9160_s16, 2  ;;  %s5035_s27 = sand.u32 1, %s9161_s24  }
 0x9f9   : > { %s5036_s20 = scalar_lea.sflag [#allocation3], %s5035_s27 }
 0x9fa   : > { %p5643_p2 = pnand %p5646_p1, %p6485_p6 }
 0x9fc   : > { %6345 = dma.done.wait (!%p5643_p2), %s5036_s20, 2048  }
 0x9fd   : > { %6347 = vsyncadd (!%p5643_p2), %s5036_s20, 4294965248  ;;  %s9163_s16 = sld [smem:[#allocation8_spill]]  ;;  %s9164_s21 = sld [smem:[#allocation6_spill]] }
 0x9fe   : > { %s9165_s15 = sld [smem:[#allocation9_spill]]  ;;  %s9166_s29 = smov %s6354_s30 }
 0xa03   : > { %p24_p3 = scmp.ge.s32.totalorder %s9163_s16, 4   ;;  %s9167_s30 = smov %s9164_s21 }
 0xa05   :  { %26 = sbr.rel (!%p24_p3) target bundleno = 3 (0x3), region = 117 }
 0xa0c   :  { %5041 = vsyncpa [#allocation3], 1 }
 0xa0d   :  { %5043 = vsyncpa [#allocation3 + $0x1], 1 }

</bundles_post_ra>
